<compile_context>
chip_gen: v6e
topology: v6e:2x2x1
jax: 0.10.0
libtpu: 0.0.40
codegen_flags: <defaults>
</compile_context>

<pallas_src>
import functools
import math

import jax
import jax.numpy as jnp
import numpy as np
from jax import lax
from jax.experimental import pallas as pl
from jax.experimental.pallas import tpu as pltpu


def _round_up(x, m):
    return ((x + m - 1) // m) * m


def pair_feature_kernel(p_i_ref, p_j_ref, t_ref, mask_ref, wrel_ref, wt_ref,
                        out_ref, *, tile_i, tile_j, relpos_k, n_bin):
    """One (tile_i, tile_j) tile of the L x L pair plane."""
    n_bin_pad = wrel_ref.shape[0]
    c_t = wt_ref.shape[0]          # template channels (already padded to 8k)
    c_p = wt_ref.shape[1]

    i0 = pl.program_id(1) * tile_i     # absolute row offset of this tile
    j0 = pl.program_id(2) * tile_j     # absolute col offset of this tile

    # ---- template projection on the MXU (every tile) ------------------------
    # LHS [tile_i*tile_j, c_t] is a layout-preserving reshape (tile_j % 8 == 0);
    # replaces the old unrolled VPU multiply-add loop and its per-channel
    # lane->sublane relayouts.  The MXU slot is otherwise idle here.
    t_flat = t_ref[0].reshape(tile_i * tile_j, c_t)
    tmpl = jnp.dot(t_flat, wt_ref[...],
                   preferred_element_type=jnp.float32,
                   precision=lax.Precision.HIGHEST)
    tmpl = tmpl.reshape(tile_i, tile_j, c_p)

    # Single lanes->sublanes relayout of the mask per tile, reused by both paths.
    mask = mask_ref[0][:, :, None]                       # [tile_i, tile_j, 1]

    p_i = p_i_ref[0]                                     # [tile_i, c_p]
    p_j = p_j_ref[0]                                     # [tile_j, c_p]
    wrel = wrel_ref[...]                                 # [n_bin_pad, c_p]

    # ---- relpos: constant-bin fast path --------------------------------------
    # bin = argmin |d - v| over v = -k..k  ==  clip(d, -k, k) + k for integer d.
    d_max = (i0 + tile_i - 1) - j0
    d_min = i0 - (j0 + tile_j - 1)
    all_lo = d_max <= -relpos_k          # whole tile clips to bin 0
    all_hi = d_min >= relpos_k           # whole tile clips to bin n_bin - 1
    const_bin = jnp.logical_or(all_lo, all_hi)

    @pl.when(const_bin)
    def _fast_path():
        # Fold the single (bias-carrying) relpos row into p_i: O(tile_i*c_p).
        # Remaining full-tile ops: outer sum, +tmpl, *mask, store.
        rel_row = jnp.where(all_hi, wrel[n_bin - 1], wrel[0])        # [c_p]
        base = (p_i + rel_row[None, :])[:, None, :] + p_j[None, :, :]
        out_ref[0] = ((base + tmpl) * mask).astype(out_ref.dtype)

    @pl.when(jnp.logical_not(const_bin))
    def _mixed_path():
        # Mixed-bin tiles (the ~3 block-diagonal bands): one-hot @ wrel on the
        # MXU instead of an n_bin-deep VPU select-accumulate over the tile.
        ii = lax.broadcasted_iota(jnp.int32, (tile_i, tile_j), 0) + i0
        jj = lax.broadcasted_iota(jnp.int32, (tile_i, tile_j), 1) + j0
        idx = jnp.clip(ii - jj, -relpos_k, relpos_k) + relpos_k      # [TI, TJ]
        bins = lax.broadcasted_iota(jnp.int32, (tile_i, tile_j, n_bin_pad), 2)
        oh = (idx[:, :, None] == bins).astype(jnp.float32)           # exact 0/1
        rel = jnp.dot(oh.reshape(tile_i * tile_j, n_bin_pad), wrel,
                      preferred_element_type=jnp.float32,
                      precision=lax.Precision.HIGHEST)
        rel = rel.reshape(tile_i, tile_j, c_p)
        base = p_i[:, None, :] + p_j[None, :, :]
        out_ref[0] = ((base + rel + tmpl) * mask).astype(out_ref.dtype)


def pair_feature_net(s, t, p_mask, params, relpos_k, *,
                     tile_i=None, tile_j=None, out_dtype=jnp.float32):
    B, L, c_s = s.shape
    c_t = t.shape[-1]
    c_p = params["wi"].shape[1]
    n_bin = 2 * relpos_k + 1
    n_bin_pad = _round_up(n_bin, 8)
    c_t_pad = _round_up(c_t, 8)

    # ---- hoisted precompute (plain XLA, O(B*L*c_s*c_p): tiny vs the kernel) --
    # One fused [c_s, 2*c_p] projection for both single->pair linears; all four
    # biases are folded into the relpos table (every (i, j) hits exactly one
    # relpos bin, so each bias is added exactly once).
    w_ij = jnp.concatenate([params["wi"], params["wj"]], axis=1)
    pij = jnp.dot(s, w_ij, preferred_element_type=jnp.float32)
    p_i, p_j = pij[..., :c_p], pij[..., c_p:]

    bias_tot = params["bi"] + params["bj"] + params["brel"] + params["bt"]
    wrel_tot = params["wrel"] + bias_tot                       # [n_bin, c_p]
    wrel_tot = jnp.pad(wrel_tot, ((0, n_bin_pad - n_bin), (0, 0)))
    wt_pad = jnp.pad(params["wt"], ((0, c_t_pad - c_t), (0, 0)))

    # ---- tile selection -------------------------------------------------------
    # tile_j must be a multiple of 128 (lane-dense mask / template / output
    # tiles) or span the whole padded row.  tile_i defaults to 64 so the f32
    # working set fits v7x's 64 MiB/TC VMEM as well as v5e/v6e; use tile_i=128
    # (and/or out_dtype=bfloat16) on 128-MiB-VMEM chips.
    if tile_j is None:
        tile_j = 128 if L >= 128 else _round_up(L, 8)
    if tile_i is None:
        base_l = _round_up(L, tile_j)
        tile_i = 64
        while base_l % tile_i:
            tile_i //= 2
    lcm = tile_i * tile_j // math.gcd(tile_i, tile_j)
    L_pad = _round_up(L, lcm)
    assert tile_i % 8 == 0 and L_pad % tile_i == 0
    assert (tile_j % 128 == 0 or tile_j == L_pad) and L_pad % tile_j == 0

    # ---- padding (replaces the old full-L fallback tile) ----------------------
    # TODO(synk): have the template producer emit 8-aligned channels so the
    # channel pad (one extra HBM pass over the small t tensor) disappears.
    if L_pad != L:
        dp = L_pad - L
        p_i = jnp.pad(p_i, ((0, 0), (0, dp), (0, 0)))
        p_j = jnp.pad(p_j, ((0, 0), (0, dp), (0, 0)))
        p_mask = jnp.pad(p_mask, ((0, 0), (0, dp), (0, dp)))
    if L_pad != L or c_t_pad != c_t:
        t = jnp.pad(t, ((0, 0), (0, L_pad - L), (0, L_pad - L),
                        (0, c_t_pad - c_t)))

    kernel = functools.partial(pair_feature_kernel, tile_i=tile_i,
                               tile_j=tile_j, relpos_k=relpos_k, n_bin=n_bin)

    grid = (B, L_pad // tile_i, L_pad // tile_j)
    grid_spec = pltpu.PrefetchScalarGridSpec(
        num_scalar_prefetch=0,
        grid=grid,
        in_specs=[
            pl.BlockSpec((1, tile_i, c_p), lambda b, i, j: (b, i, 0)),        # p_i rows
            pl.BlockSpec((1, tile_j, c_p), lambda b, i, j: (b, j, 0)),        # p_j cols
            pl.BlockSpec((1, tile_i, tile_j, c_t_pad),
                         lambda b, i, j: (b, i, j, 0)),                       # template
            pl.BlockSpec((1, tile_i, tile_j), lambda b, i, j: (b, i, j)),     # pair mask
            pl.BlockSpec((n_bin_pad, c_p), lambda b, i, j: (0, 0)),           # relpos(+bias)
            pl.BlockSpec((c_t_pad, c_p), lambda b, i, j: (0, 0)),             # template W
        ],
        out_specs=pl.BlockSpec((1, tile_i, tile_j, c_p),
                               lambda b, i, j: (b, i, j, 0)),
    )

    # VMEM budget: double-buffered output + template tiles (the template minor
    # dim is lane-padded to 128 in VMEM) plus headroom for chained full-tile
    # temporaries; clamped to stay under every generation's physical VMEM.
    out_tile = tile_i * tile_j * c_p * jnp.dtype(out_dtype).itemsize
    t_tile = tile_i * tile_j * _round_up(c_t_pad, 128) * 4
    f32_tile = tile_i * tile_j * c_p * 4
    vmem_limit = int(min(100 * 2**20,
                         max(48 * 2**20,
                             2 * out_tile + 2 * t_tile + 8 * f32_tile)))

    out = pl.pallas_call(
        kernel,
        out_shape=jax.ShapeDtypeStruct((B, L_pad, L_pad, c_p), out_dtype),
        grid_spec=grid_spec,
        compiler_params=pltpu.CompilerParams(
            # All axes independent -> megacore / multi-TC sharding (v7x: 2 TCs).
            dimension_semantics=("parallel", "parallel", "parallel"),
            vmem_limit_bytes=vmem_limit),
    )(p_i, p_j, t, p_mask, wrel_tot, wt_pad)

    if L_pad != L:
        out = out[:, :L, :L, :]
    return out


def pair_feature_net_ref(s, t, p_mask, params, relpos_k):
    """Pure-JAX reference mirroring the PyTorch forward."""
    p_i = s @ params["wi"] + params["bi"][0]
    p_j = s @ params["wj"] + params["bj"][0]
    p = p_i[:, :, None, :] + p_j[:, None, :, :]

    B, L, _ = s.shape
    r = jnp.broadcast_to(jnp.arange(L), (B, L))
    d = r[:, :, None] - r[:, None, :]
    v = jnp.arange(-relpos_k, relpos_k + 1)
    b = jnp.argmin(jnp.abs(d[:, :, :, None] - v[None, None, None, :]), axis=-1)
    oh = jax.nn.one_hot(b, 2 * relpos_k + 1, dtype=jnp.float32)
    p = p + oh @ params["wrel"] + params["brel"][0]
    p = p + t @ params["wt"] + params["bt"][0]
    p = p * p_mask[..., None]
    return p


if __name__ == "__main__":
    # Full-f32 matmuls in wrapper / reference / kernel so the f32 checks are tight.
    jax.config.update("jax_default_matmul_precision", "highest")

    c_s, c_p = 32, 128          # c_p = 128 (genie1 value): lane-dense stores
    relpos_k = 3
    n_bin = 2 * relpos_k + 1
    c_template = 4              # TODO(synk): get_template_fn(template_type) is
                                # unavailable; template_fn is treated as identity.

    kp = jax.random.split(jax.random.PRNGKey(0), 8)
    params = {
        "wi": jax.random.normal(kp[0], (c_s, c_p), jnp.float32) * 0.1,
        "bi": jax.random.normal(kp[1], (1, c_p), jnp.float32) * 0.1,
        "wj": jax.random.normal(kp[2], (c_s, c_p), jnp.float32) * 0.1,
        "bj": jax.random.normal(kp[3], (1, c_p), jnp.float32) * 0.1,
        "wrel": jax.random.normal(kp[4], (n_bin, c_p), jnp.float32) * 0.1,
        "brel": jax.random.normal(kp[5], (1, c_p), jnp.float32) * 0.1,
        "wt": jax.random.normal(kp[6], (c_template, c_p), jnp.float32) * 0.1,
        "bt": jax.random.normal(kp[7], (1, c_p), jnp.float32) * 0.1,
    }

    def run_case(B, L, key, rtol, atol, **kw):
        ks = jax.random.split(key, 3)
        s = jax.random.normal(ks[0], (B, L, c_s), jnp.float32)
        t = jax.random.normal(ks[1], (B, L, L, c_template), jnp.float32)
        p_mask = (jax.random.uniform(ks[2], (B, L, L)) > 0.3).astype(jnp.float32)
        out = jax.block_until_ready(
            pair_feature_net(s, t, p_mask, params, relpos_k, **kw))
        ref = pair_feature_net_ref(s, t, p_mask, params, relpos_k)
        np.testing.assert_allclose(np.asarray(out.astype(jnp.float32)),
                                   np.asarray(ref), rtol=rtol, atol=atol)

    k1, k2, k3 = jax.random.split(jax.random.PRNGKey(1), 3)
    # 1) small: 8x32 tiles, mixed-bin (MXU one-hot) path only, f32, tight check.
    run_case(2, 32, k1, rtol=1e-4, atol=1e-4, tile_i=8, tile_j=32)
    # 2) 128-wide lane-dense tiles: exercises BOTH the constant-bin fast path
    #    and the mixed path, with bf16 stores (the v6e/v7x HBM-write lever).
    run_case(1, 256, k2, rtol=3e-2, atol=3e-2, tile_i=64, tile_j=128,
             out_dtype=jnp.bfloat16)
    # 3) L not a multiple of the tile: wrapper-side padding path, default tiles.
    run_case(1, 100, k3, rtol=1e-4, atol=1e-4)

    print("KERNEL_OK")
</pallas_src>

<mosaic_0001>
module attributes {stable_mosaic.version = 11 : i64} {
  func.func @pair_feature_kernel(%arg0: i32, %arg1: i32, %arg2: i32, %arg3: memref<1x8x128xf32, #tpu.memory_space<vmem>>, %arg4: memref<1x32x128xf32, #tpu.memory_space<vmem>>, %arg5: memref<1x8x32x8xf32, #tpu.memory_space<vmem>>, %arg6: memref<1x8x32xf32, #tpu.memory_space<vmem>>, %arg7: memref<8x128xf32, #tpu.memory_space<vmem>>, %arg8: memref<8x128xf32, #tpu.memory_space<vmem>>, %arg9: memref<1x8x32x128xf32, #tpu.memory_space<vmem>>) attributes {dimension_semantics = [#tpu.dimension_semantics<parallel>, #tpu.dimension_semantics<parallel>, #tpu.dimension_semantics<parallel>], iteration_bounds = array<i64: 2, 4, 1>, scalar_prefetch = 0 : i64, scratch_operands = 0 : i64, tpu.core_type = #tpu.core_type<tc>, window_params = [{transform_indices = @transform_0, window_bounds = array<i64: 1, 8, 128>}, {transform_indices = @transform_1, window_bounds = array<i64: 1, 32, 128>}, {transform_indices = @transform_2, window_bounds = array<i64: 1, 8, 32, 8>}, {transform_indices = @transform_3, window_bounds = array<i64: 1, 8, 32>}, {pipeline_mode = #tpu.pipeline_mode<synchronous>, transform_indices = @transform_4, window_bounds = array<i64: 8, 128>}, {pipeline_mode = #tpu.pipeline_mode<synchronous>, transform_indices = @transform_5, window_bounds = array<i64: 8, 128>}, {transform_indices = @transform_6, window_bounds = array<i64: 1, 8, 32, 128>}]} {
    %c8_i32 = arith.constant 8 : i32
    %0 = arith.muli %arg1, %c8_i32 : i32
    %c32_i32 = arith.constant 32 : i32
    %1 = arith.muli %arg2, %c32_i32 : i32
    %c0 = arith.constant 0 : index
    %c0_0 = arith.constant 0 : index
    %c0_1 = arith.constant 0 : index
    %c0_2 = arith.constant 0 : index
    %2 = vector.load %arg5[%c0, %c0_0, %c0_1, %c0_2] : memref<1x8x32x8xf32, #tpu.memory_space<vmem>>, vector<1x8x32x8xf32>
    %3 = vector.shape_cast %2 : vector<1x8x32x8xf32> to vector<8x32x8xf32>
    %4 = vector.shape_cast %3 : vector<8x32x8xf32> to vector<256x8xf32>
    %c0_3 = arith.constant 0 : index
    %c0_4 = arith.constant 0 : index
    %5 = vector.load %arg8[%c0_3, %c0_4] : memref<8x128xf32, #tpu.memory_space<vmem>>, vector<8x128xf32>
    %cst = arith.constant dense<0.000000e+00> : vector<256x128xf32>
    %6 = tpu.matmul %4, %5, %cst {dimension_numbers = #tpu.dot_dimension_numbers<[1], [0], [0], [1], [0, 0, 1, 1], [], []>, precision = #tpu.contract_precision<fp32>} : vector<256x8xf32>, vector<8x128xf32>, vector<256x128xf32> -> vector<256x128xf32>
    %7 = vector.shape_cast %6 : vector<256x128xf32> to vector<8x32x128xf32>
    %c0_5 = arith.constant 0 : index
    %c0_6 = arith.constant 0 : index
    %c0_7 = arith.constant 0 : index
    %8 = vector.load %arg6[%c0_5, %c0_6, %c0_7] : memref<1x8x32xf32, #tpu.memory_space<vmem>>, vector<1x8x32xf32>
    %9 = vector.shape_cast %8 : vector<1x8x32xf32> to vector<8x32xf32>
    %10 = vector.shape_cast %9 : vector<8x32xf32> to vector<8x32x1xf32>
    %c0_8 = arith.constant 0 : index
    %c0_9 = arith.constant 0 : index
    %c0_10 = arith.constant 0 : index
    %11 = vector.load %arg3[%c0_8, %c0_9, %c0_10] : memref<1x8x128xf32, #tpu.memory_space<vmem>>, vector<1x8x128xf32>
    %12 = vector.shape_cast %11 : vector<1x8x128xf32> to vector<8x128xf32>
    %c0_11 = arith.constant 0 : index
    %c0_12 = arith.constant 0 : index
    %c0_13 = arith.constant 0 : index
    %13 = vector.load %arg4[%c0_11, %c0_12, %c0_13] : memref<1x32x128xf32, #tpu.memory_space<vmem>>, vector<1x32x128xf32>
    %14 = vector.shape_cast %13 : vector<1x32x128xf32> to vector<32x128xf32>
    %c0_14 = arith.constant 0 : index
    %c0_15 = arith.constant 0 : index
    %15 = vector.load %arg7[%c0_14, %c0_15] : memref<8x128xf32, #tpu.memory_space<vmem>>, vector<8x128xf32>
    %c8_i32_16 = arith.constant 8 : i32
    %16 = arith.addi %0, %c8_i32_16 : i32
    %c1_i32 = arith.constant 1 : i32
    %17 = arith.subi %16, %c1_i32 : i32
    %18 = arith.subi %17, %1 : i32
    %c32_i32_17 = arith.constant 32 : i32
    %19 = arith.addi %1, %c32_i32_17 : i32
    %c1_i32_18 = arith.constant 1 : i32
    %20 = arith.subi %19, %c1_i32_18 : i32
    %21 = arith.subi %0, %20 : i32
    %c-3_i32 = arith.constant -3 : i32
    %22 = arith.cmpi sle, %18, %c-3_i32 : i32
    %c3_i32 = arith.constant 3 : i32
    %23 = arith.cmpi sge, %21, %c3_i32 : i32
    %24 = arith.ori %22, %23 : i1
    %25 = arith.extui %24 : i1 to i32
    %c0_i32 = arith.constant 0 : i32
    %26 = arith.cmpi ne, %25, %c0_i32 : i32
    scf.if %26 {
      %30 = vector.extract_strided_slice %15 {offsets = [6, 0], sizes = [1, 128], strides = [1, 1]} : vector<8x128xf32> to vector<1x128xf32>
      %31 = vector.shape_cast %30 : vector<1x128xf32> to vector<128xf32>
      %32 = vector.extract_strided_slice %15 {offsets = [0, 0], sizes = [1, 128], strides = [1, 1]} : vector<8x128xf32> to vector<1x128xf32>
      %33 = vector.shape_cast %32 : vector<1x128xf32> to vector<128xf32>
      %34 = arith.select %23, %31, %33 : vector<128xf32>
      %35 = vector.shape_cast %34 : vector<128xf32> to vector<1x128xf32>
      %36 = vector.broadcast %35 : vector<1x128xf32> to vector<8x128xf32>
      %37 = arith.addf %12, %36 : vector<8x128xf32>
      %38 = vector.shape_cast %37 : vector<8x128xf32> to vector<8x1x128xf32>
      %39 = vector.shape_cast %14 : vector<32x128xf32> to vector<1x32x128xf32>
      %40 = vector.broadcast %38 : vector<8x1x128xf32> to vector<8x32x128xf32>
      %41 = vector.broadcast %39 : vector<1x32x128xf32> to vector<8x32x128xf32>
      %42 = arith.addf %40, %41 : vector<8x32x128xf32>
      %43 = arith.addf %42, %7 : vector<8x32x128xf32>
      %44 = vector.broadcast %10 : vector<8x32x1xf32> to vector<8x32x128xf32>
      %45 = arith.mulf %43, %44 : vector<8x32x128xf32>
      %c0_20 = arith.constant 0 : index
      %c0_21 = arith.constant 0 : index
      %c0_22 = arith.constant 0 : index
      %c0_23 = arith.constant 0 : index
      %46 = vector.load %arg9[%c0_20, %c0_21, %c0_22, %c0_23] : memref<1x8x32x128xf32, #tpu.memory_space<vmem>>, vector<1x8x32x128xf32>
      %47 = vector.shape_cast %46 : vector<1x8x32x128xf32> to vector<8x32x128xf32>
      %48 = vector.shape_cast %45 : vector<8x32x128xf32> to vector<1x8x32x128xf32>
      tpu.vector_store %arg9[%c0_20, %c0_21, %c0_22, %c0_23], %48 {strides = array<i32>} : memref<1x8x32x128xf32, #tpu.memory_space<vmem>>, vector<1x8x32x128xf32>,
    } else {
    }
    %true = arith.constant true
    %27 = arith.xori %24, %true : i1
    %28 = arith.extui %27 : i1 to i32
    %c0_i32_19 = arith.constant 0 : i32
    %29 = arith.cmpi ne, %28, %c0_i32_19 : i32
    scf.if %29 {
      %30 = tpu.iota {dimensions = array<i32: 0>} : vector<8x32xi32>
      %31 = vector.broadcast %0 : i32 to vector<8x32xi32>
      %32 = arith.addi %30, %31 : vector<8x32xi32>
      %33 = tpu.iota {dimensions = array<i32: 1>} : vector<8x32xi32>
      %34 = vector.broadcast %1 : i32 to vector<8x32xi32>
      %35 = arith.addi %33, %34 : vector<8x32xi32>
      %36 = arith.subi %32, %35 : vector<8x32xi32>
      %c-3_i32_20 = arith.constant -3 : i32
      %c3_i32_21 = arith.constant 3 : i32
      %37 = vector.broadcast %c-3_i32_20 : i32 to vector<8x32xi32>
      %38 = arith.maxsi %37, %36 : vector<8x32xi32>
      %39 = vector.broadcast %c3_i32_21 : i32 to vector<8x32xi32>
      %40 = arith.minsi %39, %38 : vector<8x32xi32>
      %c3_i32_22 = arith.constant 3 : i32
      %41 = vector.broadcast %c3_i32_22 : i32 to vector<8x32xi32>
      %42 = arith.addi %40, %41 : vector<8x32xi32>
      %43 = tpu.iota {dimensions = array<i32: 2>} : vector<8x32x8xi32>
      %44 = vector.shape_cast %42 : vector<8x32xi32> to vector<8x32x1xi32>
      %45 = vector.broadcast %44 : vector<8x32x1xi32> to vector<8x32x8xi32>
      %46 = arith.cmpi eq, %45, %43 : vector<8x32x8xi32>
      %47 = arith.extui %46 : vector<8x32x8xi1> to vector<8x32x8xi32>
      %48 = arith.sitofp %47 : vector<8x32x8xi32> to vector<8x32x8xf32>
      %49 = vector.shape_cast %48 : vector<8x32x8xf32> to vector<256x8xf32>
      %cst_23 = arith.constant dense<0.000000e+00> : vector<256x128xf32>
      %50 = tpu.matmul %49, %15, %cst_23 {dimension_numbers = #tpu.dot_dimension_numbers<[1], [0], [0], [1], [0, 0, 1, 1], [], []>, precision = #tpu.contract_precision<fp32>} : vector<256x8xf32>, vector<8x128xf32>, vector<256x128xf32> -> vector<256x128xf32>
      %51 = vector.shape_cast %50 : vector<256x128xf32> to vector<8x32x128xf32>
      %52 = vector.shape_cast %12 : vector<8x128xf32> to vector<8x1x128xf32>
      %53 = vector.shape_cast %14 : vector<32x128xf32> to vector<1x32x128xf32>
      %54 = vector.broadcast %52 : vector<8x1x128xf32> to vector<8x32x128xf32>
      %55 = vector.broadcast %53 : vector<1x32x128xf32> to vector<8x32x128xf32>
      %56 = arith.addf %54, %55 : vector<8x32x128xf32>
      %57 = arith.addf %56, %51 : vector<8x32x128xf32>
      %58 = arith.addf %57, %7 : vector<8x32x128xf32>
      %59 = vector.broadcast %10 : vector<8x32x1xf32> to vector<8x32x128xf32>
      %60 = arith.mulf %58, %59 : vector<8x32x128xf32>
      %c0_24 = arith.constant 0 : index
      %c0_25 = arith.constant 0 : index
      %c0_26 = arith.constant 0 : index
      %c0_27 = arith.constant 0 : index
      %61 = vector.load %arg9[%c0_24, %c0_25, %c0_26, %c0_27] : memref<1x8x32x128xf32, #tpu.memory_space<vmem>>, vector<1x8x32x128xf32>
      %62 = vector.shape_cast %61 : vector<1x8x32x128xf32> to vector<8x32x128xf32>
      %63 = vector.shape_cast %60 : vector<8x32x128xf32> to vector<1x8x32x128xf32>
      tpu.vector_store %arg9[%c0_24, %c0_25, %c0_26, %c0_27], %63 {strides = array<i32>} : memref<1x8x32x128xf32, #tpu.memory_space<vmem>>, vector<1x8x32x128xf32>,
    } else {
    }
    return
  }
  func.func @transform_0(%arg0: i32, %arg1: i32, %arg2: i32) -> (i32, i32, i32) {
    %c0_i32 = arith.constant 0 : i32
    %c0_i32_0 = arith.constant 0 : i32
    return %arg0, %arg1, %c0_i32 : i32, i32, i32
  }
  func.func @transform_1(%arg0: i32, %arg1: i32, %arg2: i32) -> (i32, i32, i32) {
    %c0_i32 = arith.constant 0 : i32
    %c0_i32_0 = arith.constant 0 : i32
    return %arg0, %arg2, %c0_i32 : i32, i32, i32
  }
  func.func @transform_2(%arg0: i32, %arg1: i32, %arg2: i32) -> (i32, i32, i32, i32) {
    %c0_i32 = arith.constant 0 : i32
    %c0_i32_0 = arith.constant 0 : i32
    return %arg0, %arg1, %arg2, %c0_i32 : i32, i32, i32, i32
  }
  func.func @transform_3(%arg0: i32, %arg1: i32, %arg2: i32) -> (i32, i32, i32) {
    %c0_i32 = arith.constant 0 : i32
    return %arg0, %arg1, %arg2 : i32, i32, i32
  }
  func.func @transform_4(%arg0: i32, %arg1: i32, %arg2: i32) -> (i32, i32) {
    %c0_i32 = arith.constant 0 : i32
    %c0_i32_0 = arith.constant 0 : i32
    %c0_i32_1 = arith.constant 0 : i32
    return %c0_i32, %c0_i32_0 : i32, i32
  }
  func.func @transform_5(%arg0: i32, %arg1: i32, %arg2: i32) -> (i32, i32) {
    %c0_i32 = arith.constant 0 : i32
    %c0_i32_0 = arith.constant 0 : i32
    %c0_i32_1 = arith.constant 0 : i32
    return %c0_i32, %c0_i32_0 : i32, i32
  }
  func.func @transform_6(%arg0: i32, %arg1: i32, %arg2: i32) -> (i32, i32, i32, i32) {
    %c0_i32 = arith.constant 0 : i32
    %c0_i32_0 = arith.constant 0 : i32
    return %arg0, %arg1, %arg2, %c0_i32 : i32, i32, i32, i32
  }
}

</mosaic_0001>

<bundles_post_ra>
// kernel: tpu_custom_call.1
= control target key start
LH: loop header
LB: loop body
LE: loop exit
PB: predicated region body
PF: predicated region fallthrough
CT: control target
= control target key end

     0   :  { %s9249_s0 = inlined_call_operand.vmem [shape: f32[2,32,128], index: 0, kind: input, shape index: {}]   ;;  %s9250_s1 = inlined_call_operand.vmem [shape: f32[2,32,128], index: 1, kind: input, shape index: {}]   ;;  %s9251_s2 = inlined_call_operand.vmem [shape: f32[2,32,32,8], index: 2, kind: input, shape index: {}]   ;;  %s9252_s3 = inlined_call_operand.vmem [shape: f32[2,32,32], index: 3, kind: input, shape index: {}]   ;;  %s9253_s4 = inlined_call_operand.vmem [shape: f32[8,128], index: 4, kind: input, shape index: {}]   ;;  %s9254_s5 = inlined_call_operand.vmem [shape: f32[8,128], index: 5, kind: input, shape index: {}]   ;;  %s9255_s6 = inlined_call_operand.hbm [shape: f32[2,32,32,128], index: 6, kind: output, shape index: {}]  }
   0x1   :  { %9410 = sst [smem:[#allocation140_spill]] %s9254_s5 }
   0x2   :  { %11 = vsyncpa [#allocation3], 0 }
   0x3   :  { %13 = vsyncpa [#allocation3 + $0x1], 0  ;;  %s6650_s21 = smov 0   ;;  %s6652_s22 = smov 0  }
   0x4   :  { %s6654_s23 = smov 0   ;;  %s6656_s24 = smov 0  }
   0x5   :  { %s6658_s25 = smov 0   ;;  %s6660_s26 = smov 0  }
   0x6   :  { %s6662_s27 = smov 0   ;;  %s6664_s28 = smov 0  }
   0x7 LB: > { %s5288_s29 = sadd.s32 4294967295, %s6607_s28   ;;  %s5289_s30 = sadd.s32 4294967294, %s6607_s28   ;;  %s6607_s28 = sphi %s6664_s28, %s19_s28   ;;  %s6603_s27 = sphi %s6662_s27, %s9871_s27   ;;  %s6599_s26 = sphi %s6660_s26, %s9870_s26   ;;  %s6595_s25 = sphi %s6658_s25, %s9869_s25   ;;  %s6591_s24 = sphi %s6656_s24, %s9868_s24   ;;  %s6587_s23 = sphi %s6654_s23, %s9867_s23   ;;  %s6583_s22 = sphi %s6652_s22, %s9866_s22   ;;  %s6579_s21 = sphi %s6650_s21, %s9865_s21  }
   0x8   : > { %s34_s7 = sadd.s32 1, %s6599_s26  ;;  %s38_s8 = sadd.s32 1, %s6603_s27 }
   0x9   : > { %p36_p0 = scmp.ge.s32.totalorder %s34_s7, 4  ;;  %p217_p1 = scmp.ne.s32.totalorder %s6587_s23, %s6583_s22 }
   0xa   : > { %p218_p2 = scmp.eq.s32.totalorder %s5288_s29, 7  ;;  %p223_p5 = scmp.ne.s32.totalorder %s6583_s22, %s6579_s21 }
   0xb   : > { %s9873_s7 = smov (%p36_p0, %s34_s7), 0  ;;  %s9875_s8 = smov (!%p36_p0, %s38_s8), %s6603_s27 }
   0xc   : > { %9411 = sst [smem:[#allocation5_spill]] %s9873_s7  ;;  %s201_s9 = ssub.s32 %s6599_s26, %s9873_s7 }
   0xd   : > { %p6701_p3 = por %p218_p2, %p217_p1  ;;  %p40_p4 = scmp.ge.s32.totalorder %s9875_s8, 2 }
   0xe   : > { %p224_p6 = scmp.eq.s32.totalorder %s5289_s30, 7  ;;  %p5292_p7 = scmp.ge.s32.totalorder %s6607_s28, 1 }
   0xf   : > { %s9877_s8 = smov (%p40_p4, %s9875_s8), 0  ;;  %p305_p9 = scmp.lt.s32.totalorder %s6607_s28, 9 }
  0x10   : > { %9413 = sst [smem:[#allocation6_spill]] %s9877_s8  ;;  %p6710_p8 = por %p224_p6, %p223_p5 }
  0x11   : > { %s200_s12 = ssub.s32 %s6603_s27, %s9877_s8  ;;  %s207_s13 = sadd.s32 1, %s6587_s23 }
  0x12   : > { %s202_s14 = sor.u32 %s201_s9, %s200_s12  ;;  %p306_p10 = pnand %p5292_p7, %p305_p9 }
  0x13   : > { %p205_p11 = scmp.eq.s32.totalorder %s202_s14, 0 }
  0x14   : > { %309 = sbr.rel (%p306_p10) target bundleno = 1060 (0x424), region = 44 }
  0x15   : > { %s6719_s15 = scalar_select %p205_p11, %s6587_s23, %s207_s13  }
  0x19   : > { %s9256_s16 = sand.u32 1, %s6583_s22   ;;  %s9415_s5 = sld [smem:[#allocation140_spill]]  ;;  %vm454_vm0 = vcmask 64512  }
  0x1a   : > { %p372_p12 = scmp.lt.s32.totalorder %s6595_s25, 1  ;;  %s6728_s19 = sshll.u32 %s9256_s16, 8 }
  0x1b   : > { %s6733_s20 = sshll.u32 %s6591_s24, 3  ;;  %p374_p4 = scmp.lt.s32.totalorder %s6591_s24, 3 }
  0x1c   : > { %p394_p13 = scmp.lt.s32.totalorder %s6733_s20, 31  ;;  %s5305_s7 = sadd.s32 4294967265, %s6733_s20 }
  0x1d   : > { %s6741_s29 = scalar_select %p372_p12, %s6595_s25, 1 }
  0x1e   : > { %s395_s30 = scalar_select %p394_p13, %s6733_s20, 31 }
  0x1f   : > { %v453_v0 = vld [vmem:[%s9415_s5] sm:$0xff]  ;;  %s5441_s9 = sshll.u32 %s6741_s29, 5  ;;  %s5300_s12 = sshll.u32 %s6741_s29, 7 }
  0x20   : > { %v6730_v1 = vand.u32 4294901760, %v453_v0  ;;  %s388_s17 = scalar_lea.vmem %s9250_s1, %s5441_s9  ;;  %s5299_s18 = sshll.u32 %s395_s30, 2 }
  0x21   : > { %s401_s16 = sadd.s32 %s5300_s12, %s5299_s18  ;;  %v6756_v5 = vld [vmem:[%s388_s17] sm:$0xff]  ;;  %v6758_v6 = vld [vmem:[%s388_s17 + $0x8] sm:$0xff]  ;;  %v6760_v7 = vld [vmem:[%s388_s17 + $0x10] sm:$0xff]  ;;  %s2489_s5 = sadd.s32 7, %s6733_s20 }
  0x22   : > { %5839 = vmatprep.subr.mxu0 %v6730_v1  ;;  %v6738_v2 = vsub.f32 %v453_v0, %v6730_v1  ;;  %9416 = vst [vmem:[#allocation7_spill] sm:$0xff] %v6756_v5  ;;  %9417 = vst [vmem:[#allocation8_spill] sm:$0xff] %v6758_v6  ;;  %s5301_s8 = sshll.u32 %s401_s16, 3  ;;  %v6763_v8 = vld [vmem:[%s388_s17 + $0x18] sm:$0xff]  ;;  %p6771_p0 = scmp.le.s32.totalorder %s2489_s5, 4294967293 }
  0x23   : > { %5840 = vmatpush3.msra.mxu0 %v6730_v1  ;;  %9418 = vst [vmem:[#allocation9_spill] sm:$0xff] %v6760_v7  ;;  %9419 = vst [vmem:[#allocation10_spill] sm:$0xff] %v6763_v8  ;;  %s6769_s30 = scalar_lea.vmem %s9251_s2, %s5301_s8  ;;  %p6776_p1 = scmp.ge.s32.totalorder %s5305_s7, 3 }
  0x24   : > { %v6746_v3 = vand.u32 4294901760, %v6738_v2  ;;  %5939 = vmatprep.subr.mxu0 %v6738_v2  ;;  %v421_v10 = vld [vmem:[%s6769_s30] sm:$0xff]  ;;  %v422_v11 = vld [vmem:[%s6769_s30 + $0x8] sm:$0xff]  ;;  %v423_v12 = vld [vmem:[%s6769_s30 + $0x10] sm:$0xff]  ;;  %s375_s5 = scalar_select %p374_p4, %s6591_s24, 3 }
  0x25   : > { %v456_v13 = vsel %vm454_vm0, %v421_v10, 0  ;;  %v459_v14 = vsel %vm454_vm0, %v422_v11, 0  ;;  %v462_v15 = vsel %vm454_vm0, %v423_v12, 0  ;;  %v424_v16 = vld [vmem:[%s6769_s30 + $0x18] sm:$0xff]  ;;  %v425_v17 = vld [vmem:[%s6769_s30 + $0x20] sm:$0xff]  ;;  %v426_v18 = vld [vmem:[%s6769_s30 + $0x28] sm:$0xff]  ;;  %p2495_p2 = por %p6776_p1, %p6771_p0 }
  0x26   : > { %v971_v4 = vsub.f32 %v6738_v2, %v6746_v3  ;;  %v6788_v19 = vand.u32 4294901760, %v456_v13  ;;  %v6794_v20 = vand.u32 4294901760, %v459_v14  ;;  %v6796_v21 = vand.u32 4294901760, %v462_v15  ;;  %v427_v23 = vld [vmem:[%s6769_s30 + $0x30] sm:$0xff]  ;;  %v428_v24 = vld [vmem:[%s6769_s30 + $0x38] sm:$0xff]  ;;  %v429_v53 = vld [vmem:[%s6769_s30 + $0x40] sm:$0xff] }
  0x27   : > { %v465_v22 = vsel %vm454_vm0, %v424_v16, 0  ;;  %v468_v26 = vsel %vm454_vm0, %v425_v17, 0  ;;  %v471_v27 = vsel %vm454_vm0, %v426_v18, 0  ;;  %v474_v28 = vsel %vm454_vm0, %v427_v23, 0  ;;  %v430_v54 = vld [vmem:[%s6769_s30 + $0x48] sm:$0xff]  ;;  %v431_v55 = vld [vmem:[%s6769_s30 + $0x50] sm:$0xff] }
  0x28   : > { %v972_v9 = vand.u32 4294901760, %v971_v4  ;;  %v6802_v25 = vand.u32 4294901760, %v465_v22  ;;  %v6808_v29 = vsub.f32 %v456_v13, %v6788_v19  ;;  %5891 = vmatprep.mubr.f32.mxu1 %v6788_v19  ;;  %v6812_v30 = vsub.f32 %v459_v14, %v6794_v20  ;;  %v432_v63 = vld [vmem:[%s6769_s30 + $0x58] sm:$0xff]  ;;  %v433_v0 = vld [vmem:[%s6769_s30 + $0x60] sm:$0xff]  ;;  %v434_v16 = vld [vmem:[%s6769_s30 + $0x68] sm:$0xff]  ;;  %s5294_s7 = sshll.u32 %s6741_s29, 2 }
  0x29   : > { %v6815_v31 = vsub.f32 %v462_v15, %v6796_v21  ;;  %v6817_v32 = vand.u32 4294901760, %v468_v26  ;;  %v6823_v34 = vand.u32 4294901760, %v471_v27  ;;  %v6825_v35 = vand.u32 4294901760, %v474_v28  ;;  %v435_v17 = vld [vmem:[%s6769_s30 + $0x70] sm:$0xff]  ;;  %s377_s8 = sadd.s32 %s5294_s7, %s375_s5 }
  0x2a   : > { %5889 = vmatprep.subr.mxu1 %v972_v9  ;;  %v6821_v33 = vsub.f32 %v465_v22, %v6802_v25  ;;  %v477_v36 = vsel %vm454_vm0, %v428_v24, 0  ;;  %v9273_v37 = vand.u32 4294901760, %v6808_v29  ;;  %v9272_v38 = vand.u32 4294901760, %v6812_v30  ;;  %s5295_s14 = sshll.u32 %s377_s8, 3  ;;  %s7716_s8 = scalar_lea.vmem [#allocation2], %s6728_s19 }
  0x2b   : > { %5890 = vmatpush3.msra.mxu1 %v972_v9  ;;  %v9271_v39 = vand.u32 4294901760, %v6815_v31  ;;  %v6834_v40 = vsub.f32 %v468_v26, %v6817_v32  ;;  %v6838_v42 = vsub.f32 %v471_v27, %v6823_v34  ;;  %v6841_v43 = vsub.f32 %v474_v28, %v6825_v35  ;;  %s416_s13 = scalar_lea.vmem %s9252_s3, %s5295_s14 }
  0x2c   : > { %5989 = vmatprep.subr.mxu1 %v6730_v1  ;;  %5892 = vmatmul.mubr.f32.vlgmr.msra.gmra.mxu1 %v6794_v20  ;;  %v9267_v41 = vand.u32 4294901760, %v6821_v33  ;;  %v6843_v44 = vand.u32 4294901760, %v477_v36  ;;  %v620_v45 = vsub.f32 %v6808_v29, %v9273_v37  ;;  %v630_v46 = vsub.f32 %v6812_v30, %v9272_v38  ;;  %v444_v38 = vld [vmem:[%s6769_s30 + $0xb8] sm:$0xff] }
  0x2d   : > { %5990 = vmatpush3.msra.mxu1 %v6730_v1  ;;  %5894 = vmatprep.mubr.f32.mxu1 %v6796_v21  ;;  %v640_v47 = vsub.f32 %v6815_v31, %v9271_v39  ;;  %v9266_v48 = vand.u32 4294901760, %v6834_v40  ;;  %v9265_v50 = vand.u32 4294901760, %v6838_v42  ;;  %v9264_v51 = vand.u32 4294901760, %v6841_v43 }
  0x2e   : > { %6089 = vmatprep.subr.mxu1 %v6730_v1  ;;  %v650_v49 = vsub.f32 %v6821_v33, %v9267_v41  ;;  %v6863_v52 = vsub.f32 %v477_v36, %v6843_v44  ;;  %v621_v56 = vand.u32 4294901760, %v620_v45  ;;  %v631_v57 = vand.u32 4294901760, %v630_v46  ;;  %v436_v36 = vld [vmem:[%s6769_s30 + $0x78] sm:$0xff] }
  0x2f   : > { %v641_v58 = vand.u32 4294901760, %v640_v47  ;;  %v660_v59 = vsub.f32 %v6834_v40, %v9266_v48  ;;  %v670_v60 = vsub.f32 %v6838_v42, %v9265_v50  ;;  %v680_v61 = vsub.f32 %v6841_v43, %v9264_v51  ;;  %v443_v48 = vld [vmem:[%s6769_s30 + $0xb0] sm:$0xff] }
  0x30   : > { %5895 = vmatmul.mubr.f32.gmra.mxu1 %v6802_v25  ;;  %v9262_v62 = vand.u32 4294901760, %v6863_v52  ;;  %5841 = vmatprep.mubr.f32.mxu0 %v621_v56  ;;  %v651_v4 = vand.u32 4294901760, %v650_v49  ;;  %v480_v9 = vsel %vm454_vm0, %v429_v53, 0  ;;  %v483_v10 = vsel %vm454_vm0, %v430_v54, 0 }
  0x31   : > { %5897 = vmatprep.mubr.f32.mxu1 %v6817_v32  ;;  %v486_v11 = vsel %vm454_vm0, %v431_v55, 0  ;;  %5842 = vmatmul.mubr.f32.vlgmr.msra.gmra.mxu0 %v631_v57  ;;  %v661_v12 = vand.u32 4294901760, %v660_v59  ;;  %v671_v13 = vand.u32 4294901760, %v670_v60  ;;  %v681_v14 = vand.u32 4294901760, %v680_v61 }
  0x32   : > { %v6885_v15 = vand.u32 4294901760, %v480_v9  ;;  %5940 = vmatpush3.msra.mxu0 %v6738_v2  ;;  %5844 = vmatprep.mubr.f32.mxu0 %v641_v58  ;;  %v6890_v18 = vand.u32 4294901760, %v483_v10  ;;  %v6892_v22 = vand.u32 4294901760, %v486_v11  ;;  %v489_v23 = vsel %vm454_vm0, %v432_v63, 0 }
  0x33   : > { %v492_v24 = vsel %vm454_vm0, %v433_v0, 0  ;;  %v690_v26 = vsub.f32 %v6863_v52, %v9262_v62  ;;  %v6903_v28 = vand.u32 4294901760, %v489_v23  ;;  %6039 = vmatprep.subr.mxu0 %v6746_v3  ;;  %v495_v47 = vsel %vm454_vm0, %v434_v16, 0 }
  0x34   : > { %5898 = vmatmul.mubr.f32.gmra.mxu1 %v6823_v34  ;;  %9422 = vst [vmem:[#allocation11_spill] sm:$0xff] %v6892_v22  ;;  %v6901_v27 = vsub.f32 %v480_v9, %v6885_v15  ;;  %v6905_v2 = vand.u32 4294901760, %v492_v24  ;;  %v6910_v45 = vsub.f32 %v483_v10, %v6890_v18  ;;  %v6913_v46 = vsub.f32 %v486_v11, %v6892_v22  ;;  %v437_v10 = vld [vmem:[%s6769_s30 + $0x80] sm:$0xff] }
  0x35   : > { %5900 = vmatprep.mubr.f32.mxu1 %v6825_v35  ;;  %9423 = vst [vmem:[#allocation12_spill] sm:$0xff] %v6903_v28  ;;  %v498_v49 = vsel %vm454_vm0, %v435_v17, 0  ;;  %5845 = vmatmul.mubr.f32.gmra.mxu0 %v651_v4  ;;  %v6920_v54 = vsub.f32 %v489_v23, %v6903_v28  ;;  %v6925_v56 = vand.u32 4294901760, %v495_v47  ;;  %v501_v60 = vsel %vm454_vm0, %v436_v36, 0  ;;  %v438_v17 = vld [vmem:[%s6769_s30 + $0x88] sm:$0xff] }
  0x36   : > { %9424 = vst [vmem:[#allocation13_spill] sm:$0xff] %v6905_v2  ;;  %v9261_v53 = vand.u32 4294901760, %v6901_v27  ;;  %v6923_v55 = vsub.f32 %v492_v24, %v6905_v2  ;;  %5847 = vmatprep.mubr.f32.mxu0 %v661_v12  ;;  %v9259_v57 = vand.u32 4294901760, %v6910_v45  ;;  %v9260_v58 = vand.u32 4294901760, %v6913_v46 }
  0x37   : > { %9425 = vst [vmem:[#allocation14_spill] sm:$0xff] %v6925_v56  ;;  %v6930_v59 = vand.u32 4294901760, %v498_v49  ;;  %v9263_v63 = vand.u32 4294901760, %v6920_v54  ;;  %v6938_v0 = vsub.f32 %v495_v47, %v6925_v56  ;;  %v6943_v9 = vand.u32 4294901760, %v501_v60 }
  0x38   : > { %5901 = vmatmul.mubr.f32.gmra.mxu1 %v6843_v44  ;;  %v700_v61 = vsub.f32 %v6901_v27, %v9261_v53  ;;  %v691_v11 = vand.u32 4294901760, %v690_v26  ;;  %v710_v12 = vsub.f32 %v6910_v45, %v9259_v57  ;;  %v9268_v16 = vand.u32 4294901760, %v6923_v55  ;;  %v441_v53 = vld [vmem:[%s6769_s30 + $0xa0] sm:$0xff] }
  0x39   : > { %5903 = vmatprep.mubr.f32.mxu1 %v6885_v15  ;;  %9426 = vst [vmem:[#allocation15_spill] sm:$0xff] %v6930_v59  ;;  %v6941_v4 = vsub.f32 %v498_v49, %v6930_v59  ;;  %9427 = vst [vmem:[#allocation16_spill] sm:$0xff] %v6943_v9  ;;  %5848 = vmatmul.mubr.f32.gmra.mxu0 %v671_v13  ;;  %v720_v24 = vsub.f32 %v6913_v46, %v9260_v58  ;;  %v439_v13 = vld [vmem:[%s6769_s30 + $0x90] sm:$0xff]  ;;  %v9269_v36 = vand.u32 4294901760, %v6938_v0  ;;  %v440_v49 = vld [vmem:[%s6769_s30 + $0x98] sm:$0xff] }
  0x3a   : > { %5850 = vmatprep.mubr.f32.mxu0 %v681_v14  ;;  %v701_v23 = vand.u32 4294901760, %v700_v61  ;;  %v730_v26 = vsub.f32 %v6920_v54, %v9263_v63  ;;  %v504_v47 = vsel %vm454_vm0, %v437_v10, 0  ;;  %v6965_v14 = vsub.f32 %v501_v60, %v6943_v9 }
  0x3b   : > { %v9270_v57 = vand.u32 4294901760, %v6941_v4  ;;  %v6967_v61 = vand.u32 4294901760, %v504_v47  ;;  %v507_v58 = vsel %vm454_vm0, %v438_v17, 0  ;;  %v711_v62 = vand.u32 4294901760, %v710_v12  ;;  %v442_v12 = vld [vmem:[%s6769_s30 + $0xa8] sm:$0xff] }
  0x3c   : > { %5904 = vmatmul.mubr.f32.gmra.mxu1 %v6890_v18  ;;  %v740_v10 = vsub.f32 %v6923_v55, %v9268_v16  ;;  %v6975_v63 = vand.u32 4294901760, %v507_v58  ;;  %v510_v60 = vsel %vm454_vm0, %v439_v13, 0  ;;  %v721_v51 = vand.u32 4294901760, %v720_v24 }
  0x3d   : > { %5906 = vmatprep.mubr.f32.mxu1 %v6892_v22  ;;  %9428 = vst [vmem:[#allocation17_spill] sm:$0xff] %v6967_v61  ;;  %5851 = vmatmul.mubr.f32.gmra.mxu0 %v691_v11  ;;  %v6980_v50 = vsub.f32 %v504_v47, %v6967_v61  ;;  %v6982_v17 = vand.u32 4294901760, %v510_v60  ;;  %v513_v11 = vsel %vm454_vm0, %v440_v49, 0  ;;  %v516_v41 = vsel %vm454_vm0, %v441_v53, 0 }
  0x3e   : > { %9429 = vst [vmem:[#allocation18_spill] sm:$0xff] %v6975_v63  ;;  %5853 = vmatprep.mubr.f32.mxu0 %v701_v23  ;;  %v731_v16 = vand.u32 4294901760, %v730_v26  ;;  %v750_v23 = vsub.f32 %v6938_v0, %v9269_v36  ;;  %v760_v24 = vsub.f32 %v6941_v4, %v9270_v57  ;;  %v6997_v47 = vsub.f32 %v507_v58, %v6975_v63  ;;  %v445_v58 = vld [vmem:[%s6769_s30 + $0xc0] sm:$0xff] }
  0x3f   : > { %9430 = vst [vmem:[#allocation19_spill] sm:$0xff] %v6982_v17  ;;  %v6999_v53 = vand.u32 4294901760, %v513_v11  ;;  %v519_v26 = vsel %vm454_vm0, %v442_v12, 0  ;;  %v522_v49 = vsel %vm454_vm0, %v443_v48, 0  ;;  %v741_v36 = vand.u32 4294901760, %v740_v10  ;;  %v446_v10 = vld [vmem:[%s6769_s30 + $0xc8] sm:$0xff] }
  0x40   : > { %5907 = vmatmul.mubr.f32.gmra.mxu1 %v6903_v28  ;;  %v9278_v57 = vand.u32 4294901760, %v6980_v50  ;;  %v7006_v39 = vsub.f32 %v510_v60, %v6982_v17  ;;  %v751_v37 = vand.u32 4294901760, %v750_v23  ;;  %v761_v13 = vand.u32 4294901760, %v760_v24 }
  0x41   : > { %5909 = vmatprep.mubr.f32.mxu1 %v6905_v2  ;;  %5854 = vmatmul.mubr.f32.gmra.mxu0 %v711_v62  ;;  %9431 = vst [vmem:[#allocation20_spill] sm:$0xff] %v6999_v53  ;;  %v7008_v62 = vand.u32 4294901760, %v516_v41  ;;  %v7012_v8 = vand.u32 4294901760, %v519_v26  ;;  %v7014_v12 = vand.u32 4294901760, %v522_v49  ;;  %v9434_v48 = vand.u32 4294901760, %v6965_v14 }
  0x42   : > { %5856 = vmatprep.mubr.f32.mxu0 %v721_v51  ;;  %v7022_v60 = vsub.f32 %v513_v11, %v6999_v53  ;;  %v525_v23 = vsel %vm454_vm0, %v444_v38, 0  ;;  %v780_v24 = vsub.f32 %v6980_v50, %v9278_v57  ;;  %v528_v7 = vsel %vm454_vm0, %v445_v58, 0  ;;  %v447_v57 = vld [vmem:[%s6769_s30 + $0xd0] sm:$0xff] }
  0x43   : > { %9432 = vst [vmem:[#allocation21_spill] sm:$0xff] %v7008_v62  ;;  %9433 = vst [vmem:[#allocation22_spill] sm:$0xff] %v7012_v8  ;;  %v770_v51 = vsub.f32 %v6965_v14, %v9434_v48  ;;  %v7031_v48 = vsub.f32 %v516_v41, %v7008_v62  ;;  %v7036_v11 = vsub.f32 %v519_v26, %v7012_v8  ;;  %v7049_v26 = vand.u32 4294901760, %v528_v7 }
  0x44   : > { %5910 = vmatmul.mubr.f32.gmra.mxu1 %v6925_v56  ;;  %v7039_v38 = vsub.f32 %v522_v49, %v7014_v12  ;;  %v781_v49 = vand.u32 4294901760, %v780_v24  ;;  %v9438_v5 = vand.u32 4294901760, %v7006_v39  ;;  %v449_v24 = vld [vmem:[%s6769_s30 + $0xe0] sm:$0xff]  ;;  %v451_v56 = vld [vmem:[%s6769_s30 + $0xf0] sm:$0xff] }
  0x45   : > { %5912 = vmatprep.mubr.f32.mxu1 %v6930_v59  ;;  %5857 = vmatmul.mubr.f32.gmra.mxu0 %v731_v16  ;;  %v771_v6 = vand.u32 4294901760, %v770_v51  ;;  %v9436_v16 = vand.u32 4294901760, %v6997_v47  ;;  %9437 = vst [vmem:[#allocation24_spill] sm:$0xff] %v7049_v26  ;;  %v531_v51 = vsel %vm454_vm0, %v446_v10, 0 }
  0x46   : > { %5859 = vmatprep.mubr.f32.mxu0 %v741_v36  ;;  %v7041_v36 = vand.u32 4294901760, %v525_v23  ;;  %v7072_v10 = vand.u32 4294901760, %v531_v51 }
  0x47   : > { %v790_v41 = vsub.f32 %v6997_v47, %v9436_v16  ;;  %v534_v16 = vsel %vm454_vm0, %v447_v57, 0  ;;  %v7070_v57 = vsub.f32 %v528_v7, %v7049_v26  ;;  %v9441_v7 = vand.u32 4294901760, %v7036_v11 }
  0x48   : > { %5913 = vmatmul.mubr.f32.gmra.mxu1 %v6943_v9  ;;  %9435 = vst [vmem:[#allocation23_spill] sm:$0xff] %v7041_v36  ;;  %v448_v9 = vld [vmem:[%s6769_s30 + $0xd8] sm:$0xff] }
  0x49   : > { %5915 = vmatprep.mubr.f32.mxu1 %v6967_v61  ;;  %5860 = vmatmul.mubr.f32.gmra.mxu0 %v751_v37  ;;  %v800_v61 = vsub.f32 %v7006_v39, %v9438_v5  ;;  %v791_v5 = vand.u32 4294901760, %v790_v41  ;;  %v537_v41 = vsel %vm454_vm0, %v448_v9, 0  ;;  %v830_v59 = vsub.f32 %v7036_v11, %v9441_v7 }
  0x4a   : > { %5862 = vmatprep.mubr.f32.mxu0 %v761_v13  ;;  %v7062_v13 = vsub.f32 %v525_v23, %v7041_v36  ;;  %v9440_v23 = vand.u32 4294901760, %v7031_v48  ;;  %v7096_v2 = vand.u32 4294901760, %v537_v41 }
  0x4b   : > { %v801_v58 = vand.u32 4294901760, %v800_v61  ;;  %v831_v9 = vand.u32 4294901760, %v830_v59 }
  0x4c   : > { %5916 = vmatmul.mubr.f32.gmra.mxu1 %v6975_v63  ;;  %v820_v63 = vsub.f32 %v7031_v48, %v9440_v23 }
  0x4d   : > { %5918 = vmatprep.mubr.f32.mxu1 %v6982_v17  ;;  %5863 = vmatmul.mubr.f32.gmra.mxu0 %v771_v6  ;;  %v9439_v17 = vand.u32 4294901760, %v7022_v60  ;;  %v7078_v6 = vand.u32 4294901760, %v534_v16 }
  0x4e   : > { %5865 = vmatprep.mubr.f32.mxu0 %v781_v49  ;;  %v9442_v49 = vand.u32 4294901760, %v7039_v38  ;;  %v821_v7 = vand.u32 4294901760, %v820_v63  ;;  %v9444_v63 = vand.u32 4294901760, %v7070_v57 }
  0x4f   : > { %v810_v37 = vsub.f32 %v7022_v60, %v9439_v17  ;;  %v540_v17 = vsel %vm454_vm0, %v449_v24, 0  ;;  %v7094_v24 = vsub.f32 %v531_v51, %v7072_v10  ;;  %v9443_v51 = vand.u32 4294901760, %v7062_v13 }
  0x50   : > { %5919 = vmatmul.mubr.f32.gmra.mxu1 %v6999_v53  ;;  %v450_v53 = vld [vmem:[%s6769_s30 + $0xe8] sm:$0xff]  ;;  %v840_v61 = vsub.f32 %v7039_v38, %v9442_v49  ;;  %v7100_v49 = vsub.f32 %v534_v16, %v7078_v6  ;;  %v7102_v23 = vand.u32 4294901760, %v540_v17 }
  0x51   : > { %5921 = vmatprep.mubr.f32.mxu1 %v7008_v62  ;;  %5866 = vmatmul.mubr.f32.gmra.mxu0 %v791_v5  ;;  %v811_v62 = vand.u32 4294901760, %v810_v37  ;;  %v543_v37 = vsel %vm454_vm0, %v450_v53, 0  ;;  %v546_v5 = vsel %vm454_vm0, %v451_v56, 0  ;;  %v850_v22 = vsub.f32 %v7062_v13, %v9443_v51 }
  0x52   : > { %5868 = vmatprep.mubr.f32.mxu0 %v801_v58  ;;  %v841_v28 = vand.u32 4294901760, %v840_v61  ;;  %v860_v58 = vsub.f32 %v7070_v57, %v9444_v63  ;;  %v9311_v16 = vand.u32 4294901760, %v7094_v24  ;;  %v7116_v53 = vsub.f32 %v537_v41, %v7096_v2 }
  0x53   : > { %v7118_v56 = vand.u32 4294901760, %v543_v37  ;;  %v7125_v61 = vand.u32 4294901760, %v546_v5  ;;  %v851_v63 = vand.u32 4294901760, %v850_v22 }
  0x54   : > { %5922 = vmatmul.mubr.f32.gmra.mxu1 %v7012_v8  ;;  %v452_v8 = vld [vmem:[%s6769_s30 + $0xf8] sm:$0xff]  ;;  %v870_v41 = vsub.f32 %v7094_v24, %v9311_v16  ;;  %s379_s30 = scalar_lea.vmem %s9249_s0, %s5295_s14 }
  0x55   : > { %5924 = vmatprep.mubr.f32.mxu1 %v7014_v12  ;;  %5869 = vmatmul.mubr.f32.gmra.mxu0 %v811_v62  ;;  %v7123_v62 = vsub.f32 %v540_v17, %v7102_v23  ;;  %v549_v51 = vsel %vm454_vm0, %v452_v8, 0  ;;  %v861_v17 = vand.u32 4294901760, %v860_v58 }
  0x56   : > { %5871 = vmatprep.mubr.f32.mxu0 %v821_v7  ;;  %v9312_v7 = vand.u32 4294901760, %v7116_v53  ;;  %v7136_v59 = vand.u32 4294901760, %v549_v51  ;;  %v871_v16 = vand.u32 4294901760, %v870_v41 }
  0x57   : > { %v9313_v22 = vand.u32 4294901760, %v7123_v62 }
  0x58   : > { %5925 = vmatmul.mubr.f32.gmra.mxu1 %v7041_v36  ;;  %v9445_v36 = vand.u32 4294901760, %v7100_v49  ;;  %v7152_v58 = vsub.f32 %v549_v51, %v7136_v59 }
  0x59   : > { %5927 = vmatprep.mubr.f32.mxu1 %v7049_v26  ;;  %5872 = vmatmul.mubr.f32.gmra.mxu0 %v831_v9  ;;  %v7134_v26 = vsub.f32 %v543_v37, %v7118_v56  ;;  %v7144_v9 = vsub.f32 %v546_v5, %v7125_v61  ;;  %v890_v37 = vsub.f32 %v7116_v53, %v9312_v7 }
  0x5a   : > { %5874 = vmatprep.mubr.f32.mxu0 %v841_v28  ;;  %v880_v8 = vsub.f32 %v7100_v49, %v9445_v36  ;;  %v900_v5 = vsub.f32 %v7123_v62, %v9313_v22  ;;  %v929_v51 = vand.u32 4294901760, %v7152_v58 }
  0x5b   : > { %v9314_v28 = vand.u32 4294901760, %v7134_v26  ;;  %v891_v41 = vand.u32 4294901760, %v890_v37 }
  0x5c   : > { %5928 = vmatmul.mubr.f32.gmra.mxu1 %v7072_v10  ;;  %v881_v36 = vand.u32 4294901760, %v880_v8 }
  0x5d   : > { %5930 = vmatprep.mubr.f32.mxu1 %v7078_v6  ;;  %5875 = vmatmul.mubr.f32.gmra.mxu0 %v851_v63  ;;  %v919_v63 = vand.u32 4294901760, %v7144_v9  ;;  %v910_v7 = vsub.f32 %v7134_v26, %v9314_v28  ;;  %v9446_v28 = vand.u32 4294901760, %v6808_v29 }
  0x5e   : > { %5877 = vmatprep.mubr.f32.mxu0 %v861_v17  ;;  %v901_v17 = vand.u32 4294901760, %v900_v5  ;;  %v9447_v5 = vand.u32 4294901760, %v6812_v30 }
  0x5f   : > { %v920_v8 = vsub.f32 %v7144_v9, %v919_v63  ;;  %v911_v22 = vand.u32 4294901760, %v910_v7  ;;  %v9448_v7 = vand.u32 4294901760, %v6815_v31 }
  0x60   : > { %5931 = vmatmul.mubr.f32.gmra.mxu1 %v7096_v2 }
  0x61   : > { %5933 = vmatprep.mubr.f32.mxu1 %v7102_v23  ;;  %5878 = vmatmul.mubr.f32.gmra.mxu0 %v871_v16  ;;  %v930_v16 = vsub.f32 %v7152_v58, %v929_v51  ;;  %v921_v37 = vand.u32 4294901760, %v920_v8  ;;  %v9462_v8 = vand.u32 4294901760, %v6941_v4 }
  0x62   : > { %5880 = vmatprep.mubr.f32.mxu0 %v881_v36 }
  0x63   : > { %v931_v36 = vand.u32 4294901760, %v930_v16 }
  0x64   : > { %5934 = vmatmul.mubr.f32.gmra.mxu1 %v7118_v56 }
  0x65   : > { %5936 = vmatprep.mubr.f32.mxu1 %v7125_v61  ;;  %5881 = vmatmul.mubr.f32.gmra.mxu0 %v891_v41  ;;  %v9449_v41 = vand.u32 4294901760, %v6821_v33 }
  0x66   : > { %5883 = vmatprep.mubr.f32.mxu0 %v901_v17  ;;  %v9461_v17 = vand.u32 4294901760, %v6938_v0 }
  0x68   : > { %5937 = vmatmul.mubr.f32.gmra.mxu1 %v7136_v59 }
  0x69   : > { %5991 = vmatprep.mubr.f32.mxu1 %v9446_v28  ;;  %5884 = vmatmul.mubr.f32.gmra.mxu0 %v911_v22  ;;  %v9450_v28 = vand.u32 4294901760, %v6834_v40  ;;  %v9451_v22 = vand.u32 4294901760, %v6838_v42 }
  0x6a   : > { %5886 = vmatprep.mubr.f32.mxu0 %v921_v37  ;;  %v7237_v37 = vld [vmem:[%s379_s30] sm:$0xff] }
  0x6b   : > { %9464 = vst [vmem:[#allocation27_spill] sm:$0xff] %v7237_v37 }
  0x6c   : > { %5992 = vmatmul.mubr.f32.vlgmr.msra.gmra.mxu1 %v9447_v5  ;;  %v9466_v5 = vand.u32 4294901760, %v6997_v47 }
  0x6d   : > { %6090 = vmatpush3.msra.mxu1 %v6730_v1  ;;  %5994 = vmatprep.mubr.f32.mxu1 %v9448_v7  ;;  %v9452_v1 = vand.u32 4294901760, %v6841_v43  ;;  %v9468_v7 = vand.u32 4294901760, %v7022_v60 }
  0x6e   : > { %5887 = vmatmul.mubr.f32.gmra.mxu0 %v931_v36 }
  0x6f   : > { %5941 = vmatprep.mubr.f32.mxu0 %v6808_v29  ;;  %v9453_v29 = vand.u32 4294901760, %v6863_v52 }
  0x70   : > { %5995 = vmatmul.mubr.f32.gmra.mxu1 %v9449_v41  ;;  %v9470_v41 = vand.u32 4294901760, %v7036_v11 }
  0x71   : > { %5997 = vmatprep.mubr.f32.mxu1 %v9450_v28  ;;  %v9472_v28 = vand.u32 4294901760, %v7062_v13 }
  0x72   : > { %5942 = vmatmul.mubr.f32.vlgmr.msra.gmra.mxu0 %v6812_v30  ;;  %v9454_v30 = vand.u32 4294901760, %v6901_v27 }
  0x73   : > { %6040 = vmatpush3.msra.mxu0 %v6746_v3  ;;  %5944 = vmatprep.mubr.f32.mxu0 %v6815_v31  ;;  %v9455_v3 = vand.u32 4294901760, %v6910_v45  ;;  %v9456_v31 = vand.u32 4294901760, %v6913_v46 }
  0x74   : > { %5998 = vmatmul.mubr.f32.gmra.mxu1 %v9451_v22  ;;  %v9474_v22 = vand.u32 4294901760, %v7094_v24 }
  0x75   : > { %6000 = vmatprep.mubr.f32.mxu1 %v9452_v1  ;;  %v9476_v1 = vand.u32 4294901760, %v7116_v53 }
  0x76   : > { %5945 = vmatmul.mubr.f32.gmra.mxu0 %v6821_v33  ;;  %v9321_v33 = vlaneseq }
  0x77   : > { %5947 = vmatprep.mubr.f32.mxu0 %v6834_v40  ;;  %v9457_v40 = vand.u32 4294901760, %v6920_v54 }
  0x78   : > { %6001 = vmatmul.mubr.f32.gmra.mxu1 %v9453_v29  ;;  %v9478_v29 = vand.u32 4294901760, %v7134_v26 }
  0x79   : > { %6003 = vmatprep.mubr.f32.mxu1 %v9454_v30 }
  0x7a   : > { %5948 = vmatmul.mubr.f32.gmra.mxu0 %v6838_v42  ;;  %v9458_v42 = vand.u32 4294901760, %v6923_v55 }
  0x7b   : > { %5950 = vmatprep.mubr.f32.mxu0 %v6841_v43  ;;  %v7213_v43 = vshrl.u32 %v9321_v33, 7 }
  0x7c   : > { %6004 = vmatmul.mubr.f32.gmra.mxu1 %v9455_v3 }
  0x7d   : > { %6006 = vmatprep.mubr.f32.mxu1 %v9456_v31  ;;  %9459 = vst [vmem:[#allocation25_spill] sm:$0xff] %v7213_v43  ;;  %v9320_v36 = vsub.s32 1, %v7213_v43 }
  0x7e   : > { %5951 = vmatmul.mubr.f32.gmra.mxu0 %v6863_v52  ;;  %v7219_v52 = vsub.s32 0, %v7213_v43 }
  0x7f   : > { %5953 = vmatprep.mubr.f32.mxu0 %v6901_v27  ;;  %v7224_v27 = vld [vmem:[%s416_s13] sm:$0xff] }
  0x80   : > { %6007 = vmatmul.mubr.f32.gmra.mxu1 %v9457_v40  ;;  %9460 = vst [vmem:[#allocation26_spill] sm:$0xff] %v7219_v52  ;;  %v2334_v16 = vrot.slane %v7224_v27, %v7219_v52 }
  0x81   : > { %6009 = vmatprep.mubr.f32.mxu1 %v9458_v42 }
  0x82   : > { %5954 = vmatmul.mubr.f32.gmra.mxu0 %v6910_v45  ;;  %2344 = vbcast.lane.b32.xlu1 %v2334_v16, 272  ;;  %v9463_v45 = vand.u32 4294901760, %v6965_v14 }
  0x83   : > { %5956 = vmatprep.mubr.f32.mxu0 %v6913_v46  ;;  %2336 = vbcast.lane.b32.xlu0 %v2334_v16, 256  ;;  %v9465_v46 = vand.u32 4294901760, %v6980_v50 }
  0x84   : > { %6010 = vmatmul.mubr.f32.gmra.mxu1 %v9461_v17 }
  0x85   : > { %6012 = vmatprep.mubr.f32.mxu1 %v9462_v8 }
  0x86   : > { %5957 = vmatmul.mubr.f32.gmra.mxu0 %v6920_v54  ;;  %2348 = vbcast.lane.b32.xlu1 %v2334_v16, 280  ;;  %v9467_v54 = vand.u32 4294901760, %v7006_v39 }
  0x87   : > { %5959 = vmatprep.mubr.f32.mxu0 %v6923_v55  ;;  %2340 = vbcast.lane.b32.xlu0 %v2334_v16, 264  ;;  %v2353_v55 = vrot.slane %v7224_v27, %v9320_v36 }
  0x88   : > { %6013 = vmatmul.mubr.f32.gmra.mxu1 %v9463_v45 }
  0x89   : > { %6015 = vmatprep.mubr.f32.mxu1 %v9465_v46 }
  0x8a   : > { %5960 = vmatmul.mubr.f32.gmra.mxu0 %v6938_v0  ;;  %2359 = vbcast.lane.b32.xlu1 %v2353_v55, 264  ;;  %v9469_v0 = vand.u32 4294901760, %v7031_v48 }
  0x8b   : > { %5962 = vmatprep.mubr.f32.mxu0 %v6941_v4  ;;  %2355 = vbcast.lane.b32.xlu0 %v2353_v55, 256  ;;  %v9319_v4 = vsub.s32 2, %v7213_v43 }
  0x8c   : > { %6016 = vmatmul.mubr.f32.gmra.mxu1 %v9466_v5 }
  0x8d   : > { %6018 = vmatprep.mubr.f32.mxu1 %v9467_v54 }
  0x8e   : > { %5963 = vmatmul.mubr.f32.gmra.mxu0 %v6965_v14  ;;  %2367 = vbcast.lane.b32.xlu1 %v2353_v55, 280  ;;  %v9471_v14 = vand.u32 4294901760, %v7039_v38 }
  0x8f   : > { %5965 = vmatprep.mubr.f32.mxu0 %v6980_v50  ;;  %2363 = vbcast.lane.b32.xlu0 %v2353_v55, 272  ;;  %v2372_v50 = vrot.slane %v7224_v27, %v9319_v4 }
  0x90   : > { %6019 = vmatmul.mubr.f32.gmra.mxu1 %v9468_v7 }
  0x91   : > { %6021 = vmatprep.mubr.f32.mxu1 %v9469_v0 }
  0x92   : > { %5966 = vmatmul.mubr.f32.gmra.mxu0 %v6997_v47  ;;  %2378 = vbcast.lane.b32.xlu1 %v2372_v50, 264  ;;  %v9473_v47 = vand.u32 4294901760, %v7070_v57 }
  0x93   : > { %5968 = vmatprep.mubr.f32.mxu0 %v7006_v39  ;;  %2374 = vbcast.lane.b32.xlu0 %v2372_v50, 256  ;;  %v9318_v39 = vsub.s32 3, %v7213_v43 }
  0x94   : > { %6022 = vmatmul.mubr.f32.gmra.mxu1 %v9470_v41 }
  0x95   : > { %6024 = vmatprep.mubr.f32.mxu1 %v9471_v14 }
  0x96   : > { %5969 = vmatmul.mubr.f32.gmra.mxu0 %v7022_v60  ;;  %2386 = vbcast.lane.b32.xlu1 %v2372_v50, 280  ;;  %v9475_v60 = vand.u32 4294901760, %v7100_v49 }
  0x97   : > { %5971 = vmatprep.mubr.f32.mxu0 %v7031_v48  ;;  %2382 = vbcast.lane.b32.xlu0 %v2372_v50, 272  ;;  %v2391_v48 = vrot.slane %v7224_v27, %v9318_v39 }
  0x98   : > { %6025 = vmatmul.mubr.f32.gmra.mxu1 %v9472_v28 }
  0x99   : > { %6027 = vmatprep.mubr.f32.mxu1 %v9473_v47 }
  0x9a   : > { %5972 = vmatmul.mubr.f32.gmra.mxu0 %v7036_v11  ;;  %2397 = vbcast.lane.b32.xlu1 %v2391_v48, 264  ;;  %v9477_v11 = vand.u32 4294901760, %v7123_v62 }
  0x9b   : > { %5974 = vmatprep.mubr.f32.mxu0 %v7039_v38  ;;  %2393 = vbcast.lane.b32.xlu0 %v2391_v48, 256  ;;  %v9317_v38 = vsub.s32 4, %v7213_v43 }
  0x9c   : > { %6028 = vmatmul.mubr.f32.gmra.mxu1 %v9474_v22 }
  0x9d   : > { %6030 = vmatprep.mubr.f32.mxu1 %v9475_v60 }
  0x9e   : > { %5975 = vmatmul.mubr.f32.gmra.mxu0 %v7062_v13  ;;  %2405 = vbcast.lane.b32.xlu1 %v2391_v48, 280  ;;  %v2410_v13 = vrot.slane %v7224_v27, %v9317_v38 }
  0x9f   : > { %5977 = vmatprep.mubr.f32.mxu0 %v7070_v57  ;;  %2401 = vbcast.lane.b32.xlu0 %v2391_v48, 272  ;;  %v9316_v57 = vsub.s32 5, %v7213_v43 }
  0xa0   : > { %6031 = vmatmul.mubr.f32.gmra.mxu1 %v9476_v1 }
  0xa1   : > { %6033 = vmatprep.mubr.f32.mxu1 %v9477_v11 }
  0xa2   : > { %5978 = vmatmul.mubr.f32.gmra.mxu0 %v7094_v24  ;;  %2416 = vbcast.lane.b32.xlu1 %v2410_v13, 264  ;;  %v2429_v24 = vrot.slane %v7224_v27, %v9316_v57 }
  0xa3   : > { %5980 = vmatprep.mubr.f32.mxu0 %v7100_v49  ;;  %2412 = vbcast.lane.b32.xlu0 %v2410_v13, 256 }
  0xa4   : > { %6034 = vmatmul.mubr.f32.gmra.mxu1 %v9478_v29 }
  0xa5   : > { %6036 = vmatprep.mubr.f32.mxu1 %v919_v63  ;;  %v9491_v63 = vld [vmem:[#allocation23_spill] sm:$0xff] }
  0xa6   : > { %5981 = vmatmul.mubr.f32.gmra.mxu0 %v7116_v53  ;;  %2424 = vbcast.lane.b32.xlu1 %v2410_v13, 280  ;;  %v9484_v53 = vld [vmem:[#allocation16_spill] sm:$0xff] }
  0xa7   : > { %5983 = vmatprep.mubr.f32.mxu0 %v7123_v62  ;;  %2420 = vbcast.lane.b32.xlu0 %v2410_v13, 272  ;;  %v9488_v62 = vld [vmem:[#allocation20_spill] sm:$0xff] }
  0xa8   : > { %6037 = vmatmul.mubr.f32.gmra.mxu1 %v929_v51  ;;  %v9492_v51 = vld [vmem:[#allocation24_spill] sm:$0xff] }
  0xa9   : > { %6091 = vmatprep.mubr.f32.mxu1 %v6788_v19 }
  0xaa   : > { %5984 = vmatmul.mubr.f32.gmra.mxu0 %v7134_v26  ;;  %2435 = vbcast.lane.b32.xlu1 %v2429_v24, 264  ;;  %v7318_v26 = vsub.s32 6, %v7213_v43 }
  0xab   : > { %5986 = vmatprep.mubr.f32.mxu0 %v7144_v9  ;;  %2431 = vbcast.lane.b32.xlu0 %v2429_v24, 256  ;;  %v9489_v9 = vld [vmem:[#allocation21_spill] sm:$0xff] }
  0xac   : > { %6092 = vmatmul.mubr.f32.vlgmr.msra.gmra.mxu1 %v6794_v20  ;;  %v2448_v49 = vrot.slane %v7224_v27, %v7318_v26 }
  0xad   : > { %6094 = vmatprep.mubr.f32.mxu1 %v6796_v21 }
  0xae   : > { %5987 = vmatmul.mubr.f32.gmra.mxu0 %v7152_v58  ;;  %2443 = vbcast.lane.b32.xlu1 %v2429_v24, 280  ;;  %v9490_v58 = vld [vmem:[#allocation22_spill] sm:$0xff] }
  0xaf   : > { %6041 = vmatprep.mubr.f32.mxu0 %v6788_v19  ;;  %2439 = vbcast.lane.b32.xlu0 %v2429_v24, 272  ;;  %v9315_v19 = vsub.s32 7, %v7213_v43 }
  0xb0   : > { %6095 = vmatmul.mubr.f32.gmra.mxu1 %v6802_v25 }
  0xb1   : > { %6097 = vmatprep.mubr.f32.mxu1 %v6817_v32 }
  0xb2   : > { %6042 = vmatmul.mubr.f32.vlgmr.msra.gmra.mxu0 %v6794_v20  ;;  %2454 = vbcast.lane.b32.xlu1 %v2448_v49, 264  ;;  %v9479_v20 = vld [vmem:[#allocation11_spill] sm:$0xff] }
  0xb3   : > { %6044 = vmatprep.mubr.f32.mxu0 %v6796_v21  ;;  %2450 = vbcast.lane.b32.xlu0 %v2448_v49, 256  ;;  %v2467_v21 = vrot.slane %v7224_v27, %v9315_v19 }
  0xb4   : > { %6098 = vmatmul.mubr.f32.gmra.mxu1 %v6823_v34 }
  0xb5   : > { %6100 = vmatprep.mubr.f32.mxu1 %v6825_v35 }
  0xb6   : > { %6045 = vmatmul.mubr.f32.gmra.mxu0 %v6802_v25  ;;  %2462 = vbcast.lane.b32.xlu1 %v2448_v49, 280  ;;  %v9480_v25 = vld [vmem:[#allocation12_spill] sm:$0xff] }
  0xb7   : > { %6047 = vmatprep.mubr.f32.mxu0 %v6817_v32  ;;  %2458 = vbcast.lane.b32.xlu0 %v2448_v49, 272  ;;  %v9481_v32 = vld [vmem:[#allocation13_spill] sm:$0xff] }
  0xb8   : > { %6101 = vmatmul.mubr.f32.gmra.mxu1 %v6843_v44 }
  0xb9   : > { %6103 = vmatprep.mubr.f32.mxu1 %v6885_v15 }
  0xba   : > { %6048 = vmatmul.mubr.f32.gmra.mxu0 %v6823_v34  ;;  %2473 = vbcast.lane.b32.xlu1 %v2467_v21, 264  ;;  %v9482_v34 = vld [vmem:[#allocation14_spill] sm:$0xff] }
  0xbb   : > { %6050 = vmatprep.mubr.f32.mxu0 %v6825_v35  ;;  %2469 = vbcast.lane.b32.xlu0 %v2467_v21, 256  ;;  %v9483_v35 = vld [vmem:[#allocation15_spill] sm:$0xff] }
  0xbc   : > { %6104 = vmatmul.mubr.f32.gmra.mxu1 %v6890_v18 }
  0xbd   : > { %6106 = vmatprep.mubr.f32.mxu1 %v9479_v20 }
  0xbe   : > { %6051 = vmatmul.mubr.f32.gmra.mxu0 %v6843_v44  ;;  %2481 = vbcast.lane.b32.xlu1 %v2467_v21, 280  ;;  %v9485_v44 = vld [vmem:[#allocation17_spill] sm:$0xff] }
  0xbf   : > { %6053 = vmatprep.mubr.f32.mxu0 %v6885_v15  ;;  %2477 = vbcast.lane.b32.xlu0 %v2467_v21, 272  ;;  %v9486_v15 = vld [vmem:[#allocation18_spill] sm:$0xff] }
  0xc0   : > { %6107 = vmatmul.mubr.f32.gmra.mxu1 %v9480_v25 }
  0xc1   : > { %6109 = vmatprep.mubr.f32.mxu1 %v9481_v32 }
  0xc2   : > { %6054 = vmatmul.mubr.f32.gmra.mxu0 %v6890_v18  ;;  %v9487_v18 = vld [vmem:[#allocation19_spill] sm:$0xff] }
  0xc3   : > { %6056 = vmatprep.mubr.f32.mxu0 %v9479_v20 }
  0xc4   : > { %6110 = vmatmul.mubr.f32.gmra.mxu1 %v9482_v34 }
  0xc5   : > { %6112 = vmatprep.mubr.f32.mxu1 %v9483_v35 }
  0xc6   : > { %6057 = vmatmul.mubr.f32.gmra.mxu0 %v9480_v25 }
  0xc7   : > { %6059 = vmatprep.mubr.f32.mxu0 %v9481_v32 }
  0xc8   : > { %6113 = vmatmul.mubr.f32.gmra.mxu1 %v9484_v53 }
  0xc9   : > { %6115 = vmatprep.mubr.f32.mxu1 %v9485_v44 }
  0xca   : > { %6060 = vmatmul.mubr.f32.gmra.mxu0 %v9482_v34 }
  0xcb   : > { %6062 = vmatprep.mubr.f32.mxu0 %v9483_v35 }
  0xcc   : > { %6116 = vmatmul.mubr.f32.gmra.mxu1 %v9486_v15 }
  0xcd   : > { %6118 = vmatprep.mubr.f32.mxu1 %v9487_v18 }
  0xce   : > { %6063 = vmatmul.mubr.f32.gmra.mxu0 %v9484_v53 }
  0xcf   : > { %6065 = vmatprep.mubr.f32.mxu0 %v9485_v44 }
  0xd0   : > { %6119 = vmatmul.mubr.f32.gmra.mxu1 %v9488_v62 }
  0xd1   : > { %6121 = vmatprep.mubr.f32.mxu1 %v9489_v9 }
  0xd2   : > { %6066 = vmatmul.mubr.f32.gmra.mxu0 %v9486_v15 }
  0xd3   : > { %6068 = vmatprep.mubr.f32.mxu0 %v9487_v18 }
  0xd4   : > { %6122 = vmatmul.mubr.f32.gmra.mxu1 %v9490_v58 }
  0xd5   : > { %6124 = vmatprep.mubr.f32.mxu1 %v7014_v12 }
  0xd6   : > { %6069 = vmatmul.mubr.f32.gmra.mxu0 %v9488_v62 }
  0xd7   : > { %6071 = vmatprep.mubr.f32.mxu0 %v9489_v9 }
  0xd8   : > { %6125 = vmatmul.mubr.f32.gmra.mxu1 %v9491_v63 }
  0xd9   : > { %6127 = vmatprep.mubr.f32.mxu1 %v9492_v51 }
  0xda   : > { %6072 = vmatmul.mubr.f32.gmra.mxu0 %v9490_v58 }
  0xdb   : > { %6074 = vmatprep.mubr.f32.mxu0 %v7014_v12 }
  0xdc   : > { %6128 = vmatmul.mubr.f32.gmra.mxu1 %v7072_v10 }
  0xdd   : > { %6130 = vmatprep.mubr.f32.mxu1 %v7078_v6 }
  0xde   : > { %6075 = vmatmul.mubr.f32.gmra.mxu0 %v9491_v63 }
  0xdf   : > { %6077 = vmatprep.mubr.f32.mxu0 %v9492_v51 }
  0xe0   : > { %6131 = vmatmul.mubr.f32.gmra.mxu1 %v7096_v2 }
  0xe1   : > { %6133 = vmatprep.mubr.f32.mxu1 %v7102_v23 }
  0xe2   : > { %6078 = vmatmul.mubr.f32.gmra.mxu0 %v7072_v10 }
  0xe3   : > { %6080 = vmatprep.mubr.f32.mxu0 %v7078_v6 }
  0xe4   : > { %6134 = vmatmul.mubr.f32.gmra.mxu1 %v7118_v56 }
  0xe5   : > { %6136 = vmatprep.mubr.f32.mxu1 %v7125_v61 }
  0xe6   : > { %6081 = vmatmul.mubr.f32.gmra.mxu0 %v7096_v2 }
  0xe7   : > { %6083 = vmatprep.mubr.f32.mxu0 %v7102_v23 }
  0xe8   : > { %6137 = vmatmul.mubr.f32.gmra.mxu1 %v7136_v59 }
  0xea   : > { %6084 = vmatmul.mubr.f32.gmra.mxu0 %v7118_v56 }
  0xeb   : > { %6086 = vmatprep.mubr.f32.mxu0 %v7125_v61 }
  0xec   : > { %v5893_v12 = vpop.f32.mrf.mxu1 }
  0xee   : > { %v1009_v30 = vpop.f32.mrf.mxu1  ;;  %6087 = vmatmul.mubr.f32.gmra.mxu0 %v7136_v59 }
  0xf0   : > { %v5896_v10 = vpop.f32.mrf.mxu1 }
  0xf1   : > { %v5843_v31 = vpop.f32.mrf.mxu0 }
  0xf2   : > { %v1021_v3 = vpop.f32.mrf.mxu1  ;;  %v7384_v40 = vadd.f32 %v5893_v12, %v5843_v31 }
  0xf3   : > { %v623_v42 = vpop.f32.mrf.mxu0 }
  0xf4   : > { %v5899_v6 = vpop.f32.mrf.mxu1  ;;  %v7386_v17 = vadd.f32 %v1009_v30, %v623_v42  ;;  %v7390_v56 = vpop.permute.xlu1 %2344 }
  0xf5   : > { %v5846_v27 = vpop.f32.mrf.mxu0  ;;  %9493 = vst [vmem:[#allocation11_spill] sm:$0xff] %v7390_v56  ;;  %v7392_v61 = vpop.permute.xlu0 %2336 }
  0xf6   : > { %v1033_v2 = vpop.f32.mrf.mxu1  ;;  %v7388_v8 = vadd.f32 %v5896_v10, %v5846_v27  ;;  %9494 = vst [vmem:[#allocation12_spill] sm:$0xff] %v7392_v61 }
  0xf7   : > { %v643_v16 = vpop.f32.mrf.mxu0 }
  0xf8   : > { %v5902_v23 = vpop.f32.mrf.mxu1  ;;  %v7394_v45 = vadd.f32 %v1021_v3, %v643_v16  ;;  %v7398_v55 = vpop.permute.xlu1 %2348 }
  0xf9   : > { %v5849_v46 = vpop.f32.mrf.mxu0  ;;  %9495 = vst [vmem:[#allocation13_spill] sm:$0xff] %v7398_v55  ;;  %v7400_v7 = vpop.permute.xlu0 %2340 }
  0xfa   : > { %v1045_v59 = vpop.f32.mrf.mxu1  ;;  %v7396_v54 = vadd.f32 %v5899_v6, %v5849_v46  ;;  %9496 = vst [vmem:[#allocation14_spill] sm:$0xff] %v7400_v7 }
  0xfb   : > { %v663_v0 = vpop.f32.mrf.mxu0 }
  0xfc   : > { %v5905_v5 = vpop.f32.mrf.mxu1  ;;  %v7402_v14 = vadd.f32 %v1033_v2, %v663_v0  ;;  %v7406_v22 = vpop.permute.xlu1 %2359 }
  0xfd   : > { %v5852_v50 = vpop.f32.mrf.mxu0  ;;  %9497 = vst [vmem:[#allocation15_spill] sm:$0xff] %v7406_v22  ;;  %v7408_v60 = vpop.permute.xlu0 %2355 }
  0xfe   : > { %v1057_v41 = vpop.f32.mrf.mxu1  ;;  %v7404_v47 = vadd.f32 %v5902_v23, %v5852_v50  ;;  %9498 = vst [vmem:[#allocation16_spill] sm:$0xff] %v7408_v60 }
  0xff   : > { %v683_v48 = vpop.f32.mrf.mxu0 }
 0x100   : > { %v5908_v28 = vpop.f32.mrf.mxu1  ;;  %v7410_v11 = vadd.f32 %v1045_v59, %v683_v48  ;;  %v7414_v49 = vpop.permute.xlu1 %2367 }
 0x101   : > { %v5855_v29 = vpop.f32.mrf.mxu0  ;;  %9499 = vst [vmem:[#allocation17_spill] sm:$0xff] %v7414_v49  ;;  %v7416_v20 = vpop.permute.xlu0 %2363 }
 0x102   : > { %v1069_v1 = vpop.f32.mrf.mxu1  ;;  %v7412_v24 = vadd.f32 %v5905_v5, %v5855_v29  ;;  %9500 = vst [vmem:[#allocation18_spill] sm:$0xff] %v7416_v20 }
 0x103   : > { %v703_v21 = vpop.f32.mrf.mxu0 }
 0x104   : > { %v5911_v13 = vpop.f32.mrf.mxu1  ;;  %v7418_v32 = vadd.f32 %v1057_v41, %v703_v21  ;;  %v7422_v44 = vpop.permute.xlu1 %2378 }
 0x105   : > { %v5858_v34 = vpop.f32.mrf.mxu0  ;;  %9501 = vst [vmem:[#allocation19_spill] sm:$0xff] %v7422_v44  ;;  %v7424_v15 = vpop.permute.xlu0 %2374 }
 0x106   : > { %v1081_v25 = vpop.f32.mrf.mxu1  ;;  %v7420_v53 = vadd.f32 %v5908_v28, %v5858_v34  ;;  %9502 = vst [vmem:[#allocation20_spill] sm:$0xff] %v7424_v15 }
 0x107   : > { %v723_v18 = vpop.f32.mrf.mxu0 }
 0x108   : > { %v5914_v35 = vpop.f32.mrf.mxu1  ;;  %v7426_v9 = vadd.f32 %v1069_v1, %v723_v18  ;;  %v7430_v12 = vpop.permute.xlu1 %2386 }
 0x109   : > { %v5861_v58 = vpop.f32.mrf.mxu0  ;;  %9503 = vst [vmem:[#allocation21_spill] sm:$0xff] %v7430_v12  ;;  %v7432_v30 = vpop.permute.xlu0 %2382 }
 0x10a   : > { %v1093_v62 = vpop.f32.mrf.mxu1  ;;  %v7428_v51 = vadd.f32 %v5911_v13, %v5861_v58  ;;  %9504 = vst [vmem:[#allocation22_spill] sm:$0xff] %v7432_v30 }
 0x10b   : > { %v743_v10 = vpop.f32.mrf.mxu0 }
 0x10c   : > { %v5917_v63 = vpop.f32.mrf.mxu1  ;;  %v7434_v31 = vadd.f32 %v1081_v25, %v743_v10  ;;  %v7438_v27 = vpop.permute.xlu1 %2397 }
 0x10d   : > { %v5864_v6 = vpop.f32.mrf.mxu0  ;;  %9505 = vst [vmem:[#allocation23_spill] sm:$0xff] %v7438_v27  ;;  %v7440_v23 = vpop.permute.xlu0 %2393 }
 0x10e   : > { %v1105_v3 = vpop.f32.mrf.mxu1  ;;  %v7436_v2 = vadd.f32 %v5914_v35, %v5864_v6  ;;  %9506 = vst [vmem:[#allocation24_spill] sm:$0xff] %v7440_v23 }
 0x10f   : > { %v763_v16 = vpop.f32.mrf.mxu0 }
 0x110   : > { %v5920_v42 = vpop.f32.mrf.mxu1  ;;  %v7442_v46 = vadd.f32 %v1093_v62, %v763_v16  ;;  %v7446_v50 = vpop.permute.xlu1 %2405 }
 0x111   : > { %v5867_v5 = vpop.f32.mrf.mxu0  ;;  %9507 = vst [vmem:[#allocation28_spill] sm:$0xff] %v7446_v50  ;;  %v7448_v28 = vpop.permute.xlu0 %2401 }
 0x112   : > { %v1117_v59 = vpop.f32.mrf.mxu1  ;;  %v7444_v41 = vadd.f32 %v5917_v63, %v5867_v5  ;;  %9508 = vst [vmem:[#allocation29_spill] sm:$0xff] %v7448_v28 }
 0x113   : > { %v783_v48 = vpop.f32.mrf.mxu0 }
 0x114   : > { %v5923_v0 = vpop.f32.mrf.mxu1  ;;  %v7450_v29 = vadd.f32 %v1105_v3, %v783_v48  ;;  %v7454_v34 = vpop.permute.xlu1 %2416 }
 0x115   : > { %v5870_v13 = vpop.f32.mrf.mxu0  ;;  %9509 = vst [vmem:[#allocation30_spill] sm:$0xff] %v7454_v34  ;;  %v7456_v35 = vpop.permute.xlu0 %2412 }
 0x116   : > { %v1129_v1 = vpop.f32.mrf.mxu1  ;;  %v7452_v25 = vadd.f32 %v5920_v42, %v5870_v13  ;;  %9510 = vst [vmem:[#allocation31_spill] sm:$0xff] %v7456_v35 }
 0x117   : > { %v803_v18 = vpop.f32.mrf.mxu0 }
 0x118   : > { %v5926_v21 = vpop.f32.mrf.mxu1  ;;  %v7458_v58 = vadd.f32 %v1117_v59, %v803_v18  ;;  %v7462_v16 = vpop.permute.xlu1 %2424 }
 0x119   : > { %v5873_v63 = vpop.f32.mrf.mxu0  ;;  %9511 = vst [vmem:[#allocation32_spill] sm:$0xff] %v7462_v16  ;;  %v7464_v3 = vpop.permute.xlu0 %2420 }
 0x11a   : > { %v1141_v62 = vpop.f32.mrf.mxu1  ;;  %v7460_v6 = vadd.f32 %v5923_v0, %v5873_v63  ;;  %9512 = vst [vmem:[#allocation33_spill] sm:$0xff] %v7464_v3 }
 0x11b   : > { %v823_v5 = vpop.f32.mrf.mxu0 }
 0x11c   : > { %v5929_v10 = vpop.f32.mrf.mxu1  ;;  %v7466_v42 = vadd.f32 %v1129_v1, %v823_v5  ;;  %v7470_v38 = vpop.permute.xlu1 %2435 }
 0x11d   : > { %v5876_v13 = vpop.f32.mrf.mxu0  ;;  %9513 = vst [vmem:[#allocation34_spill] sm:$0xff] %v7470_v38  ;;  %v7472_v59 = vpop.permute.xlu0 %2431 }
 0x11e   : > { %v1153_v48 = vpop.f32.mrf.mxu1  ;;  %v7468_v57 = vadd.f32 %v5926_v21, %v5876_v13  ;;  %9514 = vst [vmem:[#allocation35_spill] sm:$0xff] %v7472_v59 }
 0x11f   : > { %v843_v18 = vpop.f32.mrf.mxu0 }
 0x120   : > { %v5932_v19 = vpop.f32.mrf.mxu1  ;;  %v7474_v0 = vadd.f32 %v1141_v62, %v843_v18  ;;  %v7478_v33 = vpop.permute.xlu1 %2443 }
 0x121   : > { %v5879_v63 = vpop.f32.mrf.mxu0  ;;  %9515 = vst [vmem:[#allocation36_spill] sm:$0xff] %v7478_v33  ;;  %v7480_v1 = vpop.permute.xlu0 %2439 }
 0x122   : > { %v1165_v39 = vpop.f32.mrf.mxu1  ;;  %v7476_v36 = vadd.f32 %v5929_v10, %v5879_v63  ;;  %9516 = vst [vmem:[#allocation37_spill] sm:$0xff] %v7480_v1 }
 0x123   : > { %v863_v5 = vpop.f32.mrf.mxu0 }
 0x124   : > { %v5935_v4 = vpop.f32.mrf.mxu1  ;;  %v7482_v21 = vadd.f32 %v1153_v48, %v863_v5  ;;  %v7486_v59 = vpop.permute.xlu1 %2454 }
 0x125   : > { %v5882_v13 = vpop.f32.mrf.mxu0  ;;  %9517 = vst [vmem:[#allocation38_spill] sm:$0xff] %v7486_v59  ;;  %v7488_v62 = vpop.permute.xlu0 %2450 }
 0x126   : > { %v1177_v16 = vpop.f32.mrf.mxu1  ;;  %v7484_v50 = vadd.f32 %v5932_v19, %v5882_v13  ;;  %9518 = vst [vmem:[#allocation39_spill] sm:$0xff] %v7488_v62 }
 0x127   : > { %v883_v18 = vpop.f32.mrf.mxu0 }
 0x128   : > { %v5938_v38 = vpop.f32.mrf.mxu1  ;;  %v7490_v10 = vadd.f32 %v1165_v39, %v883_v18  ;;  %v7494_v1 = vpop.permute.xlu1 %2462 }
 0x129   : > { %v5885_v63 = vpop.f32.mrf.mxu0  ;;  %9519 = vst [vmem:[#allocation40_spill] sm:$0xff] %v7494_v1  ;;  %v7496_v48 = vpop.permute.xlu0 %2458 }
 0x12a   : > { %v1189_v28 = vpop.f32.mrf.mxu1  ;;  %v7492_v27 = vadd.f32 %v5935_v4, %v5885_v63  ;;  %9520 = vst [vmem:[#allocation41_spill] sm:$0xff] %v7496_v48 }
 0x12b   : > { %v903_v5 = vpop.f32.mrf.mxu0 }
 0x12c   : > { %v5993_v33 = vpop.f32.mrf.mxu1  ;;  %v7498_v19 = vadd.f32 %v1177_v16, %v903_v5  ;;  %v7502_v62 = vpop.permute.xlu1 %2473 }
 0x12d   : > { %9521 = vst [vmem:[#allocation42_spill] sm:$0xff] %v7502_v62  ;;  %v7504_v39 = vpop.permute.xlu0 %2469 }
 0x12e   : > { %v1560_v23 = vpop.f32.mrf.mxu1  ;;  %v5888_v13 = vpop.f32.mrf.mxu0  ;;  %9522 = vst [vmem:[#allocation43_spill] sm:$0xff] %v7504_v39 }
 0x12f   : > { %v7500_v3 = vadd.f32 %v5938_v38, %v5888_v13  ;;  %v7516_v38 = vld [vmem:[%s9253_s4] sm:$0xff] }
 0x130   : > { %v5996_v59 = vpop.f32.mrf.mxu1  ;;  %v923_v18 = vpop.f32.mrf.mxu0 }
 0x131   : > { %v7506_v4 = vadd.f32 %v1189_v28, %v923_v18  ;;  %v7509_v35 = vpop.permute.xlu1 %2481  ;;  %v7511_v16 = vpop.permute.xlu0 %2477 }
 0x132   : > { %v1576_v34 = vpop.f32.mrf.mxu1  ;;  %v5943_v63 = vpop.f32.mrf.mxu0  ;;  %9523 = vst [vmem:[#allocation44_spill] sm:$0xff] %v7509_v35  ;;  %9524 = vst [vmem:[#allocation45_spill] sm:$0xff] %v7511_v16 }
 0x133   : > { %v1277_v48 = vadd.f32 %v5943_v63, %v7384_v40 }
 0x134   : > { %v5999_v1 = vpop.f32.mrf.mxu1  ;;  %v1269_v5 = vpop.f32.mrf.mxu0 }
 0x135   : > { %v7518_v62 = vadd.f32 %v5993_v33, %v1277_v48  ;;  %v1270_v28 = vadd.f32 %v1269_v5, %v7386_v17 }
 0x136   : > { %v1592_v13 = vpop.f32.mrf.mxu1  ;;  %v5946_v18 = vpop.f32.mrf.mxu0 }
 0x137   : > { %v7521_v12 = vadd.f32 %v1560_v23, %v1270_v28  ;;  %v1291_v40 = vadd.f32 %v5946_v18, %v7388_v8 }
 0x138   : > { %v6002_v39 = vpop.f32.mrf.mxu1  ;;  %v1283_v63 = vpop.f32.mrf.mxu0 }
 0x139   : > { %v7524_v16 = vadd.f32 %v5996_v59, %v1291_v40  ;;  %v1284_v30 = vadd.f32 %v1283_v63, %v7394_v45 }
 0x13a   : > { %v1608_v35 = vpop.f32.mrf.mxu1  ;;  %v5949_v44 = vpop.f32.mrf.mxu0 }
 0x13b   : > { %v7527_v49 = vadd.f32 %v1576_v34, %v1284_v30  ;;  %v1305_v33 = vadd.f32 %v5949_v44, %v7396_v54 }
 0x13c   : > { %v6005_v15 = vpop.f32.mrf.mxu1  ;;  %v1297_v48 = vpop.f32.mrf.mxu0 }
 0x13d   : > { %v7530_v5 = vadd.f32 %v5999_v1, %v1305_v33  ;;  %v1298_v23 = vadd.f32 %v1297_v48, %v7402_v14 }
 0x13e   : > { %v1624_v17 = vpop.f32.mrf.mxu1  ;;  %v5952_v28 = vpop.f32.mrf.mxu0 }
 0x13f   : > { %v7533_v18 = vadd.f32 %v1592_v13, %v1298_v23  ;;  %v1319_v59 = vadd.f32 %v5952_v28, %v7404_v47 }
 0x140   : > { %v6008_v8 = vpop.f32.mrf.mxu1  ;;  %v1311_v40 = vpop.f32.mrf.mxu0 }
 0x141   : > { %v7536_v63 = vadd.f32 %v6002_v39, %v1319_v59  ;;  %v1312_v30 = vadd.f32 %v1311_v40, %v7410_v11 }
 0x142   : > { %v1640_v45 = vpop.f32.mrf.mxu1  ;;  %v5955_v34 = vpop.f32.mrf.mxu0 }
 0x143   : > { %v7539_v44 = vadd.f32 %v1608_v35, %v1312_v30  ;;  %v1333_v1 = vadd.f32 %v5955_v34, %v7412_v24 }
 0x144   : > { %v6011_v54 = vpop.f32.mrf.mxu1  ;;  %v1325_v33 = vpop.f32.mrf.mxu0 }
 0x145   : > { %v7542_v48 = vadd.f32 %v6005_v15, %v1333_v1  ;;  %v1326_v13 = vadd.f32 %v1325_v33, %v7418_v32 }
 0x146   : > { %v1656_v14 = vpop.f32.mrf.mxu1  ;;  %v5958_v23 = vpop.f32.mrf.mxu0 }
 0x147   : > { %v7545_v28 = vadd.f32 %v1624_v17, %v1326_v13  ;;  %v1347_v39 = vadd.f32 %v5958_v23, %v7420_v53 }
 0x148   : > { %v6014_v47 = vpop.f32.mrf.mxu1  ;;  %v1339_v59 = vpop.f32.mrf.mxu0 }
 0x149   : > { %v7548_v40 = vadd.f32 %v6008_v8, %v1347_v39  ;;  %v1340_v35 = vadd.f32 %v1339_v59, %v7426_v9 }
 0x14a   : > { %v1672_v11 = vpop.f32.mrf.mxu1  ;;  %v5961_v30 = vpop.f32.mrf.mxu0 }
 0x14b   : > { %v7551_v34 = vadd.f32 %v1640_v45, %v1340_v35  ;;  %v1361_v15 = vadd.f32 %v5961_v30, %v7428_v51 }
 0x14c   : > { %v6017_v24 = vpop.f32.mrf.mxu1  ;;  %v1353_v1 = vpop.f32.mrf.mxu0 }
 0x14d   : > { %v7554_v33 = vadd.f32 %v6011_v54, %v1361_v15  ;;  %v1354_v17 = vadd.f32 %v1353_v1, %v7434_v31 }
 0x14e   : > { %v1688_v32 = vpop.f32.mrf.mxu1  ;;  %v5964_v13 = vpop.f32.mrf.mxu0 }
 0x14f   : > { %v7557_v23 = vadd.f32 %v1656_v14, %v1354_v17  ;;  %v1375_v8 = vadd.f32 %v5964_v13, %v7436_v2 }
 0x150   : > { %v6020_v53 = vpop.f32.mrf.mxu1  ;;  %v1367_v39 = vpop.f32.mrf.mxu0 }
 0x151   : > { %v7560_v59 = vadd.f32 %v6014_v47, %v1375_v8  ;;  %v1368_v45 = vadd.f32 %v1367_v39, %v7442_v46 }
 0x152   : > { %v1704_v9 = vpop.f32.mrf.mxu1  ;;  %v5967_v35 = vpop.f32.mrf.mxu0 }
 0x153   : > { %v7563_v30 = vadd.f32 %v1672_v11, %v1368_v45  ;;  %v1389_v54 = vadd.f32 %v5967_v35, %v7444_v41 }
 0x154   : > { %v6023_v51 = vpop.f32.mrf.mxu1  ;;  %v1381_v15 = vpop.f32.mrf.mxu0 }
 0x155   : > { %v7566_v1 = vadd.f32 %v6017_v24, %v1389_v54  ;;  %v1382_v14 = vadd.f32 %v1381_v15, %v7450_v29 }
 0x156   : > { %v1720_v31 = vpop.f32.mrf.mxu1  ;;  %v5970_v17 = vpop.f32.mrf.mxu0 }
 0x157   : > { %v7569_v13 = vadd.f32 %v1688_v32, %v1382_v14  ;;  %v1403_v47 = vadd.f32 %v5970_v17, %v7452_v25 }
 0x158   : > { %v6026_v2 = vpop.f32.mrf.mxu1  ;;  %v1395_v8 = vpop.f32.mrf.mxu0 }
 0x159   : > { %v7572_v39 = vadd.f32 %v6020_v53, %v1403_v47  ;;  %v1396_v11 = vadd.f32 %v1395_v8, %v7458_v58 }
 0x15a   : > { %v1736_v46 = vpop.f32.mrf.mxu1  ;;  %v5973_v45 = vpop.f32.mrf.mxu0 }
 0x15b   : > { %v7575_v35 = vadd.f32 %v1704_v9, %v1396_v11  ;;  %v1417_v24 = vadd.f32 %v5973_v45, %v7460_v6 }
 0x15c   : > { %v6029_v41 = vpop.f32.mrf.mxu1  ;;  %v1409_v54 = vpop.f32.mrf.mxu0 }
 0x15d   : > { %v7578_v15 = vadd.f32 %v6023_v51, %v1417_v24  ;;  %v1410_v32 = vadd.f32 %v1409_v54, %v7466_v42 }
 0x15e   : > { %v1752_v29 = vpop.f32.mrf.mxu1  ;;  %v5976_v14 = vpop.f32.mrf.mxu0 }
 0x15f   : > { %v7581_v17 = vadd.f32 %v1720_v31, %v1410_v32  ;;  %v1431_v53 = vadd.f32 %v5976_v14, %v7468_v57 }
 0x160   : > { %v6032_v25 = vpop.f32.mrf.mxu1  ;;  %v1423_v47 = vpop.f32.mrf.mxu0 }
 0x161   : > { %v7584_v8 = vadd.f32 %v6026_v2, %v1431_v53  ;;  %v1424_v9 = vadd.f32 %v1423_v47, %v7474_v0 }
 0x162   : > { %v1768_v58 = vpop.f32.mrf.mxu1  ;;  %v5979_v11 = vpop.f32.mrf.mxu0 }
 0x163   : > { %v7587_v45 = vadd.f32 %v1736_v46, %v1424_v9  ;;  %v1445_v51 = vadd.f32 %v5979_v11, %v7476_v36 }
 0x164   : > { %v6035_v6 = vpop.f32.mrf.mxu1  ;;  %v1437_v24 = vpop.f32.mrf.mxu0 }
 0x165   : > { %v7590_v54 = vadd.f32 %v6029_v41, %v1445_v51  ;;  %v1438_v31 = vadd.f32 %v1437_v24, %v7482_v21 }
 0x166   : > { %v1784_v42 = vpop.f32.mrf.mxu1  ;;  %v5982_v32 = vpop.f32.mrf.mxu0 }
 0x167   : > { %v7595_v14 = vadd.f32 %v1752_v29, %v1438_v31  ;;  %v1459_v2 = vadd.f32 %v5982_v32, %v7484_v50 }
 0x168   : > { %v7593_v57 = vpop.f32.mrf.mxu1  ;;  %v1451_v0 = vpop.f32.mrf.mxu0 }
 0x169   : > { %v7600_v46 = vadd.f32 %v6032_v25, %v1459_v2  ;;  %v1452_v36 = vadd.f32 %v1451_v0, %v7490_v10 }
 0x16a   : > { %v7598_v53 = vpop.f32.mrf.mxu1  ;;  %v5985_v47 = vpop.f32.mrf.mxu0 }
 0x16b   : > { %v7603_v41 = vadd.f32 %v1768_v58, %v1452_v36  ;;  %v1473_v21 = vadd.f32 %v5985_v47, %v7492_v27 }
 0x16c   : > { %v6093_v9 = vpop.f32.mrf.mxu1  ;;  %v1465_v11 = vpop.f32.mrf.mxu0 }
 0x16d   : > { %v7606_v24 = vadd.f32 %v6035_v6, %v1473_v21  ;;  %v1466_v29 = vadd.f32 %v1465_v11, %v7498_v19 }
 0x16e   : > { %v2140_v51 = vpop.f32.mrf.mxu1  ;;  %v7609_v50 = vpop.f32.mrf.mxu0 }
 0x16f   : > { %v7611_v32 = vadd.f32 %v1784_v42, %v1466_v29 }
 0x170   : > { %v6096_v31 = vpop.f32.mrf.mxu1  ;;  %v7613_v25 = vpop.f32.mrf.mxu0 }
 0x172   : > { %v2152_v10 = vpop.f32.mrf.mxu1  ;;  %v6043_v2 = vpop.f32.mrf.mxu0 }
 0x173   : > { %v1889_v58 = vadd.f32 %v6043_v2, %v7518_v62 }
 0x174   : > { %v6099_v0 = vpop.f32.mrf.mxu1  ;;  %v1882_v36 = vpop.f32.mrf.mxu0 }
 0x175   : > { %v7616_v47 = vadd.f32 %v6093_v9, %v1889_v58  ;;  %v1883_v6 = vadd.f32 %v1882_v36, %v7521_v12 }
 0x176   : > { %v2164_v27 = vpop.f32.mrf.mxu1  ;;  %v6046_v21 = vpop.f32.mrf.mxu0 }
 0x177   : > { %9525 = vst [vmem:[#allocation46_spill] sm:$0xff] %v7616_v47  ;;  %v7619_v11 = vadd.f32 %v2140_v51, %v1883_v6  ;;  %v1901_v42 = vadd.f32 %v6046_v21, %v7524_v16 }
 0x178   : > { %v6102_v19 = vpop.f32.mrf.mxu1  ;;  %v1894_v29 = vpop.f32.mrf.mxu0 }
 0x179   : > { %9526 = vst [vmem:[#allocation47_spill] sm:$0xff] %v7619_v11  ;;  %v7622_v22 = vadd.f32 %v6096_v31, %v1901_v42  ;;  %v1895_v60 = vadd.f32 %v1894_v29, %v7527_v49 }
 0x17a   : > { %v2176_v20 = vpop.f32.mrf.mxu1  ;;  %v6049_v55 = vpop.f32.mrf.mxu0 }
 0x17b   : > { %9527 = vst [vmem:[#allocation48_spill] sm:$0xff] %v7622_v22  ;;  %v7625_v2 = vadd.f32 %v2152_v10, %v1895_v60  ;;  %v1913_v9 = vadd.f32 %v6049_v55, %v7530_v5 }
 0x17c   : > { %v6105_v62 = vpop.f32.mrf.mxu1  ;;  %v1906_v58 = vpop.f32.mrf.mxu0 }
 0x17d   : > { %9528 = vst [vmem:[#allocation49_spill] sm:$0xff] %v7625_v2  ;;  %v7628_v36 = vadd.f32 %v6099_v0, %v1913_v9  ;;  %v1907_v51 = vadd.f32 %v1906_v58, %v7533_v18 }
 0x17e   : > { %v2188_v12 = vpop.f32.mrf.mxu1  ;;  %v6052_v6 = vpop.f32.mrf.mxu0 }
 0x17f   : > { %9529 = vst [vmem:[#allocation50_spill] sm:$0xff] %v7628_v36  ;;  %v7631_v21 = vadd.f32 %v2164_v27, %v1907_v51  ;;  %v1925_v31 = vadd.f32 %v6052_v6, %v7536_v63 }
 0x180   : > { %v6108_v16 = vpop.f32.mrf.mxu1  ;;  %v1918_v42 = vpop.f32.mrf.mxu0 }
 0x181   : > { %9530 = vst [vmem:[#allocation51_spill] sm:$0xff] %v7631_v21  ;;  %v7634_v29 = vadd.f32 %v6102_v19, %v1925_v31  ;;  %v1919_v60 = vadd.f32 %v1918_v42, %v7539_v44 }
 0x182   : > { %v2200_v49 = vpop.f32.mrf.mxu1  ;;  %v6055_v10 = vpop.f32.mrf.mxu0 }
 0x183   : > { %9531 = vst [vmem:[#allocation52_spill] sm:$0xff] %v7634_v29  ;;  %v7637_v5 = vadd.f32 %v2176_v20, %v1919_v60  ;;  %v1937_v0 = vadd.f32 %v6055_v10, %v7542_v48 }
 0x184   : > { %v6111_v55 = vpop.f32.mrf.mxu1  ;;  %v1930_v9 = vpop.f32.mrf.mxu0 }
 0x185   : > { %9532 = vst [vmem:[#allocation53_spill] sm:$0xff] %v7637_v5  ;;  %v7640_v58 = vadd.f32 %v6105_v62, %v1937_v0  ;;  %v1931_v27 = vadd.f32 %v1930_v9, %v7545_v28 }
 0x186   : > { %v2212_v18 = vpop.f32.mrf.mxu1  ;;  %v6058_v51 = vpop.f32.mrf.mxu0 }
 0x187   : > { %9533 = vst [vmem:[#allocation54_spill] sm:$0xff] %v7640_v58  ;;  %v7643_v6 = vadd.f32 %v2188_v12, %v1931_v27  ;;  %v1949_v19 = vadd.f32 %v6058_v51, %v7548_v40 }
 0x188   : > { %v6114_v63 = vpop.f32.mrf.mxu1  ;;  %v1942_v31 = vpop.f32.mrf.mxu0 }
 0x189   : > { %9534 = vst [vmem:[#allocation55_spill] sm:$0xff] %v7643_v6  ;;  %v7646_v42 = vadd.f32 %v6108_v16, %v1949_v19  ;;  %v1943_v20 = vadd.f32 %v1942_v31, %v7551_v34 }
 0x18a   : > { %v2224_v44 = vpop.f32.mrf.mxu1  ;;  %v6061_v60 = vpop.f32.mrf.mxu0 }
 0x18b   : > { %9535 = vst [vmem:[#allocation56_spill] sm:$0xff] %v7646_v42  ;;  %v7649_v10 = vadd.f32 %v2200_v49, %v1943_v20  ;;  %v1961_v62 = vadd.f32 %v6061_v60, %v7554_v33 }
 0x18c   : > { %v6117_v48 = vpop.f32.mrf.mxu1  ;;  %v1954_v0 = vpop.f32.mrf.mxu0 }
 0x18d   : > { %9536 = vst [vmem:[#allocation57_spill] sm:$0xff] %v7649_v10  ;;  %v7652_v9 = vadd.f32 %v6111_v55, %v1961_v62  ;;  %v1955_v12 = vadd.f32 %v1954_v0, %v7557_v23 }
 0x18e   : > { %v2236_v28 = vpop.f32.mrf.mxu1  ;;  %v6064_v27 = vpop.f32.mrf.mxu0 }
 0x18f   : > { %9537 = vst [vmem:[#allocation58_spill] sm:$0xff] %v7652_v9  ;;  %v7655_v51 = vadd.f32 %v2212_v18, %v1955_v12  ;;  %v1973_v16 = vadd.f32 %v6064_v27, %v7560_v59 }
 0x190   : > { %v6120_v40 = vpop.f32.mrf.mxu1  ;;  %v1966_v19 = vpop.f32.mrf.mxu0 }
 0x191   : > { %9538 = vst [vmem:[#allocation59_spill] sm:$0xff] %v7655_v51  ;;  %v7658_v31 = vadd.f32 %v6114_v63, %v1973_v16  ;;  %v1967_v49 = vadd.f32 %v1966_v19, %v7563_v30 }
 0x192   : > { %v2248_v34 = vpop.f32.mrf.mxu1  ;;  %v6067_v20 = vpop.f32.mrf.mxu0 }
 0x193   : > { %9539 = vst [vmem:[#allocation60_spill] sm:$0xff] %v7658_v31  ;;  %v7661_v60 = vadd.f32 %v2224_v44, %v1967_v49  ;;  %v1985_v55 = vadd.f32 %v6067_v20, %v7566_v1 }
 0x194   : > { %v6123_v33 = vpop.f32.mrf.mxu1  ;;  %v1978_v62 = vpop.f32.mrf.mxu0 }
 0x195   : > { %9540 = vst [vmem:[#allocation61_spill] sm:$0xff] %v7661_v60  ;;  %v7664_v0 = vadd.f32 %v6117_v48, %v1985_v55  ;;  %v1979_v18 = vadd.f32 %v1978_v62, %v7569_v13 }
 0x196   : > { %v2260_v23 = vpop.f32.mrf.mxu1  ;;  %v6070_v12 = vpop.f32.mrf.mxu0 }
 0x197   : > { %9541 = vst [vmem:[#allocation62_spill] sm:$0xff] %v7664_v0  ;;  %v7667_v27 = vadd.f32 %v2236_v28, %v1979_v18  ;;  %v1997_v63 = vadd.f32 %v6070_v12, %v7572_v39 }
 0x198   : > { %v6126_v59 = vpop.f32.mrf.mxu1  ;;  %v1990_v16 = vpop.f32.mrf.mxu0 }
 0x199   : > { %9542 = vst [vmem:[#allocation63_spill] sm:$0xff] %v7667_v27  ;;  %v7670_v19 = vadd.f32 %v6120_v40, %v1997_v63  ;;  %v1991_v44 = vadd.f32 %v1990_v16, %v7575_v35 }
 0x19a   : > { %v2272_v30 = vpop.f32.mrf.mxu1  ;;  %v6073_v49 = vpop.f32.mrf.mxu0 }
 0x19b   : > { %9543 = vst [vmem:[#allocation64_spill] sm:$0xff] %v7670_v19  ;;  %v7673_v20 = vadd.f32 %v2248_v34, %v1991_v44  ;;  %v2009_v48 = vadd.f32 %v6073_v49, %v7578_v15 }
 0x19c   : > { %v6129_v1 = vpop.f32.mrf.mxu1  ;;  %v2002_v55 = vpop.f32.mrf.mxu0 }
 0x19d   : > { %9544 = vst [vmem:[#allocation65_spill] sm:$0xff] %v7673_v20  ;;  %v7676_v62 = vadd.f32 %v6123_v33, %v2009_v48  ;;  %v2003_v28 = vadd.f32 %v2002_v55, %v7581_v17 }
 0x19e   : > { %v2284_v13 = vpop.f32.mrf.mxu1  ;;  %v6076_v18 = vpop.f32.mrf.mxu0 }
 0x19f   : > { %9545 = vst [vmem:[#allocation66_spill] sm:$0xff] %v7676_v62  ;;  %v7679_v12 = vadd.f32 %v2260_v23, %v2003_v28  ;;  %v2021_v40 = vadd.f32 %v6076_v18, %v7584_v8 }
 0x1a0   : > { %v6132_v39 = vpop.f32.mrf.mxu1  ;;  %v2014_v63 = vpop.f32.mrf.mxu0 }
 0x1a1   : > { %9546 = vst [vmem:[#allocation67_spill] sm:$0xff] %v7679_v12  ;;  %v7682_v35 = vadd.f32 %v6126_v59, %v2021_v40  ;;  %v2015_v34 = vadd.f32 %v2014_v63, %v7587_v45  ;;  %v1487_v45 = vadd.f32 %v7609_v50, %v7500_v3 }
 0x1a2   : > { %v6079_v16 = vpop.f32.mrf.mxu0  ;;  %v2296_v44 = vpop.f32.mrf.mxu1 }
 0x1a3   : > { %9547 = vst [vmem:[#allocation68_spill] sm:$0xff] %v7682_v35  ;;  %v7685_v15 = vadd.f32 %v2272_v30, %v2015_v34  ;;  %v2033_v33 = vadd.f32 %v6079_v16, %v7590_v54 }
 0x1a4   : > { %v2026_v49 = vpop.f32.mrf.mxu0  ;;  %v6135_v55 = vpop.f32.mrf.mxu1 }
 0x1a5   : > { %9548 = vst [vmem:[#allocation69_spill] sm:$0xff] %v7685_v15  ;;  %v7688_v48 = vadd.f32 %v6129_v1, %v2033_v33  ;;  %v2027_v17 = vadd.f32 %v2026_v49, %v7595_v14  ;;  %v1480_v1 = vadd.f32 %v7613_v25, %v7506_v4 }
 0x1a6   : > { %v6082_v23 = vpop.f32.mrf.mxu0  ;;  %v2308_v40 = vpop.f32.mrf.mxu1 }
 0x1a7   : > { %9549 = vst [vmem:[#allocation70_spill] sm:$0xff] %v7688_v48  ;;  %v7691_v28 = vadd.f32 %v2284_v13, %v2027_v17  ;;  %v2045_v8 = vadd.f32 %v6082_v23, %v7600_v46  ;;  %v1809_v46 = vadd.f32 %v7593_v57, %v1487_v45  ;;  %v2503_v57 = vrot.slane (%p2495_p2), %v7516_v38, 2 }
 0x1a8   : > { %v2038_v59 = vpop.f32.mrf.mxu0 }
 0x1a9   : > { %9550 = vst [vmem:[#allocation71_spill] sm:$0xff] %v7691_v28  ;;  %v7696_v18 = vadd.f32 %v6132_v39, %v2045_v8  ;;  %v2039_v30 = vadd.f32 %v2038_v59, %v7603_v41  ;;  %v6138_v39 = vpop.f32.mrf.mxu1  ;;  %v1801_v41 = vadd.f32 %v7598_v53, %v1480_v1  ;;  %v6609_v53 = vmov (%p2495_p2), 1966171168  }
 0x1aa   : > { %v6085_v54 = vpop.f32.mrf.mxu0 }
 0x1ab   : > { %9551 = vst [vmem:[#allocation72_spill] sm:$0xff] %v7696_v18  ;;  %v7701_v14 = vadd.f32 %v2296_v44, %v2039_v30  ;;  %v2057_v13 = vadd.f32 %v6085_v54, %v7606_v24  ;;  %v2320_v49 = vpop.f32.mrf.mxu1 }
 0x1ac   : > { %v2050_v63 = vpop.f32.mrf.mxu0 }
 0x1ad   : > { %9552 = vst [vmem:[#allocation73_spill] sm:$0xff] %v7701_v14  ;;  %v7705_v34 = vadd.f32 %v6135_v55, %v2057_v13  ;;  %v2051_v3 = vadd.f32 %v2050_v63, %v7611_v32  ;;  %v2514_v32 = vunpack.c.l.s4 (%p2495_p2), %v6609_v53  ;;  %v9560_v53 = vld [vmem:[#allocation10_spill] sm:$0xff] (%p2495_p2) }
 0x1ae   : > { %v6088_v50 = vpop.f32.mrf.mxu0 }
 0x1af   : > { %9553 = vst [vmem:[#allocation74_spill] sm:$0xff] %v7705_v34  ;;  %v7709_v16 = vadd.f32 %v2308_v40, %v2051_v3  ;;  %v2069_v33 = vadd.f32 %v6088_v50, %v1809_v46  ;;  %v2515_v23 = vunpack.c.0.s8 (%p2495_p2), %v2514_v32 }
 0x1b0   : > { %v2062_v4 = vpop.f32.mrf.mxu0 }
 0x1b1   : > { %9554 = vst [vmem:[#allocation75_spill] sm:$0xff] %v7709_v16  ;;  %v7711_v25 = vadd.f32 %v6138_v39, %v2069_v33  ;;  %v2063_v44 = vadd.f32 %v2062_v4, %v1801_v41  ;;  %2498 = sbr.rel (!%p2495_p2) target bundleno = 491 (0x1eb), region = 48  ;;  %v7729_v59 = vsub.s32 (%p2495_p2), %v2515_v23, %v7213_v43  ;;  %v9557_v41 = vld [vmem:[#allocation7_spill] sm:$0xff] (%p2495_p2)  ;;  %v9558_v4 = vld [vmem:[#allocation8_spill] sm:$0xff] (%p2495_p2) }
 0x1b3   : > { %9555 = vst [vmem:[#allocation76_spill] sm:$0xff] %v7711_v25  ;;  %v7713_v24 = vadd.f32 %v2320_v49, %v2063_v44  ;;  %v9559_v49 = vld [vmem:[#allocation9_spill] sm:$0xff] (%p2495_p2) }
 0x1b5   : > { %9556 = vst [vmem:[#allocation77_spill] sm:$0xff] %v7713_v24 }
 0x1b6   : > { %s2499_s14 = scalar_select %p6776_p1, 1, 0 }
 0x1b8   : > { %v2500_v17 = vstv %s2499_s14 }
 0x1b9   : > { %vm2501_vm1 = vcmp.eq.s32.totalorder %v2500_v17, 1 }
 0x1ba   : > { %v2505_v55 = vsel %vm2501_vm1, %v7516_v38, %v2503_v57 }
 0x1bb   : > { %v2509_v8 = vrot.slane %v2505_v55, %v7318_v26 }
 0x1bd   : > { %v2510_v45 = vadd.f32 %v2509_v8, %v7237_v37 }
 0x1bf   : > { %v2519_v30 = vrot.slane %v2510_v45, %v7729_v59  ;;  %v2512_v54 = vcombine.high %v2510_v45, %v2510_v45 }
 0x1c1   : > { %v2535_v40 = vrot.slane %v2519_v30, %v7729_v59  ;;  %v2527_v1 = vcombine.high %v2519_v30, %v2519_v30  ;;  %v7735_v13 = vrot.slane %v2512_v54, %v7729_v59 }
 0x1c3   : > { %v2564_v63 = vrot.slane %v2535_v40, %v7219_v52  ;;  %v2549_v46 = vrot.slane %v2527_v1, %v7729_v59  ;;  %v2557_v3 = vcombine.high %v2535_v40, %v2535_v40  ;;  %v7741_v50 = vrot.slane %v7735_v13, %v7729_v59 }
 0x1c5   : > { %v2601_v33 = vadd.f32 %v2564_v63, %v9557_v41  ;;  %v2602_v44 = vadd.f32 %v2564_v63, %v9558_v4  ;;  %v2603_v57 = vadd.f32 %v2564_v63, %v9559_v49  ;;  %v2604_v32 = vadd.f32 %v2564_v63, %v9560_v53 }
 0x1c6   : > { %v2568_v17 = vrot.slane %v2549_v46, %v7219_v52  ;;  %v2572_v23 = vrot.slane %v2557_v3, %v7219_v52  ;;  %v2559_v55 = vcombine.high %v2549_v46, %v2549_v46  ;;  %v2580_v8 = vrot.slane %v7741_v50, %v7219_v52 }
 0x1c7   : > { %v2633_v45 = vadd.f32 %v2601_v33, %v7619_v11  ;;  %v2634_v30 = vadd.f32 %v2602_v44, %v7616_v47  ;;  %v2635_v54 = vadd.f32 %v2603_v57, %v7625_v2  ;;  %v2636_v40 = vadd.f32 %v2604_v32, %v7622_v22  ;;  %v9561_v11 = vld [vmem:[#allocation13_spill] sm:$0xff] }
 0x1c8   : > { %v2605_v1 = vadd.f32 %v2568_v17, %v9557_v41  ;;  %v2606_v63 = vadd.f32 %v2568_v17, %v9558_v4  ;;  %v2607_v46 = vadd.f32 %v2568_v17, %v9559_v49  ;;  %v2608_v3 = vadd.f32 %v2568_v17, %v9560_v53 }
 0x1c9   : > { %v2665_v33 = vmul.f32 %v2633_v45, %v7392_v61  ;;  %v2666_v39 = vmul.f32 %v2634_v30, %v7400_v7  ;;  %v2667_v44 = vmul.f32 %v2635_v54, %v7390_v56  ;;  %v2668_v57 = vmul.f32 %v2636_v40, %v9561_v11  ;;  %v9562_v54 = vld [vmem:[#allocation16_spill] sm:$0xff] }
 0x1ca   : > { %v2637_v2 = vadd.f32 %v2605_v1, %v7631_v21  ;;  %v2638_v32 = vadd.f32 %v2606_v63, %v7628_v36  ;;  %v2639_v22 = vadd.f32 %v2607_v46, %v7637_v5  ;;  %v2640_v47 = vadd.f32 %v2608_v3, %v7634_v29  ;;  %v9563_v1 = vld [vmem:[#allocation15_spill] sm:$0xff]  ;;  %v9564_v46 = vld [vmem:[#allocation18_spill] sm:$0xff] }
 0x1cb   : > { %2697 = vst [vmem:[%s7716_s8] sm:$0xff] %v2665_v33  ;;  %2698 = vst [vmem:[%s7716_s8 + $0x8] sm:$0xff] %v2666_v39  ;;  %v2609_v17 = vadd.f32 %v2572_v23, %v9557_v41  ;;  %v2610_v11 = vadd.f32 %v2572_v23, %v9558_v4  ;;  %v2611_v45 = vadd.f32 %v2572_v23, %v9559_v49  ;;  %v9565_v39 = vld [vmem:[#allocation17_spill] sm:$0xff] }
 0x1cc   : > { %2699 = vst [vmem:[%s7716_s8 + $0x10] sm:$0xff] %v2667_v44  ;;  %2700 = vst [vmem:[%s7716_s8 + $0x18] sm:$0xff] %v2668_v57  ;;  %v2612_v30 = vadd.f32 %v2572_v23, %v9560_v53  ;;  %v2669_v40 = vmul.f32 %v2637_v2, %v9562_v54  ;;  %v2670_v63 = vmul.f32 %v2638_v32, %v9563_v1  ;;  %v9566_v32 = vld [vmem:[#allocation20_spill] sm:$0xff] }
 0x1cd   : > { %v2671_v3 = vmul.f32 %v2639_v22, %v9564_v46  ;;  %v2672_v33 = vmul.f32 %v2640_v47, %v9565_v39  ;;  %v2641_v44 = vadd.f32 %v2609_v17, %v7643_v6  ;;  %v2642_v57 = vadd.f32 %v2610_v11, %v7640_v58  ;;  %v9567_v11 = vld [vmem:[#allocation19_spill] sm:$0xff] }
 0x1ce   : > { %v2643_v5 = vadd.f32 %v2611_v45, %v7649_v10  ;;  %v2644_v29 = vadd.f32 %v2612_v30, %v7646_v42  ;;  %2701 = vst [vmem:[%s7716_s8 + $0x20] sm:$0xff] %v2669_v40  ;;  %2702 = vst [vmem:[%s7716_s8 + $0x28] sm:$0xff] %v2670_v63  ;;  %v2576_v22 = vrot.slane %v2559_v55, %v7219_v52  ;;  %v9568_v30 = vld [vmem:[#allocation22_spill] sm:$0xff]  ;;  %v9569_v40 = vld [vmem:[#allocation21_spill] sm:$0xff] }
 0x1cf   : > { %2703 = vst [vmem:[%s7716_s8 + $0x30] sm:$0xff] %v2671_v3  ;;  %2704 = vst [vmem:[%s7716_s8 + $0x38] sm:$0xff] %v2672_v33  ;;  %v2617_v47 = vadd.f32 %v2580_v8, %v9557_v41  ;;  %v2618_v2 = vadd.f32 %v2580_v8, %v9558_v4  ;;  %v2619_v23 = vadd.f32 %v2580_v8, %v9559_v49 }
 0x1d0   : > { %v2673_v17 = vmul.f32 %v2641_v44, %v9566_v32  ;;  %v2674_v45 = vmul.f32 %v2642_v57, %v9567_v11  ;;  %v2675_v54 = vmul.f32 %v2643_v5, %v9568_v30  ;;  %v2676_v1 = vmul.f32 %v2644_v29, %v9569_v40  ;;  %v9571_v11 = vld [vmem:[#allocation30_spill] sm:$0xff]  ;;  %v9573_v30 = vld [vmem:[#allocation24_spill] sm:$0xff]  ;;  %v9574_v40 = vld [vmem:[#allocation23_spill] sm:$0xff] }
 0x1d1   : > { %v2613_v63 = vadd.f32 %v2576_v22, %v9557_v41  ;;  %v2614_v46 = vadd.f32 %v2576_v22, %v9558_v4  ;;  %v2615_v55 = vadd.f32 %v2576_v22, %v9559_v49  ;;  %v2616_v3 = vadd.f32 %v2576_v22, %v9560_v53 }
 0x1d2   : > { %2705 = vst [vmem:[%s7716_s8 + $0x40] sm:$0xff] %v2673_v17  ;;  %2706 = vst [vmem:[%s7716_s8 + $0x48] sm:$0xff] %v2674_v45  ;;  %v2649_v39 = vadd.f32 %v2617_v47, %v7667_v27  ;;  %v2650_v33 = vadd.f32 %v2618_v2, %v7664_v0  ;;  %v2651_v29 = vadd.f32 %v2619_v23, %v7673_v20  ;;  %v9570_v17 = vld [vmem:[#allocation31_spill] sm:$0xff]  ;;  %v9572_v45 = vld [vmem:[#allocation33_spill] sm:$0xff] }
 0x1d3   : > { %2707 = vst [vmem:[%s7716_s8 + $0x50] sm:$0xff] %v2675_v54  ;;  %2708 = vst [vmem:[%s7716_s8 + $0x58] sm:$0xff] %v2676_v1  ;;  %v2620_v5 = vadd.f32 %v2580_v8, %v9560_v53  ;;  %v2645_v44 = vadd.f32 %v2613_v63, %v7655_v51  ;;  %v2646_v57 = vadd.f32 %v2614_v46, %v7652_v9  ;;  %v9575_v63 = vld [vmem:[#allocation29_spill] sm:$0xff] }
 0x1d4   : > { %v2647_v22 = vadd.f32 %v2615_v55, %v7661_v60  ;;  %v2648_v32 = vadd.f32 %v2616_v3, %v7658_v31  ;;  %v2681_v47 = vmul.f32 %v2649_v39, %v9570_v17  ;;  %v2682_v2 = vmul.f32 %v2650_v33, %v9571_v11  ;;  %v9576_v55 = vld [vmem:[#allocation28_spill] sm:$0xff] }
 0x1d5   : > { %v2683_v23 = vmul.f32 %v2651_v29, %v9572_v45  ;;  %v2652_v8 = vadd.f32 %v2620_v5, %v7670_v19  ;;  %v2677_v54 = vmul.f32 %v2645_v44, %v9573_v30  ;;  %v2678_v1 = vmul.f32 %v2646_v57, %v9574_v40  ;;  %v9577_v39 = vld [vmem:[#allocation32_spill] sm:$0xff] }
 0x1d6   : > { %v2679_v46 = vmul.f32 %v2647_v22, %v9575_v63  ;;  %v2680_v3 = vmul.f32 %v2648_v32, %v9576_v55  ;;  %2713 = vst [vmem:[%s7716_s8 + $0x80] sm:$0xff] %v2681_v47  ;;  %2714 = vst [vmem:[%s7716_s8 + $0x88] sm:$0xff] %v2682_v2  ;;  %v9578_v33 = vcombine.high %v7735_v13, %v7735_v13  ;;  %v9579_v55 = vld [vmem:[#allocation35_spill] sm:$0xff] }
 0x1d7   : > { %2715 = vst [vmem:[%s7716_s8 + $0x90] sm:$0xff] %v2683_v23  ;;  %v2684_v17 = vmul.f32 %v2652_v8, %v9577_v39  ;;  %v2558_v5 = vcombine.high %v7741_v50, %v7741_v50  ;;  %2709 = vst [vmem:[%s7716_s8 + $0x60] sm:$0xff] %v2677_v54  ;;  %v9580_v39 = vld [vmem:[#allocation34_spill] sm:$0xff] }
 0x1d8   : > { %v2556_v29 = vrot.slane %v9578_v33, %v7729_v59  ;;  %2710 = vst [vmem:[%s7716_s8 + $0x68] sm:$0xff] %v2678_v1  ;;  %2711 = vst [vmem:[%s7716_s8 + $0x70] sm:$0xff] %v2679_v46  ;;  %v9581_v33 = vld [vmem:[#allocation37_spill] sm:$0xff] }
 0x1d9   : > { %2712 = vst [vmem:[%s7716_s8 + $0x78] sm:$0xff] %v2680_v3  ;;  %2716 = vst [vmem:[%s7716_s8 + $0x98] sm:$0xff] %v2684_v17  ;;  %v2588_v57 = vrot.slane %v2558_v5, %v7219_v52  ;;  %v9582_v5 = vld [vmem:[#allocation36_spill] sm:$0xff] }
 0x1da   : > { %v2584_v44 = vrot.slane %v2556_v29, %v7219_v52  ;;  %v2560_v22 = vcombine.high %v2556_v29, %v2556_v29 }
 0x1db   : > { %v2625_v50 = vadd.f32 %v2588_v57, %v9557_v41  ;;  %v2626_v11 = vadd.f32 %v2588_v57, %v9558_v4  ;;  %v2627_v2 = vadd.f32 %v2588_v57, %v9559_v49  ;;  %v2628_v45 = vadd.f32 %v2588_v57, %v9560_v53  ;;  %v9583_v57 = vld [vmem:[#allocation39_spill] sm:$0xff] }
 0x1dc   : > { %v2621_v32 = vadd.f32 %v2584_v44, %v9557_v41  ;;  %v2622_v47 = vadd.f32 %v2584_v44, %v9558_v4  ;;  %v2623_v13 = vadd.f32 %v2584_v44, %v9559_v49  ;;  %v2624_v59 = vadd.f32 %v2584_v44, %v9560_v53 }
 0x1dd   : > { %v2657_v40 = vadd.f32 %v2625_v50, %v7691_v28  ;;  %v2658_v1 = vadd.f32 %v2626_v11, %v7688_v48  ;;  %v2659_v63 = vadd.f32 %v2627_v2, %v7701_v14  ;;  %v2660_v46 = vadd.f32 %v2628_v45, %v7696_v18  ;;  %v9586_v11 = vld [vmem:[#allocation40_spill] sm:$0xff] }
 0x1de   : > { %v2653_v23 = vadd.f32 %v2621_v32, %v7679_v12  ;;  %v2654_v8 = vadd.f32 %v2622_v47, %v7676_v62  ;;  %v2655_v30 = vadd.f32 %v2623_v13, %v7685_v15  ;;  %v2656_v54 = vadd.f32 %v2624_v59, %v7682_v35  ;;  %v9584_v47 = vld [vmem:[#allocation38_spill] sm:$0xff]  ;;  %v9585_v59 = vld [vmem:[#allocation41_spill] sm:$0xff] }
 0x1df   : > { %v2689_v32 = vmul.f32 %v2657_v40, %v9583_v57  ;;  %v2690_v13 = vmul.f32 %v2658_v1, %v9584_v47  ;;  %v2691_v50 = vmul.f32 %v2659_v63, %v9585_v59  ;;  %v2692_v2 = vmul.f32 %v2660_v46, %v9586_v11  ;;  %v9587_v46 = vld [vmem:[#allocation43_spill] sm:$0xff] }
 0x1e0   : > { %v2685_v3 = vmul.f32 %v2653_v23, %v9579_v55  ;;  %v2686_v17 = vmul.f32 %v2654_v8, %v9580_v39  ;;  %v2687_v29 = vmul.f32 %v2655_v30, %v9581_v33  ;;  %v2688_v44 = vmul.f32 %v2656_v54, %v9582_v5  ;;  %v9590_v33 = vld [vmem:[#allocation44_spill] sm:$0xff] }
 0x1e1   : > { %v2592_v45 = vrot.slane %v2560_v22, %v7219_v52  ;;  %2721 = vst [vmem:[%s7716_s8 + $0xc0] sm:$0xff] %v2689_v32  ;;  %2722 = vst [vmem:[%s7716_s8 + $0xc8] sm:$0xff] %v2690_v13 }
 0x1e2   : > { %2717 = vst [vmem:[%s7716_s8 + $0xa0] sm:$0xff] %v2685_v3  ;;  %2718 = vst [vmem:[%s7716_s8 + $0xa8] sm:$0xff] %v2686_v17  ;;  %v9588_v3 = vld [vmem:[#allocation42_spill] sm:$0xff]  ;;  %v9589_v17 = vld [vmem:[#allocation45_spill] sm:$0xff] }
 0x1e3   : > { %2719 = vst [vmem:[%s7716_s8 + $0xb0] sm:$0xff] %v2687_v29  ;;  %2720 = vst [vmem:[%s7716_s8 + $0xb8] sm:$0xff] %v2688_v44  ;;  %v2629_v23 = vadd.f32 %v2592_v45, %v9557_v41  ;;  %v2630_v8 = vadd.f32 %v2592_v45, %v9558_v4  ;;  %v2631_v30 = vadd.f32 %v2592_v45, %v9559_v49 }
 0x1e4   : > { %2723 = vst [vmem:[%s7716_s8 + $0xd0] sm:$0xff] %v2691_v50  ;;  %2724 = vst [vmem:[%s7716_s8 + $0xd8] sm:$0xff] %v2692_v2  ;;  %v2632_v54 = vadd.f32 %v2592_v45, %v9560_v53 }
 0x1e5   : > { %v2661_v40 = vadd.f32 %v2629_v23, %v7709_v16  ;;  %v2662_v22 = vadd.f32 %v2630_v8, %v7705_v34  ;;  %v2663_v1 = vadd.f32 %v2631_v30, %v7713_v24 }
 0x1e6   : > { %v2664_v63 = vadd.f32 %v2632_v54, %v7711_v25 }
 0x1e7   : > { %v2693_v55 = vmul.f32 %v2661_v40, %v9587_v46  ;;  %v2694_v39 = vmul.f32 %v2662_v22, %v9588_v3  ;;  %v2695_v41 = vmul.f32 %v2663_v1, %v9589_v17 }
 0x1e8   : > { %v2696_v4 = vmul.f32 %v2664_v63, %v9590_v33 }
 0x1e9   : > { %2725 = vst [vmem:[%s7716_s8 + $0xe0] sm:$0xff] %v2693_v55  ;;  %2726 = vst [vmem:[%s7716_s8 + $0xe8] sm:$0xff] %v2694_v39 }
 0x1ea   : > { %2727 = vst [vmem:[%s7716_s8 + $0xf0] sm:$0xff] %v2695_v41  ;;  %2728 = vst [vmem:[%s7716_s8 + $0xf8] sm:$0xff] %v2696_v4 }
 0x1eb PF: > { %2731 = sbr.rel (%p2495_p2) target bundleno = 1034 (0x40a), region = 52 }
 0x1f0   : > { %v2734_v49 = vstv %s6733_s20  ;;  %v9591_v53 = vlaneseq  ;;  %v7897_v5 = vand.u32 4294901760, %v7516_v38  ;;  %v9592_v45 = vsub.s32 1, %v7213_v43 }
 0x1f1   : > { %v2735_v44 = vadd.s32 %v2734_v49, %v7213_v43  ;;  %v9593_v8 = vsub.s32 2, %v7213_v43  ;;  %v9594_v54 = vsub.s32 3, %v7213_v43  ;;  %v9595_v22 = vsub.s32 4, %v7213_v43 }
 0x1f2   : > { %v7894_v29 = vand.u32 127, %v9591_v53  ;;  %v7902_v57 = vsub.f32 %v7516_v38, %v7897_v5  ;;  %6139 = vmatprep.subr.mxu0 %v7897_v5  ;;  %v9596_v63 = vsub.s32 5, %v7213_v43  ;;  %v9597_v3 = vsub.s32 7, %v7213_v43 }
 0x1f3   : > { %6140 = vmatpush3.msra.mxu0 %v7897_v5  ;;  %v9335_v33 = vmov 0.0  }
 0x1f4   : > { %v2740_v32 = vsub.s32 %v2735_v44, %v7894_v29  ;;  %v7908_v47 = vand.u32 4294901760, %v7902_v57  ;;  %6239 = vmatprep.subr.mxu0 %v7902_v57 }
 0x1f6   : > { %vm2741_vm2 = vcmp.gt.s32.totalorder %v2740_v32, 4294967293  ;;  %v3510_v59 = vsub.f32 %v7902_v57, %v7908_v47 }
 0x1f7   : > { %v2742_v13 = vsel %vm2741_vm2, %v2740_v32, 4294967293 }
 0x1f8   : > { %vm2743_vm3 = vcmp.lt.s32.totalorder %v2742_v13, 3  ;;  %v3511_v38 = vand.u32 4294901760, %v3510_v59 }
 0x1f9   : > { %v2744_v50 = vsel %vm2743_vm3, %v2742_v13, 3 }
 0x1fa   : > { %v2745_v11 = vadd.s32 3, %v2744_v50  ;;  %6189 = vmatprep.subr.mxu1 %v3511_v38 }
 0x1fb   : > { %6190 = vmatpush3.msra.mxu1 %v3511_v38 }
 0x1fc   : > { %v2749_v2 = vrot.slane %v2745_v11, %v7219_v52  ;;  %6289 = vmatprep.subr.mxu1 %v7897_v5  ;;  %v2768_v23 = vrot.slane %v2745_v11, %v9592_v45  ;;  %v2787_v30 = vrot.slane %v2745_v11, %v9593_v8  ;;  %v2806_v40 = vrot.slane %v2745_v11, %v9594_v54 }
 0x1fd   : > { %v2825_v1 = vrot.slane %v2745_v11, %v9595_v22  ;;  %v2844_v46 = vrot.slane %v2745_v11, %v9596_v63  ;;  %v2863_v55 = vrot.slane %v2745_v11, %v7318_v26  ;;  %v2882_v39 = vrot.slane %v2745_v11, %v9597_v3 }
 0x1fe   : > { %2751 = vbcast.lane.b32.xlu0 %v2749_v2, 256  ;;  %2759 = vbcast.lane.b32.xlu1 %v2749_v2, 272 }
 0x202   : > { %2755 = vbcast.lane.b32.xlu0 %v2749_v2, 264  ;;  %2763 = vbcast.lane.b32.xlu1 %v2749_v2, 280 }
 0x206   : > { %2770 = vbcast.lane.b32.xlu0 %v2768_v23, 256  ;;  %2774 = vbcast.lane.b32.xlu1 %v2768_v23, 264 }
 0x20a   : > { %2778 = vbcast.lane.b32.xlu0 %v2768_v23, 272  ;;  %2782 = vbcast.lane.b32.xlu1 %v2768_v23, 280 }
 0x20e   : > { %2789 = vbcast.lane.b32.xlu0 %v2787_v30, 256  ;;  %2793 = vbcast.lane.b32.xlu1 %v2787_v30, 264 }
 0x212   : > { %2797 = vbcast.lane.b32.xlu0 %v2787_v30, 272  ;;  %2801 = vbcast.lane.b32.xlu1 %v2787_v30, 280 }
 0x216   : > { %2808 = vbcast.lane.b32.xlu0 %v2806_v40, 256  ;;  %2812 = vbcast.lane.b32.xlu1 %v2806_v40, 264 }
 0x21a   : > { %2816 = vbcast.lane.b32.xlu0 %v2806_v40, 272  ;;  %2820 = vbcast.lane.b32.xlu1 %v2806_v40, 280 }
 0x21e   : > { %2827 = vbcast.lane.b32.xlu0 %v2825_v1, 256  ;;  %2831 = vbcast.lane.b32.xlu1 %v2825_v1, 264 }
 0x222   : > { %2835 = vbcast.lane.b32.xlu0 %v2825_v1, 272  ;;  %2839 = vbcast.lane.b32.xlu1 %v2825_v1, 280 }
 0x226   : > { %2846 = vbcast.lane.b32.xlu0 %v2844_v46, 256  ;;  %2850 = vbcast.lane.b32.xlu1 %v2844_v46, 264 }
 0x22a   : > { %2854 = vbcast.lane.b32.xlu0 %v2844_v46, 272  ;;  %2858 = vbcast.lane.b32.xlu1 %v2844_v46, 280 }
 0x22e   : > { %2865 = vbcast.lane.b32.xlu0 %v2863_v55, 256  ;;  %2869 = vbcast.lane.b32.xlu1 %v2863_v55, 264 }
 0x232   : > { %2873 = vbcast.lane.b32.xlu0 %v2863_v55, 272  ;;  %2877 = vbcast.lane.b32.xlu1 %v2863_v55, 280 }
 0x236   : > { %2884 = vbcast.lane.b32.xlu0 %v2882_v39, 256  ;;  %2888 = vbcast.lane.b32.xlu1 %v2882_v39, 264 }
 0x23a   : > { %2892 = vbcast.lane.b32.xlu0 %v2882_v39, 272  ;;  %2896 = vbcast.lane.b32.xlu1 %v2882_v39, 280 }
 0x270   : > { %v2752_v17 = vpop.permute.xlu0 %2751  ;;  %v2760_v41 = vpop.permute.xlu1 %2759 }
 0x271   : > { %vm2898_vm4 = vcmp.eq.s32.totalorder %v2752_v17, %v7894_v29  ;;  %vm2900_vm5 = vcmp.eq.s32.totalorder %v2760_v41, %v7894_v29 }
 0x272   : > { %v7931_v26 = vsel %vm2898_vm4, 1.0, %v9335_v33  ;;  %v7934_v4 = vsel %vm2900_vm5, 1.0, %v9335_v33 }
 0x273   : > { %v3001_v49 = vsel %vm454_vm0, %v7934_v4, 0  ;;  %6191 = vmatprep.mubr.msk.f32.mxu1 %vm454_vm0, %v7931_v26  ;;  %v2995_v53 = vsel %vm454_vm0, %v7931_v26, 0 }
 0x274   : > { %v7942_v44 = vsub.f32 %v3001_v49, %v3001_v49  ;;  %v2756_v32 = vpop.permute.xlu0 %2755  ;;  %v2764_v13 = vpop.permute.xlu1 %2763  ;;  %v7944_v59 = vsub.f32 %v2995_v53, %v2995_v53 }
 0x275   : > { %vm2899_vm6 = vcmp.eq.s32.totalorder %v2756_v32, %v7894_v29  ;;  %vm2901_vm7 = vcmp.eq.s32.totalorder %v2764_v13, %v7894_v29 }
 0x276   : > { %v7949_v50 = vsel %vm2899_vm6, 1.0, %v9335_v33  ;;  %v7952_v38 = vsel %vm2901_vm7, 1.0, %v9335_v33  ;;  %v9331_v11 = vand.u32 4294901760, %v7944_v59  ;;  %v9329_v23 = vand.u32 4294901760, %v7942_v44 }
 0x277   : > { %v2998_v2 = vsel %vm454_vm0, %v7949_v50, 0  ;;  %v3004_v45 = vsel %vm454_vm0, %v7952_v38, 0  ;;  %6192 = vmatmul.mubr.msk.f32.vlgmr.msra.gmra.mxu1 %vm454_vm0, %v7949_v50 }
 0x278   : > { %v7962_v8 = vsub.f32 %v2998_v2, %v2998_v2  ;;  %v7964_v30 = vsub.f32 %v3004_v45, %v3004_v45  ;;  %6194 = vmatprep.mubr.msk.f32.mxu1 %vm454_vm0, %v7934_v4  ;;  %v2771_v54 = vpop.permute.xlu0 %2770  ;;  %v2775_v40 = vpop.permute.xlu1 %2774  ;;  %v3159_v22 = vsub.f32 %v7944_v59, %v9331_v11  ;;  %6290 = vmatpush3.msra.mxu1 %v7897_v5 }
 0x279   : > { %vm2902_vm8 = vcmp.eq.s32.totalorder %v2771_v54, %v7894_v29  ;;  %vm2903_vm9 = vcmp.eq.s32.totalorder %v2775_v40, %v7894_v29  ;;  %6389 = vmatprep.subr.mxu1 %v7897_v5  ;;  %v3179_v17 = vsub.f32 %v7942_v44, %v9329_v23 }
 0x27a   : > { %v7975_v1 = vsel %vm2902_vm8, 1.0, %v9335_v33  ;;  %v7978_v63 = vsel %vm2903_vm9, 1.0, %v9335_v33  ;;  %v3160_v46 = vand.u32 4294901760, %v3159_v22  ;;  %v9330_v55 = vand.u32 4294901760, %v7962_v8 }
 0x27b   : > { %v3007_v3 = vsel %vm454_vm0, %v7975_v1, 0  ;;  %v3010_v39 = vsel %vm454_vm0, %v7978_v63, 0  ;;  %6195 = vmatmul.mubr.msk.f32.gmra.mxu1 %vm454_vm0, %v7952_v38  ;;  %v9328_v41 = vand.u32 4294901760, %v7964_v30 }
 0x27c   : > { %v7992_v49 = vsub.f32 %v3007_v3, %v3007_v3  ;;  %v7994_v53 = vsub.f32 %v3010_v39, %v3010_v39  ;;  %6141 = vmatprep.mubr.f32.mxu0 %v3160_v46  ;;  %v2779_v32 = vpop.permute.xlu0 %2778  ;;  %v2783_v13 = vpop.permute.xlu1 %2782  ;;  %6197 = vmatprep.mubr.msk.f32.mxu1 %vm454_vm0, %v7975_v1  ;;  %v3169_v2 = vsub.f32 %v7962_v8, %v9330_v55 }
 0x27d   : > { %vm2904_vm10 = vcmp.eq.s32.totalorder %v2779_v32, %v7894_v29  ;;  %vm2905_vm11 = vcmp.eq.s32.totalorder %v2783_v13, %v7894_v29  ;;  %v3189_v45 = vsub.f32 %v7964_v30, %v9328_v41  ;;  %v3180_v32 = vand.u32 4294901760, %v3179_v17 }
 0x27e   : > { %v8007_v54 = vsel %vm2904_vm10, 1.0, %v9335_v33  ;;  %v8010_v40 = vsel %vm2905_vm11, 1.0, %v9335_v33  ;;  %v3170_v22 = vand.u32 4294901760, %v3169_v2  ;;  %v9333_v46 = vand.u32 4294901760, %v7992_v49 }
 0x27f   : > { %v3013_v3 = vsel %vm454_vm0, %v8007_v54, 0  ;;  %v3016_v39 = vsel %vm454_vm0, %v8010_v40, 0  ;;  %6198 = vmatmul.mubr.msk.f32.gmra.mxu1 %vm454_vm0, %v7978_v63  ;;  %v9334_v13 = vand.u32 4294901760, %v7994_v53  ;;  %v3190_v17 = vand.u32 4294901760, %v3189_v45 }
 0x280   : > { %v8020_v41 = vsub.f32 %v3013_v3, %v3013_v3  ;;  %v8022_v23 = vsub.f32 %v3016_v39, %v3016_v39  ;;  %6142 = vmatmul.mubr.f32.vlgmr.msra.gmra.mxu0 %v3170_v22  ;;  %v2790_v2 = vpop.permute.xlu0 %2789  ;;  %v2794_v55 = vpop.permute.xlu1 %2793  ;;  %6200 = vmatprep.mubr.msk.f32.mxu1 %vm454_vm0, %v8007_v54  ;;  %v3199_v11 = vsub.f32 %v7992_v49, %v9333_v46 }
 0x281   : > { %6240 = vmatpush3.msra.mxu0 %v7902_v57  ;;  %6144 = vmatprep.mubr.f32.mxu0 %v3180_v32  ;;  %vm2906_vm12 = vcmp.eq.s32.totalorder %v2790_v2, %v7894_v29  ;;  %vm2907_vm13 = vcmp.eq.s32.totalorder %v2794_v55, %v7894_v29  ;;  %v3209_v22 = vsub.f32 %v7994_v53, %v9334_v13 }
 0x282   : > { %v8036_v3 = vsel %vm2906_vm12, 1.0, %v9335_v33  ;;  %v8039_v39 = vsel %vm2907_vm13, 1.0, %v9335_v33  ;;  %v3200_v24 = vand.u32 4294901760, %v3199_v11  ;;  %v9341_v46 = vand.u32 4294901760, %v8020_v41  ;;  %6339 = vmatprep.subr.mxu0 %v7908_v47 }
 0x283   : > { %v3019_v57 = vsel %vm454_vm0, %v8036_v3, 0  ;;  %v3022_v55 = vsel %vm454_vm0, %v8039_v39, 0  ;;  %6201 = vmatmul.mubr.msk.f32.gmra.mxu1 %vm454_vm0, %v8010_v40  ;;  %v3210_v45 = vand.u32 4294901760, %v3209_v22 }
 0x284   : > { %v8050_v32 = vsub.f32 %v3019_v57, %v3019_v57  ;;  %v8052_v2 = vsub.f32 %v3022_v55, %v3022_v55  ;;  %6145 = vmatmul.mubr.f32.gmra.mxu0 %v3190_v17  ;;  %v2798_v11 = vpop.permute.xlu0 %2797  ;;  %v2802_v13 = vpop.permute.xlu1 %2801  ;;  %6203 = vmatprep.mubr.msk.f32.mxu1 %vm454_vm0, %v8036_v3  ;;  %v3219_v33 = vsub.f32 %v8020_v41, %v9341_v46  ;;  %v9598_v57 = vand.u32 4294901760, %v8022_v23 }
 0x285   : > { %6147 = vmatprep.mubr.f32.mxu0 %v3200_v24  ;;  %vm2908_vm14 = vcmp.eq.s32.totalorder %v2798_v11, %v7894_v29  ;;  %vm2909_vm15 = vcmp.eq.s32.totalorder %v2802_v13, %v7894_v29  ;;  %v9599_v17 = vmov 0.0  }
 0x286   : > { %v3229_v55 = vsub.f32 %v8022_v23, %v9598_v57  ;;  %v8065_v25 = vsel %vm2908_vm14, 1.0, %v9599_v17  ;;  %v8068_v16 = vsel %vm2909_vm15, 1.0, %v9599_v17  ;;  %v3220_v34 = vand.u32 4294901760, %v3219_v33 }
 0x287   : > { %v9346_v14 = vand.u32 4294901760, %v8050_v32  ;;  %v3025_v24 = vsel %vm454_vm0, %v8065_v25, 0  ;;  %v3028_v13 = vsel %vm454_vm0, %v8068_v16, 0  ;;  %6204 = vmatmul.mubr.msk.f32.gmra.mxu1 %vm454_vm0, %v8039_v39 }
 0x288   : > { %v8078_v11 = vsub.f32 %v3025_v24, %v3025_v24  ;;  %v8080_v57 = vsub.f32 %v3028_v13, %v3028_v13  ;;  %6148 = vmatmul.mubr.f32.gmra.mxu0 %v3210_v45  ;;  %v2809_v46 = vpop.permute.xlu0 %2808  ;;  %v2813_v33 = vpop.permute.xlu1 %2812  ;;  %6206 = vmatprep.mubr.msk.f32.mxu1 %vm454_vm0, %v8065_v25  ;;  %v3230_v22 = vand.u32 4294901760, %v3229_v55  ;;  %v9600_v24 = vand.u32 4294901760, %v8052_v2 }
 0x289   : > { %v3239_v18 = vsub.f32 %v8050_v32, %v9346_v14  ;;  %6150 = vmatprep.mubr.f32.mxu0 %v3220_v34  ;;  %vm2910_vm1 = vcmp.eq.s32.totalorder %v2809_v46, %v7894_v29  ;;  %vm2911_vm2 = vcmp.eq.s32.totalorder %v2813_v33, %v7894_v29 }
 0x28a   : > { %v3249_v13 = vsub.f32 %v8052_v2, %v9600_v24  ;;  %v8093_v45 = vsel %vm2910_vm1, 1.0, %v9599_v17  ;;  %v8096_v28 = vsel %vm2911_vm2, 1.0, %v9599_v17  ;;  %v9351_v15 = vand.u32 4294901760, %v8078_v11 }
 0x28b   : > { %v3240_v48 = vand.u32 4294901760, %v3239_v18  ;;  %v3031_v34 = vsel %vm454_vm0, %v8093_v45, 0  ;;  %v3034_v46 = vsel %vm454_vm0, %v8096_v28, 0  ;;  %6207 = vmatmul.mubr.msk.f32.gmra.mxu1 %vm454_vm0, %v8068_v16 }
 0x28c   : > { %v8106_v33 = vsub.f32 %v3031_v34, %v3031_v34  ;;  %v8108_v24 = vsub.f32 %v3034_v46, %v3034_v46  ;;  %6151 = vmatmul.mubr.f32.gmra.mxu0 %v3230_v22  ;;  %v2817_v14 = vpop.permute.xlu0 %2816  ;;  %v2821_v18 = vpop.permute.xlu1 %2820  ;;  %6209 = vmatprep.mubr.msk.f32.mxu1 %vm454_vm0, %v8093_v45  ;;  %v3259_v35 = vsub.f32 %v8078_v11, %v9351_v15  ;;  %v3250_v55 = vand.u32 4294901760, %v3249_v13 }
 0x28d   : > { %6153 = vmatprep.mubr.f32.mxu0 %v3240_v48  ;;  %vm2912_vm3 = vcmp.eq.s32.totalorder %v2817_v14, %v7894_v29  ;;  %vm2913_vm4 = vcmp.eq.s32.totalorder %v2821_v18, %v7894_v29  ;;  %v9601_v34 = vand.u32 4294901760, %v8080_v57 }
 0x28e   : > { %v8121_v22 = vsel %vm2912_vm3, 1.0, %v9599_v17  ;;  %v8124_v12 = vsel %vm2913_vm4, 1.0, %v9599_v17  ;;  %v3260_v62 = vand.u32 4294901760, %v3259_v35  ;;  %v9356_v20 = vand.u32 4294901760, %v8106_v33 }
 0x28f   : > { %v3269_v46 = vsub.f32 %v8080_v57, %v9601_v34  ;;  %v3037_v48 = vsel %vm454_vm0, %v8121_v22, 0  ;;  %v3040_v14 = vsel %vm454_vm0, %v8124_v12, 0  ;;  %6210 = vmatmul.mubr.msk.f32.gmra.mxu1 %vm454_vm0, %v8096_v28 }
 0x290   : > { %v8134_v18 = vsub.f32 %v3037_v48, %v3037_v48  ;;  %v8136_v34 = vsub.f32 %v3040_v14, %v3040_v14  ;;  %6154 = vmatmul.mubr.f32.gmra.mxu0 %v3250_v55  ;;  %v2828_v15 = vpop.permute.xlu0 %2827  ;;  %v2832_v35 = vpop.permute.xlu1 %2831  ;;  %6212 = vmatprep.mubr.msk.f32.mxu1 %vm454_vm0, %v8121_v22  ;;  %v3279_v19 = vsub.f32 %v8106_v33, %v9356_v20  ;;  %v9602_v48 = vand.u32 4294901760, %v8108_v24 }
 0x291   : > { %6156 = vmatprep.mubr.f32.mxu0 %v3260_v62  ;;  %vm2914_vm5 = vcmp.eq.s32.totalorder %v2828_v15, %v7894_v29  ;;  %vm2915_vm6 = vcmp.eq.s32.totalorder %v2832_v35, %v7894_v29  ;;  %v3270_v13 = vand.u32 4294901760, %v3269_v46 }
 0x292   : > { %v3289_v14 = vsub.f32 %v8108_v24, %v9602_v48  ;;  %v8149_v55 = vsel %vm2914_vm5, 1.0, %v9599_v17  ;;  %v8152_v27 = vsel %vm2915_vm6, 1.0, %v9599_v17  ;;  %v3280_v0 = vand.u32 4294901760, %v3279_v19 }
 0x293   : > { %9603 = vst [vmem:[#allocation78_spill] sm:$0xff] %v8149_v55  ;;  %9604 = vst [vmem:[#allocation79_spill] sm:$0xff] %v8152_v27  ;;  %v9361_v60 = vand.u32 4294901760, %v8134_v18  ;;  %v3043_v62 = vsel %vm454_vm0, %v8149_v55, 0  ;;  %v3046_v15 = vsel %vm454_vm0, %v8152_v27, 0  ;;  %6213 = vmatmul.mubr.msk.f32.gmra.mxu1 %vm454_vm0, %v8124_v12 }
 0x294   : > { %v8162_v35 = vsub.f32 %v3043_v62, %v3043_v62  ;;  %v8164_v48 = vsub.f32 %v3046_v15, %v3046_v15  ;;  %6157 = vmatmul.mubr.f32.gmra.mxu0 %v3270_v13  ;;  %v2836_v20 = vpop.permute.xlu0 %2835  ;;  %v2840_v19 = vpop.permute.xlu1 %2839  ;;  %6215 = vmatprep.mubr.msk.f32.mxu1 %vm454_vm0, %v8149_v55  ;;  %v3290_v46 = vand.u32 4294901760, %v3289_v14  ;;  %v9605_v62 = vand.u32 4294901760, %v8136_v34 }
 0x295   : > { %v3299_v31 = vsub.f32 %v8134_v18, %v9361_v60  ;;  %6159 = vmatprep.mubr.f32.mxu0 %v3280_v0  ;;  %vm2916_vm7 = vcmp.eq.s32.totalorder %v2836_v20, %v7894_v29  ;;  %vm2917_vm8 = vcmp.eq.s32.totalorder %v2840_v19, %v7894_v29 }
 0x296   : > { %v3309_v15 = vsub.f32 %v8136_v34, %v9605_v62  ;;  %v8177_v13 = vsel %vm2916_vm7, 1.0, %v9599_v17  ;;  %v8180_v51 = vsel %vm2917_vm8, 1.0, %v9599_v17  ;;  %v9366_v10 = vand.u32 4294901760, %v8162_v35 }
 0x297   : > { %9606 = vst [vmem:[#allocation80_spill] sm:$0xff] %v8177_v13  ;;  %9607 = vst [vmem:[#allocation81_spill] sm:$0xff] %v8180_v51  ;;  %v3300_v9 = vand.u32 4294901760, %v3299_v31  ;;  %v3049_v0 = vsel %vm454_vm0, %v8177_v13, 0  ;;  %v3052_v20 = vsel %vm454_vm0, %v8180_v51, 0  ;;  %6216 = vmatmul.mubr.msk.f32.gmra.mxu1 %vm454_vm0, %v8152_v27 }
 0x298   : > { %v8190_v19 = vsub.f32 %v3049_v0, %v3049_v0  ;;  %v8192_v62 = vsub.f32 %v3052_v20, %v3052_v20  ;;  %6160 = vmatmul.mubr.f32.gmra.mxu0 %v3290_v46  ;;  %v2847_v60 = vpop.permute.xlu0 %2846  ;;  %v2851_v31 = vpop.permute.xlu1 %2850  ;;  %6218 = vmatprep.mubr.msk.f32.mxu1 %vm454_vm0, %v8177_v13  ;;  %v3319_v42 = vsub.f32 %v8162_v35, %v9366_v10  ;;  %v3310_v14 = vand.u32 4294901760, %v3309_v15 }
 0x299   : > { %6162 = vmatprep.mubr.f32.mxu0 %v3300_v9  ;;  %vm2918_vm9 = vcmp.eq.s32.totalorder %v2847_v60, %v7894_v29  ;;  %vm2919_vm10 = vcmp.eq.s32.totalorder %v2851_v31, %v7894_v29  ;;  %v9608_v0 = vand.u32 4294901760, %v8164_v48 }
 0x29a   : > { %v8205_v46 = vsel %vm2918_vm9, 1.0, %v9599_v17  ;;  %v8208_v6 = vsel %vm2919_vm10, 1.0, %v9599_v17  ;;  %v3320_v58 = vand.u32 4294901760, %v3319_v42  ;;  %v9371_v21 = vand.u32 4294901760, %v8190_v19 }
 0x29b   : > { %v3329_v20 = vsub.f32 %v8164_v48, %v9608_v0  ;;  %9609 = vst [vmem:[#allocation82_spill] sm:$0xff] %v8205_v46  ;;  %9610 = vst [vmem:[#allocation83_spill] sm:$0xff] %v8208_v6  ;;  %v3055_v9 = vsel %vm454_vm0, %v8205_v46, 0  ;;  %v3058_v60 = vsel %vm454_vm0, %v8208_v6, 0  ;;  %6219 = vmatmul.mubr.msk.f32.gmra.mxu1 %vm454_vm0, %v8180_v51 }
 0x29c   : > { %v8218_v31 = vsub.f32 %v3055_v9, %v3055_v9  ;;  %v8220_v0 = vsub.f32 %v3058_v60, %v3058_v60  ;;  %6163 = vmatmul.mubr.f32.gmra.mxu0 %v3310_v14  ;;  %v2855_v10 = vpop.permute.xlu0 %2854  ;;  %v2859_v42 = vpop.permute.xlu1 %2858  ;;  %6221 = vmatprep.mubr.msk.f32.mxu1 %vm454_vm0, %v8205_v46  ;;  %v3339_v36 = vsub.f32 %v8190_v19, %v9371_v21  ;;  %v9611_v9 = vand.u32 4294901760, %v8192_v62 }
 0x29d   : > { %6165 = vmatprep.mubr.f32.mxu0 %v3320_v58  ;;  %vm2920_vm11 = vcmp.eq.s32.totalorder %v2855_v10, %v7894_v29  ;;  %vm2921_vm12 = vcmp.eq.s32.totalorder %v2859_v42, %v7894_v29  ;;  %v3330_v15 = vand.u32 4294901760, %v3329_v20 }
 0x29e   : > { %v3349_v60 = vsub.f32 %v8192_v62, %v9611_v9  ;;  %v8233_v14 = vsel %vm2920_vm11, 1.0, %v9599_v17  ;;  %v8236_v56 = vsel %vm2921_vm12, 1.0, %v9599_v17  ;;  %v3340_v61 = vand.u32 4294901760, %v3339_v36 }
 0x29f   : > { %9612 = vst [vmem:[#allocation84_spill] sm:$0xff] %v8233_v14  ;;  %9613 = vst [vmem:[#allocation85_spill] sm:$0xff] %v8236_v56  ;;  %v9379_v7 = vand.u32 4294901760, %v8218_v31  ;;  %v3061_v58 = vsel %vm454_vm0, %v8233_v14, 0  ;;  %v3064_v10 = vsel %vm454_vm0, %v8236_v56, 0  ;;  %6222 = vmatmul.mubr.msk.f32.gmra.mxu1 %vm454_vm0, %v8208_v6 }
 0x2a0   : > { %v8246_v42 = vsub.f32 %v3061_v58, %v3061_v58  ;;  %v8248_v9 = vsub.f32 %v3064_v10, %v3064_v10  ;;  %6166 = vmatmul.mubr.f32.gmra.mxu0 %v3330_v15  ;;  %v2866_v21 = vpop.permute.xlu0 %2865  ;;  %v2870_v36 = vpop.permute.xlu1 %2869  ;;  %6224 = vmatprep.mubr.msk.f32.mxu1 %vm454_vm0, %v8233_v14  ;;  %v3350_v20 = vand.u32 4294901760, %v3349_v60  ;;  %v9614_v58 = vand.u32 4294901760, %v8220_v0 }
 0x2a1   : > { %v3359_v52 = vsub.f32 %v8218_v31, %v9379_v7  ;;  %6168 = vmatprep.mubr.f32.mxu0 %v3340_v61  ;;  %vm2922_vm13 = vcmp.eq.s32.totalorder %v2866_v21, %v7894_v29  ;;  %vm2923_vm14 = vcmp.eq.s32.totalorder %v2870_v36, %v7894_v29 }
 0x2a2   : > { %v3369_v10 = vsub.f32 %v8220_v0, %v9614_v58  ;;  %v8261_v15 = vsel %vm2922_vm13, 1.0, %v9599_v17  ;;  %v8264_v37 = vsel %vm2923_vm14, 1.0, %v9599_v17  ;;  %v9388_v14 = vand.u32 4294901760, %v8246_v42 }
 0x2a3   : > { %9615 = vst [vmem:[#allocation86_spill] sm:$0xff] %v8261_v15  ;;  %9616 = vst [vmem:[#allocation87_spill] sm:$0xff] %v8264_v37  ;;  %v3360_v43 = vand.u32 4294901760, %v3359_v52  ;;  %v3067_v61 = vsel %vm454_vm0, %v8261_v15, 0  ;;  %v3070_v21 = vsel %vm454_vm0, %v8264_v37, 0  ;;  %6225 = vmatmul.mubr.msk.f32.gmra.mxu1 %vm454_vm0, %v8236_v56 }
 0x2a4   : > { %v8274_v36 = vsub.f32 %v3067_v61, %v3067_v61  ;;  %v8276_v58 = vsub.f32 %v3070_v21, %v3070_v21  ;;  %6169 = vmatmul.mubr.f32.gmra.mxu0 %v3350_v20  ;;  %v2874_v7 = vpop.permute.xlu0 %2873  ;;  %v2878_v52 = vpop.permute.xlu1 %2877  ;;  %6227 = vmatprep.mubr.msk.f32.mxu1 %vm454_vm0, %v8261_v15  ;;  %v3379_v6 = vsub.f32 %v8246_v42, %v9388_v14  ;;  %v3370_v60 = vand.u32 4294901760, %v3369_v10 }
 0x2a5   : > { %6171 = vmatprep.mubr.f32.mxu0 %v3360_v43  ;;  %vm2924_vm15 = vcmp.eq.s32.totalorder %v2874_v7, %v7894_v29  ;;  %vm2925_vm1 = vcmp.eq.s32.totalorder %v2878_v52, %v7894_v29  ;;  %v9617_v61 = vand.u32 4294901760, %v8248_v9 }
 0x2a6   : > { %v8289_v20 = vsel %vm2924_vm15, 1.0, %v9599_v17  ;;  %v8292_v56 = vsel %vm2925_vm1, 1.0, %v9599_v17  ;;  %v3380_v15 = vand.u32 4294901760, %v3379_v6  ;;  %v9397_v46 = vand.u32 4294901760, %v8274_v36 }
 0x2a7   : > { %v3389_v21 = vsub.f32 %v8248_v9, %v9617_v61  ;;  %9618 = vst [vmem:[#allocation88_spill] sm:$0xff] %v8289_v20  ;;  %9619 = vst [vmem:[#allocation89_spill] sm:$0xff] %v8292_v56  ;;  %v3073_v43 = vsel %vm454_vm0, %v8289_v20, 0  ;;  %v3076_v7 = vsel %vm454_vm0, %v8292_v56, 0  ;;  %6228 = vmatmul.mubr.msk.f32.gmra.mxu1 %vm454_vm0, %v8264_v37 }
 0x2a8   : > { %v8302_v52 = vsub.f32 %v3073_v43, %v3073_v43  ;;  %v8304_v61 = vsub.f32 %v3076_v7, %v3076_v7  ;;  %6172 = vmatmul.mubr.f32.gmra.mxu0 %v3370_v60  ;;  %v2885_v14 = vpop.permute.xlu0 %2884  ;;  %v2889_v6 = vpop.permute.xlu1 %2888  ;;  %6230 = vmatprep.mubr.msk.f32.mxu1 %vm454_vm0, %v8289_v20  ;;  %v3399_v51 = vsub.f32 %v8274_v36, %v9397_v46  ;;  %v9620_v43 = vand.u32 4294901760, %v8276_v58 }
 0x2a9   : > { %6174 = vmatprep.mubr.f32.mxu0 %v3380_v15  ;;  %vm2926_vm2 = vcmp.eq.s32.totalorder %v2885_v14, %v7894_v29  ;;  %vm2927_vm3 = vcmp.eq.s32.totalorder %v2889_v6, %v7894_v29  ;;  %v3390_v10 = vand.u32 4294901760, %v3389_v21 }
 0x2aa   : > { %v3409_v7 = vsub.f32 %v8276_v58, %v9620_v43  ;;  %v8317_v60 = vsel %vm2926_vm2, 1.0, %v9599_v17  ;;  %v8320_v37 = vsel %vm2927_vm3, 1.0, %v9599_v17  ;;  %v3400_v20 = vand.u32 4294901760, %v3399_v51 }
 0x2ab   : > { %9621 = vst [vmem:[#allocation90_spill] sm:$0xff] %v8317_v60  ;;  %v9406_v13 = vand.u32 4294901760, %v8302_v52  ;;  %v3079_v15 = vsel %vm454_vm0, %v8317_v60, 0  ;;  %v3082_v14 = vsel %vm454_vm0, %v8320_v37, 0  ;;  %6231 = vmatmul.mubr.msk.f32.gmra.mxu1 %vm454_vm0, %v8292_v56 }
 0x2ac   : > { %v8330_v6 = vsub.f32 %v3079_v15, %v3079_v15  ;;  %v8332_v43 = vsub.f32 %v3082_v14, %v3082_v14  ;;  %6175 = vmatmul.mubr.f32.gmra.mxu0 %v3390_v10  ;;  %v2893_v46 = vpop.permute.xlu0 %2892  ;;  %v2897_v51 = vpop.permute.xlu1 %2896  ;;  %6233 = vmatprep.mubr.msk.f32.mxu1 %vm454_vm0, %v8317_v60  ;;  %v3410_v21 = vand.u32 4294901760, %v3409_v7  ;;  %v9622_v15 = vand.u32 4294901760, %v8304_v61 }
 0x2ad   : > { %v3419_v27 = vsub.f32 %v8302_v52, %v9406_v13  ;;  %6177 = vmatprep.mubr.f32.mxu0 %v3400_v20  ;;  %vm2928_vm4 = vcmp.eq.s32.totalorder %v2893_v46, %v7894_v29  ;;  %vm2929_vm5 = vcmp.eq.s32.totalorder %v2897_v51, %v7894_v29 }
 0x2ae   : > { %v3429_v14 = vsub.f32 %v8304_v61, %v9622_v15  ;;  %v8345_v10 = vsel %vm2928_vm4, 1.0, %v9599_v17  ;;  %v8348_v56 = vsel %vm2929_vm5, 1.0, %v9599_v17  ;;  %v9408_v55 = vand.u32 4294901760, %v8330_v6 }
 0x2af   : > { %v3420_v60 = vand.u32 4294901760, %v3419_v27  ;;  %v3085_v20 = vsel %vm454_vm0, %v8345_v10, 0  ;;  %v3088_v29 = vsel %vm454_vm0, %v8348_v56, 0  ;;  %6234 = vmatmul.mubr.msk.f32.gmra.mxu1 %vm454_vm0, %v8320_v37  ;;  %v9407_v46 = vand.u32 4294901760, %v8332_v43 }
 0x2b0   : > { %v8358_v7 = vsub.f32 %v3085_v20, %v3085_v20  ;;  %v8360_v51 = vsub.f32 %v3088_v29, %v3088_v29  ;;  %6178 = vmatmul.mubr.f32.gmra.mxu0 %v3410_v21  ;;  %6236 = vmatprep.mubr.msk.f32.mxu1 %vm454_vm0, %v8345_v10  ;;  %v3439_v27 = vsub.f32 %v8330_v6, %v9408_v55  ;;  %v3430_v17 = vand.u32 4294901760, %v3429_v14 }
 0x2b1   : > { %6180 = vmatprep.mubr.f32.mxu0 %v3420_v60  ;;  %v3449_v13 = vsub.f32 %v8332_v43, %v9407_v46  ;;  %v9623_v21 = vand.u32 4294901760, %v7944_v59  ;;  %v9624_v55 = vand.u32 4294901760, %v7962_v8 }
 0x2b2   : > { %v3440_v15 = vand.u32 4294901760, %v3439_v27  ;;  %v9409_v20 = vand.u32 4294901760, %v8358_v7  ;;  %v3468_v29 = vand.u32 4294901760, %v8360_v51 }
 0x2b3   : > { %6237 = vmatmul.mubr.msk.f32.gmra.mxu1 %vm454_vm0, %v8348_v56  ;;  %v3450_v14 = vand.u32 4294901760, %v3449_v13  ;;  %v9627_v13 = vand.u32 4294901760, %v7992_v49 }
 0x2b4   : > { %6181 = vmatmul.mubr.f32.gmra.mxu0 %v3430_v17  ;;  %6291 = vmatprep.mubr.f32.mxu1 %v9623_v21  ;;  %v3459_v60 = vsub.f32 %v8358_v7, %v9409_v20  ;;  %v3469_v46 = vsub.f32 %v8360_v51, %v3468_v29  ;;  %v9625_v17 = vand.u32 4294901760, %v7942_v44  ;;  %v9626_v20 = vand.u32 4294901760, %v7964_v30 }
 0x2b5   : > { %6183 = vmatprep.mubr.f32.mxu0 %v3440_v15  ;;  %v9628_v15 = vand.u32 4294901760, %v7994_v53 }
 0x2b6   : > { %v3460_v27 = vand.u32 4294901760, %v3459_v60  ;;  %v3470_v21 = vand.u32 4294901760, %v3469_v46  ;;  %v9631_v46 = vand.u32 4294901760, %v8050_v32 }
 0x2b7   : > { %6292 = vmatmul.mubr.f32.vlgmr.msra.gmra.mxu1 %v9624_v55  ;;  %v9629_v55 = vand.u32 4294901760, %v8020_v41 }
 0x2b8   : > { %6184 = vmatmul.mubr.f32.gmra.mxu0 %v3450_v14  ;;  %6294 = vmatprep.mubr.f32.mxu1 %v9625_v17 }
 0x2b9   : > { %6186 = vmatprep.mubr.f32.mxu0 %v3460_v27  ;;  %6390 = vmatpush3.msra.mxu1 %v7897_v5  ;;  %v9630_v5 = vand.u32 4294901760, %v8022_v23 }
 0x2bb   : > { %6295 = vmatmul.mubr.f32.gmra.mxu1 %v9626_v20 }
 0x2bc   : > { %6187 = vmatmul.mubr.f32.gmra.mxu0 %v3470_v21  ;;  %6297 = vmatprep.mubr.f32.mxu1 %v9627_v13 }
 0x2bd   : > { %6241 = vmatprep.mubr.f32.mxu0 %v7944_v59  ;;  %v9632_v59 = vand.u32 4294901760, %v8052_v2 }
 0x2bf   : > { %6298 = vmatmul.mubr.f32.gmra.mxu1 %v9628_v15 }
 0x2c0   : > { %6242 = vmatmul.mubr.f32.vlgmr.msra.gmra.mxu0 %v7962_v8  ;;  %6300 = vmatprep.mubr.f32.mxu1 %v9629_v55  ;;  %v9633_v8 = vand.u32 4294901760, %v8078_v11 }
 0x2c1   : > { %6340 = vmatpush3.msra.mxu0 %v7908_v47  ;;  %6244 = vmatprep.mubr.f32.mxu0 %v7942_v44  ;;  %v9634_v47 = vand.u32 4294901760, %v8080_v57  ;;  %v9635_v44 = vand.u32 4294901760, %v8106_v33 }
 0x2c3   : > { %6301 = vmatmul.mubr.f32.gmra.mxu1 %v9630_v5 }
 0x2c4   : > { %6245 = vmatmul.mubr.f32.gmra.mxu0 %v7964_v30  ;;  %6303 = vmatprep.mubr.f32.mxu1 %v9631_v46  ;;  %v9636_v30 = vand.u32 4294901760, %v8108_v24 }
 0x2c5   : > { %6247 = vmatprep.mubr.f32.mxu0 %v7992_v49  ;;  %v9637_v49 = vand.u32 4294901760, %v8134_v18 }
 0x2c7   : > { %6304 = vmatmul.mubr.f32.gmra.mxu1 %v9632_v59 }
 0x2c8   : > { %6248 = vmatmul.mubr.f32.gmra.mxu0 %v7994_v53  ;;  %6306 = vmatprep.mubr.f32.mxu1 %v9633_v8  ;;  %v9640_v53 = vand.u32 4294901760, %v8164_v48 }
 0x2c9   : > { %6250 = vmatprep.mubr.f32.mxu0 %v8020_v41  ;;  %v9638_v41 = vand.u32 4294901760, %v8136_v34 }
 0x2cb   : > { %6307 = vmatmul.mubr.f32.gmra.mxu1 %v9634_v47 }
 0x2cc   : > { %6251 = vmatmul.mubr.f32.gmra.mxu0 %v8022_v23  ;;  %6309 = vmatprep.mubr.f32.mxu1 %v9635_v44  ;;  %v9639_v23 = vand.u32 4294901760, %v8162_v35 }
 0x2cd   : > { %6253 = vmatprep.mubr.f32.mxu0 %v8050_v32  ;;  %v9641_v32 = vand.u32 4294901760, %v8190_v19 }
 0x2cf   : > { %6310 = vmatmul.mubr.f32.gmra.mxu1 %v9636_v30 }
 0x2d0   : > { %6254 = vmatmul.mubr.f32.gmra.mxu0 %v8052_v2  ;;  %6312 = vmatprep.mubr.f32.mxu1 %v9637_v49  ;;  %v9642_v2 = vand.u32 4294901760, %v8192_v62 }
 0x2d1   : > { %6256 = vmatprep.mubr.f32.mxu0 %v8078_v11  ;;  %v9643_v11 = vand.u32 4294901760, %v8218_v31 }
 0x2d3   : > { %6313 = vmatmul.mubr.f32.gmra.mxu1 %v9638_v41 }
 0x2d4   : > { %6257 = vmatmul.mubr.f32.gmra.mxu0 %v8080_v57  ;;  %6315 = vmatprep.mubr.f32.mxu1 %v9639_v23  ;;  %v9644_v57 = vand.u32 4294901760, %v8220_v0 }
 0x2d5   : > { %6259 = vmatprep.mubr.f32.mxu0 %v8106_v33  ;;  %v9645_v33 = vand.u32 4294901760, %v8246_v42 }
 0x2d7   : > { %6316 = vmatmul.mubr.f32.gmra.mxu1 %v9640_v53 }
 0x2d8   : > { %6260 = vmatmul.mubr.f32.gmra.mxu0 %v8108_v24  ;;  %6318 = vmatprep.mubr.f32.mxu1 %v9641_v32  ;;  %v9646_v24 = vand.u32 4294901760, %v8248_v9 }
 0x2d9   : > { %6262 = vmatprep.mubr.f32.mxu0 %v8134_v18  ;;  %v9647_v18 = vand.u32 4294901760, %v8274_v36 }
 0x2db   : > { %6319 = vmatmul.mubr.f32.gmra.mxu1 %v9642_v2 }
 0x2dc   : > { %6263 = vmatmul.mubr.f32.gmra.mxu0 %v8136_v34  ;;  %6321 = vmatprep.mubr.f32.mxu1 %v9643_v11  ;;  %v9648_v34 = vand.u32 4294901760, %v8276_v58 }
 0x2dd   : > { %6265 = vmatprep.mubr.f32.mxu0 %v8162_v35  ;;  %v9649_v35 = vand.u32 4294901760, %v8302_v52 }
 0x2df   : > { %6322 = vmatmul.mubr.f32.gmra.mxu1 %v9644_v57 }
 0x2e0   : > { %6266 = vmatmul.mubr.f32.gmra.mxu0 %v8164_v48  ;;  %6324 = vmatprep.mubr.f32.mxu1 %v9645_v33  ;;  %v9650_v48 = vand.u32 4294901760, %v8304_v61 }
 0x2e1   : > { %6268 = vmatprep.mubr.f32.mxu0 %v8190_v19  ;;  %v9651_v19 = vand.u32 4294901760, %v8330_v6 }
 0x2e3   : > { %6325 = vmatmul.mubr.f32.gmra.mxu1 %v9646_v24 }
 0x2e4   : > { %6269 = vmatmul.mubr.f32.gmra.mxu0 %v8192_v62  ;;  %6327 = vmatprep.mubr.f32.mxu1 %v9647_v18  ;;  %v9652_v62 = vand.u32 4294901760, %v8332_v43 }
 0x2e5   : > { %6271 = vmatprep.mubr.f32.mxu0 %v8218_v31  ;;  %v9653_v31 = vand.u32 4294901760, %v8358_v7 }
 0x2e7   : > { %6328 = vmatmul.mubr.f32.gmra.mxu1 %v9648_v34 }
 0x2e8   : > { %6272 = vmatmul.mubr.f32.gmra.mxu0 %v8220_v0  ;;  %6330 = vmatprep.mubr.f32.mxu1 %v9649_v35 }
 0x2e9   : > { %6274 = vmatprep.mubr.f32.mxu0 %v8246_v42 }
 0x2eb   : > { %6331 = vmatmul.mubr.f32.gmra.mxu1 %v9650_v48 }
 0x2ec   : > { %6275 = vmatmul.mubr.f32.gmra.mxu0 %v8248_v9  ;;  %6333 = vmatprep.mubr.f32.mxu1 %v9651_v19 }
 0x2ed   : > { %6277 = vmatprep.mubr.f32.mxu0 %v8274_v36 }
 0x2ef   : > { %6334 = vmatmul.mubr.f32.gmra.mxu1 %v9652_v62 }
 0x2f0   : > { %6278 = vmatmul.mubr.f32.gmra.mxu0 %v8276_v58  ;;  %6336 = vmatprep.mubr.f32.mxu1 %v9653_v31 }
 0x2f1   : > { %6280 = vmatprep.mubr.f32.mxu0 %v8302_v52 }
 0x2f3   : > { %6337 = vmatmul.mubr.f32.gmra.mxu1 %v3468_v29 }
 0x2f4   : > { %6281 = vmatmul.mubr.f32.gmra.mxu0 %v8304_v61  ;;  %6391 = vmatprep.mubr.msk.f32.mxu1 %vm454_vm0, %v7931_v26 }
 0x2f5   : > { %6283 = vmatprep.mubr.f32.mxu0 %v8330_v6 }
 0x2f7   : > { %6392 = vmatmul.mubr.msk.f32.vlgmr.msra.gmra.mxu1 %vm454_vm0, %v7949_v50 }
 0x2f8   : > { %6284 = vmatmul.mubr.f32.gmra.mxu0 %v8332_v43  ;;  %6394 = vmatprep.mubr.msk.f32.mxu1 %vm454_vm0, %v7934_v4 }
 0x2f9   : > { %6286 = vmatprep.mubr.f32.mxu0 %v8358_v7 }
 0x2fb   : > { %6395 = vmatmul.mubr.msk.f32.gmra.mxu1 %vm454_vm0, %v7952_v38 }
 0x2fc   : > { %6287 = vmatmul.mubr.f32.gmra.mxu0 %v8360_v51  ;;  %6397 = vmatprep.mubr.msk.f32.mxu1 %vm454_vm0, %v7975_v1 }
 0x2fd   : > { %6341 = vmatprep.mubr.msk.f32.mxu0 %vm454_vm0, %v7931_v26  ;;  %v9654_v26 = vld [vmem:[#allocation78_spill] sm:$0xff] }
 0x2ff   : > { %6398 = vmatmul.mubr.msk.f32.gmra.mxu1 %vm454_vm0, %v7978_v63 }
 0x300   : > { %6342 = vmatmul.mubr.msk.f32.vlgmr.msra.gmra.mxu0 %vm454_vm0, %v7949_v50  ;;  %6400 = vmatprep.mubr.msk.f32.mxu1 %vm454_vm0, %v8007_v54  ;;  %v9656_v50 = vld [vmem:[#allocation80_spill] sm:$0xff] }
 0x301   : > { %6344 = vmatprep.mubr.msk.f32.mxu0 %vm454_vm0, %v7934_v4  ;;  %v9655_v4 = vld [vmem:[#allocation79_spill] sm:$0xff] }
 0x303   : > { %6401 = vmatmul.mubr.msk.f32.gmra.mxu1 %vm454_vm0, %v8010_v40 }
 0x304   : > { %6345 = vmatmul.mubr.msk.f32.gmra.mxu0 %vm454_vm0, %v7952_v38  ;;  %6403 = vmatprep.mubr.msk.f32.mxu1 %vm454_vm0, %v8036_v3  ;;  %v9659_v38 = vld [vmem:[#allocation83_spill] sm:$0xff] }
 0x305   : > { %6347 = vmatprep.mubr.msk.f32.mxu0 %vm454_vm0, %v7975_v1  ;;  %v9661_v1 = vld [vmem:[#allocation85_spill] sm:$0xff] }
 0x307   : > { %6404 = vmatmul.mubr.msk.f32.gmra.mxu1 %vm454_vm0, %v8039_v39 }
 0x308   : > { %6348 = vmatmul.mubr.msk.f32.gmra.mxu0 %vm454_vm0, %v7978_v63  ;;  %6406 = vmatprep.mubr.msk.f32.mxu1 %vm454_vm0, %v8065_v25  ;;  %v9663_v63 = vld [vmem:[#allocation87_spill] sm:$0xff] }
 0x309   : > { %6350 = vmatprep.mubr.msk.f32.mxu0 %vm454_vm0, %v8007_v54  ;;  %v9664_v54 = vld [vmem:[#allocation88_spill] sm:$0xff] }
 0x30b   : > { %6407 = vmatmul.mubr.msk.f32.gmra.mxu1 %vm454_vm0, %v8068_v16 }
 0x30c   : > { %6351 = vmatmul.mubr.msk.f32.gmra.mxu0 %vm454_vm0, %v8010_v40  ;;  %6409 = vmatprep.mubr.msk.f32.mxu1 %vm454_vm0, %v8093_v45  ;;  %v9665_v40 = vld [vmem:[#allocation89_spill] sm:$0xff] }
 0x30d   : > { %6353 = vmatprep.mubr.msk.f32.mxu0 %vm454_vm0, %v8036_v3  ;;  %v9666_v3 = vld [vmem:[#allocation90_spill] sm:$0xff] }
 0x30f   : > { %6410 = vmatmul.mubr.msk.f32.gmra.mxu1 %vm454_vm0, %v8096_v28 }
 0x310   : > { %6354 = vmatmul.mubr.msk.f32.gmra.mxu0 %vm454_vm0, %v8039_v39  ;;  %6412 = vmatprep.mubr.msk.f32.mxu1 %vm454_vm0, %v8121_v22 }
 0x311   : > { %6356 = vmatprep.mubr.msk.f32.mxu0 %vm454_vm0, %v8065_v25  ;;  %v9657_v25 = vld [vmem:[#allocation81_spill] sm:$0xff] }
 0x313   : > { %6413 = vmatmul.mubr.msk.f32.gmra.mxu1 %vm454_vm0, %v8124_v12 }
 0x314   : > { %6357 = vmatmul.mubr.msk.f32.gmra.mxu0 %vm454_vm0, %v8068_v16  ;;  %6415 = vmatprep.mubr.msk.f32.mxu1 %vm454_vm0, %v9654_v26  ;;  %v9658_v16 = vld [vmem:[#allocation82_spill] sm:$0xff] }
 0x315   : > { %6359 = vmatprep.mubr.msk.f32.mxu0 %vm454_vm0, %v8093_v45 }
 0x317   : > { %6416 = vmatmul.mubr.msk.f32.gmra.mxu1 %vm454_vm0, %v9655_v4 }
 0x318   : > { %6360 = vmatmul.mubr.msk.f32.gmra.mxu0 %vm454_vm0, %v8096_v28  ;;  %6418 = vmatprep.mubr.msk.f32.mxu1 %vm454_vm0, %v9656_v50  ;;  %v9660_v28 = vld [vmem:[#allocation84_spill] sm:$0xff] }
 0x319   : > { %6362 = vmatprep.mubr.msk.f32.mxu0 %vm454_vm0, %v8121_v22 }
 0x31b   : > { %6419 = vmatmul.mubr.msk.f32.gmra.mxu1 %vm454_vm0, %v9657_v25 }
 0x31c   : > { %6363 = vmatmul.mubr.msk.f32.gmra.mxu0 %vm454_vm0, %v8124_v12  ;;  %6421 = vmatprep.mubr.msk.f32.mxu1 %vm454_vm0, %v9658_v16  ;;  %v9662_v12 = vld [vmem:[#allocation86_spill] sm:$0xff] }
 0x31d   : > { %6365 = vmatprep.mubr.msk.f32.mxu0 %vm454_vm0, %v9654_v26 }
 0x31f   : > { %6422 = vmatmul.mubr.msk.f32.gmra.mxu1 %vm454_vm0, %v9659_v38 }
 0x320   : > { %6366 = vmatmul.mubr.msk.f32.gmra.mxu0 %vm454_vm0, %v9655_v4  ;;  %6424 = vmatprep.mubr.msk.f32.mxu1 %vm454_vm0, %v9660_v28 }
 0x321   : > { %6368 = vmatprep.mubr.msk.f32.mxu0 %vm454_vm0, %v9656_v50 }
 0x323   : > { %6425 = vmatmul.mubr.msk.f32.gmra.mxu1 %vm454_vm0, %v9661_v1 }
 0x324   : > { %6369 = vmatmul.mubr.msk.f32.gmra.mxu0 %vm454_vm0, %v9657_v25  ;;  %6427 = vmatprep.mubr.msk.f32.mxu1 %vm454_vm0, %v9662_v12 }
 0x325   : > { %6371 = vmatprep.mubr.msk.f32.mxu0 %vm454_vm0, %v9658_v16 }
 0x327   : > { %6428 = vmatmul.mubr.msk.f32.gmra.mxu1 %vm454_vm0, %v9663_v63 }
 0x328   : > { %6372 = vmatmul.mubr.msk.f32.gmra.mxu0 %vm454_vm0, %v9659_v38  ;;  %6430 = vmatprep.mubr.msk.f32.mxu1 %vm454_vm0, %v9664_v54 }
 0x329   : > { %6374 = vmatprep.mubr.msk.f32.mxu0 %vm454_vm0, %v9660_v28 }
 0x32b   : > { %6431 = vmatmul.mubr.msk.f32.gmra.mxu1 %vm454_vm0, %v9665_v40 }
 0x32c   : > { %6375 = vmatmul.mubr.msk.f32.gmra.mxu0 %vm454_vm0, %v9661_v1  ;;  %6433 = vmatprep.mubr.msk.f32.mxu1 %vm454_vm0, %v9666_v3 }
 0x32d   : > { %6377 = vmatprep.mubr.msk.f32.mxu0 %vm454_vm0, %v9662_v12 }
 0x32f   : > { %6434 = vmatmul.mubr.msk.f32.gmra.mxu1 %vm454_vm0, %v8320_v37 }
 0x330   : > { %6378 = vmatmul.mubr.msk.f32.gmra.mxu0 %vm454_vm0, %v9663_v63  ;;  %6436 = vmatprep.mubr.msk.f32.mxu1 %vm454_vm0, %v8345_v10 }
 0x331   : > { %6380 = vmatprep.mubr.msk.f32.mxu0 %vm454_vm0, %v9664_v54 }
 0x333   : > { %6437 = vmatmul.mubr.msk.f32.gmra.mxu1 %vm454_vm0, %v8348_v56 }
 0x334   : > { %6381 = vmatmul.mubr.msk.f32.gmra.mxu0 %vm454_vm0, %v9665_v40 }
 0x335   : > { %6383 = vmatprep.mubr.msk.f32.mxu0 %vm454_vm0, %v9666_v3 }
 0x337   : > { %v6193_v39 = vpop.f32.mrf.mxu1 }
 0x338   : > { %6384 = vmatmul.mubr.msk.f32.gmra.mxu0 %vm454_vm0, %v8320_v37 }
 0x339   : > { %v3548_v45 = vpop.f32.mrf.mxu1  ;;  %6386 = vmatprep.mubr.msk.f32.mxu0 %vm454_vm0, %v8345_v10 }
 0x33b   : > { %v6196_v22 = vpop.f32.mrf.mxu1 }
 0x33c   : > { %6387 = vmatmul.mubr.msk.f32.gmra.mxu0 %vm454_vm0, %v8348_v56 }
 0x33d   : > { %v3560_v0 = vpop.f32.mrf.mxu1 }
 0x33f   : > { %v6199_v42 = vpop.f32.mrf.mxu1 }
 0x340   : > { %v6143_v9 = vpop.f32.mrf.mxu0 }
 0x341   : > { %v8606_v36 = vadd.f32 %v6193_v39, %v6143_v9  ;;  %v3572_v58 = vpop.f32.mrf.mxu1 }
 0x342   : > { %v3162_v52 = vpop.f32.mrf.mxu0 }
 0x343   : > { %v8608_v61 = vadd.f32 %v3548_v45, %v3162_v52  ;;  %v6202_v6 = vpop.f32.mrf.mxu1 }
 0x344   : > { %v6146_v43 = vpop.f32.mrf.mxu0 }
 0x345   : > { %v8610_v37 = vadd.f32 %v6196_v22, %v6146_v43  ;;  %v3584_v7 = vpop.f32.mrf.mxu1 }
 0x346   : > { %v3182_v51 = vpop.f32.mrf.mxu0 }
 0x347   : > { %v8612_v10 = vadd.f32 %v3560_v0, %v3182_v51  ;;  %v6205_v20 = vpop.f32.mrf.mxu1 }
 0x348   : > { %v6149_v29 = vpop.f32.mrf.mxu0 }
 0x349   : > { %v8614_v56 = vadd.f32 %v6199_v42, %v6149_v29  ;;  %v3596_v60 = vpop.f32.mrf.mxu1 }
 0x34a   : > { %v3202_v14 = vpop.f32.mrf.mxu0 }
 0x34b   : > { %v8616_v27 = vadd.f32 %v3572_v58, %v3202_v14  ;;  %v6208_v17 = vpop.f32.mrf.mxu1 }
 0x34c   : > { %v6152_v21 = vpop.f32.mrf.mxu0 }
 0x34d   : > { %v8618_v13 = vadd.f32 %v6202_v6, %v6152_v21  ;;  %v3608_v15 = vpop.f32.mrf.mxu1 }
 0x34e   : > { %v3222_v55 = vpop.f32.mrf.mxu0 }
 0x34f   : > { %v8620_v5 = vadd.f32 %v3584_v7, %v3222_v55  ;;  %v6211_v46 = vpop.f32.mrf.mxu1 }
 0x350   : > { %v6155_v59 = vpop.f32.mrf.mxu0 }
 0x351   : > { %v8622_v8 = vadd.f32 %v6205_v20, %v6155_v59  ;;  %v3620_v47 = vpop.f32.mrf.mxu1 }
 0x352   : > { %v3242_v44 = vpop.f32.mrf.mxu0 }
 0x353   : > { %v8624_v30 = vadd.f32 %v3596_v60, %v3242_v44  ;;  %v6214_v49 = vpop.f32.mrf.mxu1 }
 0x354   : > { %v6158_v41 = vpop.f32.mrf.mxu0 }
 0x355   : > { %v8626_v23 = vadd.f32 %v6208_v17, %v6158_v41  ;;  %v3632_v53 = vpop.f32.mrf.mxu1 }
 0x356   : > { %v3262_v32 = vpop.f32.mrf.mxu0 }
 0x357   : > { %v8628_v2 = vadd.f32 %v3608_v15, %v3262_v32  ;;  %v6217_v11 = vpop.f32.mrf.mxu1 }
 0x358   : > { %v6161_v57 = vpop.f32.mrf.mxu0 }
 0x359   : > { %v8630_v33 = vadd.f32 %v6211_v46, %v6161_v57  ;;  %v3644_v24 = vpop.f32.mrf.mxu1 }
 0x35a   : > { %v3282_v18 = vpop.f32.mrf.mxu0 }
 0x35b   : > { %v8632_v34 = vadd.f32 %v3620_v47, %v3282_v18  ;;  %v6220_v35 = vpop.f32.mrf.mxu1 }
 0x35c   : > { %v6164_v48 = vpop.f32.mrf.mxu0 }
 0x35d   : > { %9667 = vst [vmem:[#allocation78_spill] sm:$0xff] %v8632_v34  ;;  %v8634_v19 = vadd.f32 %v6214_v49, %v6164_v48  ;;  %v3656_v62 = vpop.f32.mrf.mxu1 }
 0x35e   : > { %v3302_v31 = vpop.f32.mrf.mxu0 }
 0x35f   : > { %9668 = vst [vmem:[#allocation79_spill] sm:$0xff] %v8634_v19  ;;  %v8636_v26 = vadd.f32 %v3632_v53, %v3302_v31  ;;  %v6223_v4 = vpop.f32.mrf.mxu1  ;;  %v9731_v19 = vld [vmem:[#allocation10_spill] sm:$0xff] }
 0x360   : > { %v6167_v50 = vpop.f32.mrf.mxu0 }
 0x361   : > { %9669 = vst [vmem:[#allocation80_spill] sm:$0xff] %v8636_v26  ;;  %v8638_v25 = vadd.f32 %v6217_v11, %v6167_v50  ;;  %v3668_v16 = vpop.f32.mrf.mxu1  ;;  %v9730_v26 = vld [vmem:[#allocation7_spill] sm:$0xff] }
 0x362   : > { %v3322_v38 = vpop.f32.mrf.mxu0 }
 0x363   : > { %9670 = vst [vmem:[#allocation81_spill] sm:$0xff] %v8638_v25  ;;  %v8640_v28 = vadd.f32 %v3644_v24, %v3322_v38  ;;  %v6226_v1 = vpop.f32.mrf.mxu1 }
 0x364   : > { %v6170_v12 = vpop.f32.mrf.mxu0 }
 0x365   : > { %9671 = vst [vmem:[#allocation82_spill] sm:$0xff] %v8640_v28  ;;  %v8642_v63 = vadd.f32 %v6220_v35, %v6170_v12  ;;  %v3680_v54 = vpop.f32.mrf.mxu1  ;;  %v9726_v28 = vld [vmem:[#allocation26_spill] sm:$0xff] }
 0x366   : > { %v3342_v40 = vpop.f32.mrf.mxu0 }
 0x367   : > { %9672 = vst [vmem:[#allocation83_spill] sm:$0xff] %v8642_v63  ;;  %v8644_v3 = vadd.f32 %v3656_v62, %v3342_v40  ;;  %v6229_v39 = vpop.f32.mrf.mxu1 }
 0x368   : > { %v6173_v45 = vpop.f32.mrf.mxu0 }
 0x369   : > { %9673 = vst [vmem:[#allocation84_spill] sm:$0xff] %v8644_v3  ;;  %v8646_v22 = vadd.f32 %v6223_v4, %v6173_v45  ;;  %v3692_v0 = vpop.f32.mrf.mxu1 }
 0x36a   : > { %v3362_v42 = vpop.f32.mrf.mxu0 }
 0x36b   : > { %9674 = vst [vmem:[#allocation85_spill] sm:$0xff] %v8646_v22  ;;  %v8648_v9 = vadd.f32 %v3668_v16, %v3362_v42  ;;  %v6232_v58 = vpop.f32.mrf.mxu1  ;;  %v6611_v22 = vmov 1966171168  }
 0x36c   : > { %v6176_v52 = vpop.f32.mrf.mxu0 }
 0x36d   : > { %9675 = vst [vmem:[#allocation86_spill] sm:$0xff] %v8648_v9  ;;  %v8650_v6 = vadd.f32 %v6226_v1, %v6176_v52  ;;  %v3704_v43 = vpop.f32.mrf.mxu1 }
 0x36e   : > { %v3382_v7 = vpop.f32.mrf.mxu0 }
 0x36f   : > { %9676 = vst [vmem:[#allocation87_spill] sm:$0xff] %v8650_v6  ;;  %v8652_v51 = vadd.f32 %v3680_v54, %v3382_v7  ;;  %v6235_v20 = vpop.f32.mrf.mxu1 }
 0x370   : > { %v6179_v29 = vpop.f32.mrf.mxu0 }
 0x371   : > { %9677 = vst [vmem:[#allocation88_spill] sm:$0xff] %v8652_v51  ;;  %v8654_v60 = vadd.f32 %v6229_v39, %v6179_v29  ;;  %v3716_v14 = vpop.f32.mrf.mxu1 }
 0x372   : > { %v3402_v17 = vpop.f32.mrf.mxu0 }
 0x373   : > { %9678 = vst [vmem:[#allocation89_spill] sm:$0xff] %v8654_v60  ;;  %v8656_v21 = vadd.f32 %v3692_v0, %v3402_v17  ;;  %v6238_v15 = vpop.f32.mrf.mxu1 }
 0x374   : > { %v6182_v55 = vpop.f32.mrf.mxu0 }
 0x375   : > { %9679 = vst [vmem:[#allocation90_spill] sm:$0xff] %v8656_v21  ;;  %v8658_v46 = vadd.f32 %v6232_v58, %v6182_v55  ;;  %v3728_v59 = vpop.f32.mrf.mxu1 }
 0x376   : > { %v3422_v47 = vpop.f32.mrf.mxu0 }
 0x377   : > { %9680 = vst [vmem:[#allocation91_spill] sm:$0xff] %v8658_v46  ;;  %v8660_v44 = vadd.f32 %v3704_v43, %v3422_v47  ;;  %v8662_v49 = vpop.f32.mrf.mxu1 }
 0x378   : > { %v6185_v41 = vpop.f32.mrf.mxu0 }
 0x379   : > { %9681 = vst [vmem:[#allocation92_spill] sm:$0xff] %v8660_v44  ;;  %v8664_v53 = vadd.f32 %v6235_v20, %v6185_v41  ;;  %v8666_v32 = vpop.f32.mrf.mxu1 }
 0x37a   : > { %v3442_v11 = vpop.f32.mrf.mxu0 }
 0x37b   : > { %9682 = vst [vmem:[#allocation93_spill] sm:$0xff] %v8664_v53  ;;  %v8668_v57 = vadd.f32 %v3716_v14, %v3442_v11  ;;  %v8670_v24 = vpop.f32.mrf.mxu1 }
 0x37c   : > { %v6188_v18 = vpop.f32.mrf.mxu0 }
 0x37d   : > { %9683 = vst [vmem:[#allocation94_spill] sm:$0xff] %v8668_v57  ;;  %v8672_v35 = vadd.f32 %v6238_v15, %v6188_v18  ;;  %v8674_v48 = vpop.f32.mrf.mxu1 }
 0x37e   : > { %v3462_v62 = vpop.f32.mrf.mxu0 }
 0x37f   : > { %9684 = vst [vmem:[#allocation95_spill] sm:$0xff] %v8672_v35  ;;  %v8676_v31 = vadd.f32 %v3728_v59, %v3462_v62  ;;  %v8678_v4 = vpop.f32.mrf.mxu1 }
 0x380   : > { %v8680_v50 = vpop.f32.mrf.mxu0 }
 0x381   : > { %9685 = vst [vmem:[#allocation96_spill] sm:$0xff] %v8676_v31  ;;  %v8682_v16 = vpop.f32.mrf.mxu1 }
 0x382   : > { %v8684_v38 = vpop.f32.mrf.mxu0 }
 0x383   : > { %v8686_v1 = vpop.f32.mrf.mxu1 }
 0x384   : > { %v8688_v12 = vpop.f32.mrf.mxu0 }
 0x385   : > { %v8690_v54 = vpop.f32.mrf.mxu1 }
 0x386   : > { %v8692_v40 = vpop.f32.mrf.mxu0 }
 0x387   : > { %v8694_v39 = vpop.f32.mrf.mxu1 }
 0x388   : > { %v8696_v45 = vpop.f32.mrf.mxu0 }
 0x389   : > { %v8698_v0 = vpop.f32.mrf.mxu1 }
 0x38a   : > { %v8700_v42 = vpop.f32.mrf.mxu0 }
 0x38b   : > { %v8702_v58 = vpop.f32.mrf.mxu1 }
 0x38c   : > { %v8704_v52 = vpop.f32.mrf.mxu0 }
 0x38d   : > { %v8706_v43 = vpop.f32.mrf.mxu1 }
 0x38e   : > { %9686 = vst [vmem:[#allocation97_spill] sm:$0xff] %v8706_v43  ;;  %v8708_v7 = vpop.f32.mrf.mxu0 }
 0x38f   : > { %v8710_v20 = vpop.f32.mrf.mxu1 }
 0x390   : > { %9687 = vst [vmem:[#allocation98_spill] sm:$0xff] %v8710_v20  ;;  %v8712_v29 = vpop.f32.mrf.mxu0 }
 0x391   : > { %v8714_v14 = vpop.f32.mrf.mxu1 }
 0x392   : > { %9688 = vst [vmem:[#allocation99_spill] sm:$0xff] %v8714_v14  ;;  %v8716_v17 = vpop.f32.mrf.mxu0  ;;  %v3830_v14 = vadd.f32 %v8688_v12, %v8610_v37 }
 0x393   : > { %v8718_v15 = vpop.f32.mrf.mxu1 }
 0x394   : > { %9689 = vst [vmem:[#allocation100_spill] sm:$0xff] %v8718_v15  ;;  %v8720_v55 = vpop.f32.mrf.mxu0 }
 0x395   : > { %v8722_v59 = vpop.f32.mrf.mxu1 }
 0x396   : > { %9690 = vst [vmem:[#allocation101_spill] sm:$0xff] %v8722_v59  ;;  %v8724_v47 = vpop.f32.mrf.mxu0 }
 0x397   : > { %v8726_v41 = vpop.f32.mrf.mxu1 }
 0x398   : > { %9691 = vst [vmem:[#allocation102_spill] sm:$0xff] %v8726_v41  ;;  %v8728_v11 = vpop.f32.mrf.mxu0 }
 0x399   : > { %v8730_v18 = vpop.f32.mrf.mxu1 }
 0x39a   : > { %9692 = vst [vmem:[#allocation103_spill] sm:$0xff] %v8730_v18  ;;  %v8732_v62 = vpop.f32.mrf.mxu0 }
 0x39b   : > { %9693 = vst [vmem:[#allocation104_spill] sm:$0xff] %v8732_v62  ;;  %v8734_v31 = vpop.f32.mrf.mxu1 }
 0x39c   : > { %9694 = vst [vmem:[#allocation105_spill] sm:$0xff] %v8734_v31  ;;  %v8736_v35 = vpop.f32.mrf.mxu0 }
 0x39d   : > { %9695 = vst [vmem:[#allocation106_spill] sm:$0xff] %v8736_v35  ;;  %v8738_v57 = vpop.f32.mrf.mxu1 }
 0x39e   : > { %9696 = vst [vmem:[#allocation107_spill] sm:$0xff] %v8738_v57  ;;  %v8740_v53 = vpop.f32.mrf.mxu0  ;;  %v4872_v57 = vunpack.c.l.s4 %v6611_v22 }
 0x39f   : > { %9697 = vst [vmem:[#allocation108_spill] sm:$0xff] %v8740_v53  ;;  %v8742_v44 = vpop.f32.mrf.mxu1 }
 0x3a0   : > { %9698 = vst [vmem:[#allocation109_spill] sm:$0xff] %v8742_v44  ;;  %v8744_v46 = vpop.f32.mrf.mxu0 }
 0x3a1   : > { %9699 = vst [vmem:[#allocation110_spill] sm:$0xff] %v8744_v46  ;;  %v8746_v21 = vpop.f32.mrf.mxu1 }
 0x3a2   : > { %9700 = vst [vmem:[#allocation111_spill] sm:$0xff] %v8746_v21  ;;  %v8748_v60 = vpop.f32.mrf.mxu0  ;;  %v4873_v21 = vunpack.c.0.s8 %v4872_v57  ;;  %v9719_v57 = vld [vmem:[#allocation27_spill] sm:$0xff] }
 0x3a3   : > { %9701 = vst [vmem:[#allocation112_spill] sm:$0xff] %v8748_v60  ;;  %v8750_v51 = vpop.f32.mrf.mxu1 }
 0x3a4   : > { %9702 = vst [vmem:[#allocation113_spill] sm:$0xff] %v8750_v51  ;;  %v8752_v6 = vpop.f32.mrf.mxu0 }
 0x3a5   : > { %9703 = vst [vmem:[#allocation114_spill] sm:$0xff] %v8752_v6  ;;  %v8754_v9 = vpop.f32.mrf.mxu1 }
 0x3a6   : > { %9704 = vst [vmem:[#allocation115_spill] sm:$0xff] %v8754_v9  ;;  %v8756_v31 = vpop.f32.mrf.mxu0 }
 0x3a7   : > { %9705 = vst [vmem:[#allocation116_spill] sm:$0xff] %v8756_v31  ;;  %v8758_v3 = vpop.f32.mrf.mxu1  ;;  %v9714_v31 = vld [vmem:[#allocation25_spill] sm:$0xff] }
 0x3a8   : > { %9706 = vst [vmem:[#allocation117_spill] sm:$0xff] %v8758_v3  ;;  %v8760_v18 = vpop.f32.mrf.mxu0  ;;  %v8775_v59 = vsub.s32 %v4873_v21, %v9714_v31 }
 0x3a9   : > { %9707 = vst [vmem:[#allocation118_spill] sm:$0xff] %v8760_v18  ;;  %v8762_v44 = vpop.f32.mrf.mxu1 }
 0x3aa   : > { %9708 = vst [vmem:[#allocation119_spill] sm:$0xff] %v8762_v44  ;;  %v8764_v41 = vpop.f32.mrf.mxu0 }
 0x3ab   : > { %9709 = vst [vmem:[#allocation120_spill] sm:$0xff] %v8764_v41  ;;  %v8766_v63 = vpop.f32.mrf.mxu1 }
 0x3ac   : > { %9710 = vst [vmem:[#allocation121_spill] sm:$0xff] %v8766_v63  ;;  %v8768_v51 = vpop.f32.mrf.mxu0  ;;  %v4877_v63 = vrot.slane %v9719_v57, %v8775_v59 }
 0x3ad   : > { %9711 = vst [vmem:[#allocation122_spill] sm:$0xff] %v8768_v51  ;;  %v8770_v6 = vpop.f32.mrf.mxu1 }
 0x3ae   : > { %9712 = vst [vmem:[#allocation123_spill] sm:$0xff] %v8770_v6  ;;  %v8772_v9 = vpop.f32.mrf.mxu0  ;;  %v4885_v6 = vcombine.high %v4877_v63, %v4877_v63 }
 0x3af   : > { %9713 = vst [vmem:[#allocation124_spill] sm:$0xff] %v8772_v9  ;;  %v8777_v22 = vpop.f32.mrf.mxu1 }
 0x3b0   : > { %9715 = vst [vmem:[#allocation125_spill] sm:$0xff] %v8777_v22  ;;  %v8779_v3 = vpop.f32.mrf.mxu0  ;;  %v4893_v22 = vrot.slane %v4877_v63, %v8775_v59  ;;  %v3809_v63 = vadd.f32 %v8684_v38, %v8608_v61  ;;  %v9732_v38 = vld [vmem:[#allocation9_spill] sm:$0xff] }
 0x3b1   : > { %9716 = vst [vmem:[#allocation126_spill] sm:$0xff] %v8779_v3  ;;  %v8781_v18 = vpop.f32.mrf.mxu1 }
 0x3b2   : > { %9717 = vst [vmem:[#allocation127_spill] sm:$0xff] %v8781_v18  ;;  %v8783_v44 = vpop.f32.mrf.mxu0  ;;  %v4907_v18 = vrot.slane %v4885_v6, %v8775_v59  ;;  %v4915_v60 = vcombine.high %v4893_v22, %v4893_v22  ;;  %v4922_v46 = vrot.slane %v4893_v22, %v9726_v28  ;;  %v9729_v22 = vld [vmem:[#allocation8_spill] sm:$0xff] }
 0x3b3   : > { %9718 = vst [vmem:[#allocation128_spill] sm:$0xff] %v8783_v44  ;;  %v8787_v41 = vpop.f32.mrf.mxu1 }
 0x3b4   : > { %9720 = vst [vmem:[#allocation129_spill] sm:$0xff] %v8787_v41  ;;  %v8789_v51 = vpop.f32.mrf.mxu0  ;;  %v3816_v41 = vadd.f32 %v8680_v50, %v8606_v36  ;;  %v4930_v6 = vrot.slane %v4915_v60, %v9726_v28  ;;  %v4959_v35 = vadd.f32 %v4922_v46, %v9730_v26  ;;  %v4962_v61 = vadd.f32 %v4922_v46, %v9731_v19 }
 0x3b5   : > { %9721 = vst [vmem:[#allocation130_spill] sm:$0xff] %v8789_v51  ;;  %v8791_v9 = vpop.f32.mrf.mxu1  ;;  %v4961_v20 = vadd.f32 %v4922_v46, %v9732_v38  ;;  %v3823_v60 = vadd.f32 %v8692_v40, %v8612_v10 }
 0x3b6   : > { %9722 = vst [vmem:[#allocation131_spill] sm:$0xff] %v8791_v9  ;;  %v8793_v21 = vpop.f32.mrf.mxu0  ;;  %v4108_v50 = vadd.f32 %v8662_v49, %v3816_v41 }
 0x3b7   : > { %9723 = vst [vmem:[#allocation132_spill] sm:$0xff] %v8793_v21  ;;  %v6393_v31 = vpop.f32.mrf.mxu1  ;;  %v4926_v21 = vrot.slane %v4907_v18, %v9726_v28 }
 0x3b8   : > { %v8796_v3 = vpop.f32.mrf.mxu0 }
 0x3b9   : > { %9724 = vst [vmem:[#allocation133_spill] sm:$0xff] %v8796_v3  ;;  %v4679_v44 = vpop.f32.mrf.mxu1  ;;  %v8828_v49 = vadd.f32 %v4926_v21, %v9730_v26  ;;  %v8831_v43 = vadd.f32 %v4926_v21, %v9731_v19  ;;  %v8834_v62 = vadd.f32 %v4926_v21, %v9732_v38 }
 0x3ba   : > { %v8799_v15 = vpop.f32.mrf.mxu0 }
 0x3bb   : > { %9725 = vst [vmem:[#allocation134_spill] sm:$0xff] %v8799_v15  ;;  %v6396_v51 = vpop.f32.mrf.mxu1  ;;  %v4917_v15 = vcombine.high %v4907_v18, %v4907_v18  ;;  %v4100_v18 = vadd.f32 %v8666_v32, %v3809_v63  ;;  %9733 = vst [vmem:[#allocation137_spill] sm:$0xff] %v8834_v62  ;;  %v4124_v32 = vadd.f32 %v8670_v24, %v3830_v14 }
 0x3bc   : > { %v8804_v9 = vpop.f32.mrf.mxu0  ;;  %v8844_v63 = vadd.f32 %v4930_v6, %v9730_v26  ;;  %v4116_v14 = vadd.f32 %v8674_v48, %v3823_v60 }
 0x3bd   : > { %9727 = vst [vmem:[#allocation135_spill] sm:$0xff] %v8804_v9  ;;  %v4691_v3 = vpop.f32.mrf.mxu1  ;;  %v4960_v9 = vadd.f32 %v4922_v46, %v9729_v22  ;;  %v8837_v46 = vadd.f32 %v4930_v6, %v9729_v22  ;;  %v4934_v34 = vrot.slane %v4917_v15, %v9726_v28  ;;  %v4870_v15 = vcombine.high %v9719_v57, %v9719_v57 }
 0x3be   : > { %v8809_v25 = vpop.f32.mrf.mxu0 }
 0x3bf   : > { %9728 = vst [vmem:[#allocation136_spill] sm:$0xff] %v8809_v25  ;;  %v8814_v36 = vpop.f32.mrf.mxu1  ;;  %v8822_v25 = vadd.f32 %v4926_v21, %v9729_v22  ;;  %9734 = vst [vmem:[#allocation138_spill] sm:$0xff] %v8837_v46  ;;  %v3837_v21 = vadd.f32 %v8700_v42, %v8616_v27  ;;  %v8851_v46 = vadd.f32 %v4930_v6, %v9731_v19 }
 0x3c0   : > { %v6343_v53 = vpop.f32.mrf.mxu0  ;;  %v8861_v27 = vadd.f32 %v4930_v6, %v9732_v38  ;;  %v8864_v42 = vadd.f32 %v4934_v34, %v9729_v22  ;;  %v8877_v60 = vrot.slane %v4870_v15, %v8775_v59  ;;  %v9740_v15 = vld [vmem:[#allocation48_spill] sm:$0xff] }
 0x3c1   : > { %v4428_v37 = vadd.f32 %v6343_v53, %v4108_v50  ;;  %v4703_v12 = vpop.f32.mrf.mxu1  ;;  %v3844_v50 = vadd.f32 %v8696_v45, %v8614_v56  ;;  %v3858_v56 = vadd.f32 %v8704_v52, %v8618_v13  ;;  %v3851_v13 = vadd.f32 %v8708_v7, %v8620_v5 }
 0x3c2   : > { %v4421_v41 = vpop.f32.mrf.mxu0  ;;  %v4132_v6 = vadd.f32 %v8682_v16, %v3837_v21  ;;  %v8887_v16 = vadd.f32 %v4934_v34, %v9731_v19 }
 0x3c3   : > { %v4686_v10 = vadd.f32 %v6393_v31, %v4428_v37  ;;  %v4422_v53 = vadd.f32 %v4421_v41, %v4100_v18  ;;  %v8840_v40 = vpop.f32.mrf.mxu1  ;;  %v8867_v41 = vadd.f32 %v4934_v34, %v9730_v26  ;;  %v4140_v48 = vadd.f32 %v8678_v4, %v3844_v50  ;;  %v9739_v50 = vld [vmem:[#allocation12_spill] sm:$0xff] }
 0x3c4   : > { %v6346_v62 = vpop.f32.mrf.mxu0  ;;  %v4156_v7 = vadd.f32 %v8686_v1, %v3858_v56  ;;  %v8897_v1 = vadd.f32 %v4934_v34, %v9732_v38  ;;  %v8901_v56 = vrot.slane %v8877_v60, %v8775_v59  ;;  %v3886_v34 = vadd.f32 %v8720_v55, %v8626_v23 }
 0x3c5   : > { %v4992_v31 = vadd.f32 %v4960_v9, %v4686_v10  ;;  %v4680_v37 = vadd.f32 %v4679_v44, %v4422_v53  ;;  %v4440_v18 = vadd.f32 %v6346_v62, %v4124_v32  ;;  %v8855_v24 = vpop.f32.mrf.mxu1  ;;  %9735 = vst [vmem:[#allocation139_spill] sm:$0xff] %v8867_v41  ;;  %v9736_v9 = vld [vmem:[#allocation46_spill] sm:$0xff] }
 0x3c6   : > { %v4433_v45 = vpop.f32.mrf.mxu0  ;;  %v9737_v32 = vld [vmem:[#allocation14_spill] sm:$0xff] }
 0x3c7   : > { %v5024_v44 = vadd.f32 %v4992_v31, %v9736_v9  ;;  %v4991_v62 = vadd.f32 %v4959_v35, %v4680_v37  ;;  %v4698_v57 = vadd.f32 %v6396_v51, %v4440_v18  ;;  %v4434_v10 = vadd.f32 %v4433_v45, %v4116_v14  ;;  %v8870_v53 = vpop.f32.mrf.mxu1  ;;  %v9738_v31 = vld [vmem:[#allocation47_spill] sm:$0xff] }
 0x3c8   : > { %v6349_v52 = vpop.f32.mrf.mxu0  ;;  %v3872_v14 = vadd.f32 %v8712_v29, %v8622_v8  ;;  %v4148_v29 = vadd.f32 %v8690_v54, %v3851_v13 }
 0x3c9   : > { %v5056_v41 = vmul.f32 %v5024_v44, %v9737_v32  ;;  %v5023_v35 = vadd.f32 %v4991_v62, %v9738_v31  ;;  %v4994_v51 = vadd.f32 %v4962_v61, %v4698_v57  ;;  %v4692_v37 = vadd.f32 %v4691_v3, %v4434_v10  ;;  %v8881_v18 = vpop.f32.mrf.mxu1  ;;  %v9743_v32 = vld [vmem:[#allocation11_spill] sm:$0xff] }
 0x3ca   : > { %v4452_v5 = vadd.f32 %v6349_v52, %v4140_v48  ;;  %v4445_v4 = vpop.f32.mrf.mxu0 }
 0x3cb   : > { %5088 = vst [vmem:[%s7716_s8 + $0x8] sm:$0xff] %v5056_v41  ;;  %v5055_v21 = vmul.f32 %v5023_v35, %v9739_v50  ;;  %v5026_v45 = vadd.f32 %v4994_v51, %v9740_v15  ;;  %v4993_v61 = vadd.f32 %v4961_v20, %v4692_v37  ;;  %v4446_v3 = vadd.f32 %v4445_v4, %v4132_v6  ;;  %v8892_v9 = vpop.f32.mrf.mxu1  ;;  %v9741_v41 = vld [vmem:[#allocation13_spill] sm:$0xff] }
 0x3cc   : > { %v4710_v44 = vadd.f32 %v8814_v36, %v4452_v5  ;;  %v6352_v8 = vpop.f32.mrf.mxu0  ;;  %v9742_v20 = vld [vmem:[#allocation49_spill] sm:$0xff]  ;;  %v3865_v36 = vadd.f32 %v8716_v17, %v8624_v30  ;;  %v4172_v6 = vadd.f32 %v8694_v39, %v3872_v14  ;;  %v3879_v30 = vadd.f32 %v8724_v47, %v8628_v2  ;;  %v9744_v17 = vld [vmem:[#allocation50_spill] sm:$0xff] }
 0x3cd   : > { %5087 = vst [vmem:[%s7716_s8] sm:$0xff] %v5055_v21  ;;  %v5058_v62 = vmul.f32 %v5026_v45, %v9741_v41  ;;  %v5025_v57 = vadd.f32 %v4993_v61, %v9742_v20  ;;  %v4704_v10 = vadd.f32 %v4703_v12, %v4446_v3  ;;  %v4464_v48 = vadd.f32 %v6352_v8, %v4156_v7  ;;  %v8906_v52 = vpop.f32.mrf.mxu1  ;;  %v9746_v7 = vld [vmem:[#allocation15_spill] sm:$0xff]  ;;  %v9747_v45 = vld [vmem:[#allocation16_spill] sm:$0xff]  ;;  %v9750_v41 = vld [vmem:[#allocation78_spill] sm:$0xff] }
 0x3ce   : > { %v4996_v54 = vadd.f32 %v8822_v25, %v4710_v44  ;;  %v4457_v13 = vpop.f32.mrf.mxu0  ;;  %v8925_v25 = vrot.slane %v8901_v56, %v9726_v28  ;;  %v4886_v39 = vcombine.high %v8877_v60, %v8877_v60  ;;  %v3900_v47 = vadd.f32 %v8728_v11, %v8630_v33  ;;  %v9748_v3 = vld [vmem:[#allocation52_spill] sm:$0xff]  ;;  %v9749_v44 = vld [vmem:[#allocation137_spill] sm:$0xff] }
 0x3cf   : > { %5090 = vst [vmem:[%s7716_s8 + $0x18] sm:$0xff] %v5058_v62  ;;  %v5057_v31 = vmul.f32 %v5025_v57, %v9743_v32  ;;  %v4995_v12 = vadd.f32 %v8828_v49, %v4704_v10  ;;  %v4722_v35 = vadd.f32 %v8840_v40, %v4464_v48  ;;  %v4458_v51 = vadd.f32 %v4457_v13, %v4148_v29  ;;  %v8918_v37 = vpop.f32.mrf.mxu1  ;;  %v9745_v49 = vld [vmem:[#allocation51_spill] sm:$0xff]  ;;  %v9751_v33 = vld [vmem:[#allocation104_spill] sm:$0xff]  ;;  %v9752_v20 = vld [vmem:[#allocation97_spill] sm:$0xff] }
 0x3d0   : > { %v5028_v23 = vadd.f32 %v4996_v54, %v9744_v17  ;;  %v6355_v55 = vpop.f32.mrf.mxu0  ;;  %v4164_v21 = vadd.f32 %v8698_v0, %v3865_v36  ;;  %v4188_v15 = vadd.f32 %v8702_v58, %v3886_v34  ;;  %v3893_v11 = vadd.f32 %v9751_v33, %v9750_v41  ;;  %v9753_v10 = vld [vmem:[#allocation17_spill] sm:$0xff]  ;;  %v9755_v34 = vld [vmem:[#allocation138_spill] sm:$0xff]  ;;  %v9767_v33 = vld [vmem:[#allocation55_spill] sm:$0xff] }
 0x3d1   : > { %5089 = vst [vmem:[%s7716_s8 + $0x10] sm:$0xff] %v5057_v31  ;;  %v5027_v14 = vadd.f32 %v4995_v12, %v9745_v49  ;;  %v4998_v40 = vadd.f32 %v8831_v43, %v4722_v35  ;;  %v4716_v5 = vadd.f32 %v8855_v24, %v4458_v51  ;;  %v4476_v4 = vadd.f32 %v6355_v55, %v4172_v6  ;;  %v8933_v2 = vpop.f32.mrf.mxu1  ;;  %v9754_v36 = vld [vmem:[#allocation53_spill] sm:$0xff]  ;;  %v9756_v12 = vld [vmem:[#allocation98_spill] sm:$0xff] }
 0x3d2   : > { %v5060_v50 = vmul.f32 %v5028_v23, %v9746_v7  ;;  %v4469_v60 = vpop.f32.mrf.mxu0  ;;  %v4180_v57 = vadd.f32 %v9752_v20, %v3879_v30  ;;  %v8952_v58 = vadd.f32 %v8925_v25, %v9729_v22  ;;  %v4204_v35 = vadd.f32 %v9756_v12, %v3900_v47  ;;  %v9757_v17 = vld [vmem:[#allocation18_spill] sm:$0xff]  ;;  %v9761_v7 = vld [vmem:[#allocation80_spill] sm:$0xff] }
 0x3d3   : > { %v5059_v61 = vmul.f32 %v5027_v14, %v9747_v45  ;;  %v5030_v43 = vadd.f32 %v4998_v40, %v9748_v3  ;;  %v4997_v24 = vadd.f32 %v9749_v44, %v4716_v5  ;;  %v4734_v8 = vadd.f32 %v8870_v53, %v4476_v4  ;;  %v8944_v29 = vpop.f32.mrf.mxu1  ;;  %v9758_v55 = vld [vmem:[#allocation54_spill] sm:$0xff]  ;;  %v9759_v5 = vld [vmem:[#allocation79_spill] sm:$0xff] }
 0x3d4   : > { %5092 = vst [vmem:[%s7716_s8 + $0x28] sm:$0xff] %v5060_v50  ;;  %v4470_v62 = vadd.f32 %v4469_v60, %v4164_v21  ;;  %v6358_v0 = vpop.f32.mrf.mxu0  ;;  %v8964_v51 = vadd.f32 %v8925_v25, %v9730_v26  ;;  %v8967_v30 = vrot.slane %v4886_v39, %v8775_v59  ;;  %v9760_v4 = vld [vmem:[#allocation106_spill] sm:$0xff]  ;;  %v9762_v50 = vld [vmem:[#allocation108_spill] sm:$0xff]  ;;  %v9763_v60 = vld [vmem:[#allocation99_spill] sm:$0xff] }
 0x3d5   : > { %5091 = vst [vmem:[%s7716_s8 + $0x20] sm:$0xff] %v5059_v61  ;;  %v5062_v48 = vmul.f32 %v5030_v43, %v9753_v10  ;;  %v5029_v53 = vadd.f32 %v4997_v24, %v9754_v36  ;;  %v5000_v54 = vadd.f32 %v9755_v34, %v4734_v8  ;;  %v4488_v13 = vadd.f32 %v6358_v0, %v4188_v15  ;;  %v8958_v6 = vpop.f32.mrf.mxu1  ;;  %v9764_v45 = vld [vmem:[#allocation19_spill] sm:$0xff]  ;;  %v9765_v24 = vld [vmem:[#allocation81_spill] sm:$0xff]  ;;  %v9766_v8 = vld [vmem:[#allocation110_spill] sm:$0xff] }
 0x3d6   : > { %v4728_v32 = vadd.f32 %v8881_v18, %v4470_v62  ;;  %v4481_v31 = vpop.f32.mrf.mxu0  ;;  %v3914_v47 = vadd.f32 %v9760_v4, %v9759_v5  ;;  %v3907_v21 = vadd.f32 %v9762_v50, %v9761_v7  ;;  %v4196_v15 = vadd.f32 %v9763_v60, %v3893_v11  ;;  %v9769_v36 = vld [vmem:[#allocation82_spill] sm:$0xff]  ;;  %v9776_v5 = vld [vmem:[#allocation83_spill] sm:$0xff] }
 0x3d7   : > { %5094 = vst [vmem:[%s7716_s8 + $0x38] sm:$0xff] %v5062_v48  ;;  %v5061_v23 = vmul.f32 %v5029_v53, %v9757_v17  ;;  %v5032_v49 = vadd.f32 %v5000_v54, %v9758_v55  ;;  %v4746_v14 = vadd.f32 %v8892_v9, %v4488_v13  ;;  %v4482_v40 = vadd.f32 %v4481_v31, %v4180_v57  ;;  %v8973_v18 = vpop.f32.mrf.mxu1  ;;  %v9770_v53 = vld [vmem:[#allocation112_spill] sm:$0xff]  ;;  %v9777_v4 = vld [vmem:[#allocation114_spill] sm:$0xff] }
 0x3d8   : > { %v4999_v59 = vadd.f32 %v8844_v63, %v4728_v32  ;;  %v6361_v39 = vpop.f32.mrf.mxu0  ;;  %v3928_v41 = vadd.f32 %v9766_v8, %v9765_v24  ;;  %v8992_v63 = vadd.f32 %v8925_v25, %v9731_v19  ;;  %v8996_v11 = vrot.slane %v8967_v30, %v9726_v28  ;;  %v9771_v54 = vld [vmem:[#allocation20_spill] sm:$0xff]  ;;  %v9779_v60 = vld [vmem:[#allocation22_spill] sm:$0xff]  ;;  %v9782_v8 = vld [vmem:[#allocation103_spill] sm:$0xff] }
 0x3d9   : > { %5093 = vst [vmem:[%s7716_s8 + $0x30] sm:$0xff] %v5061_v23  ;;  %v5064_v61 = vmul.f32 %v5032_v49, %v9764_v45  ;;  %v5002_v9 = vadd.f32 %v8851_v46, %v4746_v14  ;;  %v4740_v3 = vadd.f32 %v8906_v52, %v4482_v40  ;;  %v4500_v43 = vadd.f32 %v6361_v39, %v4204_v35  ;;  %v8985_v44 = vpop.f32.mrf.mxu1  ;;  %v9768_v46 = vld [vmem:[#allocation56_spill] sm:$0xff]  ;;  %v9773_v35 = vld [vmem:[#allocation101_spill] sm:$0xff]  ;;  %v9781_v45 = vld [vmem:[#allocation139_spill] sm:$0xff] }
 0x3da   : > { %v5031_v62 = vadd.f32 %v4999_v59, %v9767_v33  ;;  %v4493_v0 = vpop.f32.mrf.mxu0  ;;  %v3921_v34 = vadd.f32 %v9770_v53, %v9769_v36  ;;  %v9772_v32 = vld [vmem:[#allocation100_spill] sm:$0xff]  ;;  %v4212_v17 = vadd.f32 %v9773_v35, %v3907_v21  ;;  %v9774_v23 = vld [vmem:[#allocation21_spill] sm:$0xff]  ;;  %v3942_v7 = vadd.f32 %v9777_v4, %v9776_v5  ;;  %v9778_v59 = vld [vmem:[#allocation102_spill] sm:$0xff] }
 0x3db   : > { %5096 = vst [vmem:[%s7716_s8 + $0x48] sm:$0xff] %v5064_v61  ;;  %v5034_v52 = vadd.f32 %v5002_v9, %v9768_v46  ;;  %v5001_v20 = vadd.f32 %v8861_v27, %v4740_v3  ;;  %v4758_v57 = vadd.f32 %v8918_v37, %v4500_v43  ;;  %v4494_v10 = vadd.f32 %v4493_v0, %v4196_v15  ;;  %v9002_v48 = vpop.f32.mrf.mxu1  ;;  %v9775_v49 = vld [vmem:[#allocation57_spill] sm:$0xff]  ;;  %v9780_v15 = vld [vmem:[#allocation58_spill] sm:$0xff]  ;;  %v9784_v46 = vld [vmem:[#allocation59_spill] sm:$0xff] }
 0x3dc   : > { %v5063_v13 = vmul.f32 %v5031_v62, %v9771_v54  ;;  %v4220_v31 = vadd.f32 %v9772_v32, %v3914_v47  ;;  %v6364_v12 = vpop.f32.mrf.mxu0  ;;  %v4236_v39 = vadd.f32 %v9778_v59, %v3928_v41  ;;  %v9021_v21 = vadd.f32 %v8925_v25, %v9732_v38  ;;  %v9783_v62 = vld [vmem:[#allocation23_spill] sm:$0xff]  ;;  %v9786_v36 = vld [vmem:[#allocation116_spill] sm:$0xff]  ;;  %v9788_v54 = vld [vmem:[#allocation118_spill] sm:$0xff] }
 0x3dd   : > { %v5066_v55 = vmul.f32 %v5034_v52, %v9774_v23  ;;  %v5033_v27 = vadd.f32 %v5001_v20, %v9775_v49  ;;  %v5004_v37 = vadd.f32 %v8864_v42, %v4758_v57  ;;  %v4752_v14 = vadd.f32 %v8933_v2, %v4494_v10  ;;  %v9013_v40 = vpop.f32.mrf.mxu1  ;;  %v9785_v10 = vld [vmem:[#allocation84_spill] sm:$0xff] }
 0x3de   : > { %5095 = vst [vmem:[%s7716_s8 + $0x40] sm:$0xff] %v5063_v13  ;;  %v4512_v50 = vadd.f32 %v6364_v12, %v4220_v31  ;;  %v4505_v47 = vpop.f32.mrf.mxu0  ;;  %v4228_v41 = vadd.f32 %v9782_v8, %v3921_v34  ;;  %v9033_v25 = vadd.f32 %v8996_v11, %v9729_v22  ;;  %v4916_v33 = vcombine.high %v8901_v56, %v8901_v56  ;;  %v9787_v34 = vld [vmem:[#allocation85_spill] sm:$0xff]  ;;  %v9790_v35 = vld [vmem:[#allocation24_spill] sm:$0xff] }
 0x3df   : > { %5098 = vst [vmem:[%s7716_s8 + $0x58] sm:$0xff] %v5066_v55  ;;  %v5065_v42 = vmul.f32 %v5033_v27, %v9779_v60  ;;  %v5036_v2 = vadd.f32 %v5004_v37, %v9780_v15  ;;  %v5003_v61 = vadd.f32 %v9781_v45, %v4752_v14  ;;  %v4506_v9 = vadd.f32 %v4505_v47, %v4212_v17  ;;  %v9027_v3 = vpop.f32.mrf.mxu1  ;;  %v9789_v31 = vld [vmem:[#allocation105_spill] sm:$0xff]  ;;  %v9791_v27 = vld [vmem:[#allocation86_spill] sm:$0xff]  ;;  %v9792_v37 = vld [vmem:[#allocation120_spill] sm:$0xff] }
 0x3e0   : > { %v4770_v43 = vadd.f32 %v8944_v29, %v4512_v50  ;;  %v6367_v24 = vpop.f32.mrf.mxu0  ;;  %v3935_v53 = vadd.f32 %v9786_v36, %v9785_v10  ;;  %v3956_v13 = vadd.f32 %v9788_v54, %v9787_v34  ;;  %v4252_v12 = vadd.f32 %v9789_v31, %v3942_v7  ;;  %v9793_v5 = vld [vmem:[#allocation60_spill] sm:$0xff]  ;;  %v9794_v47 = vld [vmem:[#allocation61_spill] sm:$0xff]  ;;  %v9796_v15 = vld [vmem:[#allocation122_spill] sm:$0xff] }
 0x3e1   : > { %5097 = vst [vmem:[%s7716_s8 + $0x50] sm:$0xff] %v5065_v42  ;;  %v5068_v0 = vmul.f32 %v5036_v2, %v9783_v62  ;;  %v5035_v52 = vadd.f32 %v5003_v61, %v9784_v46  ;;  %v4764_v20 = vadd.f32 %v8958_v6, %v4506_v9  ;;  %v4524_v57 = vadd.f32 %v6367_v24, %v4236_v39  ;;  %v9041_v29 = vpop.f32.mrf.mxu1  ;;  %v9795_v42 = vld [vmem:[#allocation87_spill] sm:$0xff]  ;;  %v9797_v45 = vld [vmem:[#allocation28_spill] sm:$0xff]  ;;  %v9799_v8 = vld [vmem:[#allocation109_spill] sm:$0xff] }
 0x3e2   : > { %v5006_v32 = vadd.f32 %v8887_v16, %v4770_v43  ;;  %v4517_v56 = vpop.f32.mrf.mxu0  ;;  %v3949_v14 = vadd.f32 %v9792_v37, %v9791_v27  ;;  %v4979_v16 = vadd.f32 %v8996_v11, %v9730_v26  ;;  %v9061_v7 = vrot.slane %v4916_v33, %v9726_v28  ;;  %v9798_v9 = vld [vmem:[#allocation107_spill] sm:$0xff]  ;;  %v9800_v33 = vld [vmem:[#allocation29_spill] sm:$0xff] }
 0x3e3   : > { %5100 = vst [vmem:[%s7716_s8 + $0x68] sm:$0xff] %v5068_v0  ;;  %v5067_v17 = vmul.f32 %v5035_v52, %v9790_v35  ;;  %v5005_v6 = vadd.f32 %v8897_v1, %v4764_v20  ;;  %v4782_v23 = vadd.f32 %v8973_v18, %v4524_v57  ;;  %v4518_v55 = vadd.f32 %v4517_v56, %v4228_v41  ;;  %v9053_v49 = vpop.f32.mrf.mxu1  ;;  %v9801_v0 = vld [vmem:[#allocation62_spill] sm:$0xff]  ;;  %v9802_v20 = vld [vmem:[#allocation88_spill] sm:$0xff]  ;;  %v9804_v34 = vld [vmem:[#allocation111_spill] sm:$0xff] }
 0x3e4   : > { %v5038_v4 = vadd.f32 %v5006_v32, %v9793_v5  ;;  %v6370_v50 = vpop.f32.mrf.mxu0  ;;  %v3970_v2 = vadd.f32 %v9796_v15, %v9795_v42  ;;  %v4244_v43 = vadd.f32 %v9798_v9, %v3935_v53  ;;  %v4268_v41 = vadd.f32 %v9799_v8, %v3956_v13  ;;  %v9803_v57 = vld [vmem:[#allocation124_spill] sm:$0xff]  ;;  %v9805_v32 = vld [vmem:[#allocation30_spill] sm:$0xff] }
 0x3e5   : > { %5099 = vst [vmem:[%s7716_s8 + $0x60] sm:$0xff] %v5067_v17  ;;  %v5037_v1 = vadd.f32 %v5005_v6, %v9794_v47  ;;  %v5008_v18 = vadd.f32 %v8952_v58, %v4782_v23  ;;  %v4776_v59 = vadd.f32 %v8985_v44, %v4518_v55  ;;  %v4536_v39 = vadd.f32 %v6370_v50, %v4252_v12  ;;  %v9067_v60 = vpop.f32.mrf.mxu1  ;;  %v9807_v23 = vld [vmem:[#allocation113_spill] sm:$0xff]  ;;  %v9815_v9 = vld [vmem:[#allocation32_spill] sm:$0xff] }
 0x3e6   : > { %v5070_v61 = vmul.f32 %v5038_v4, %v9797_v45  ;;  %v4529_v24 = vpop.f32.mrf.mxu0  ;;  %v3963_v10 = vadd.f32 %v9803_v57, %v9802_v20  ;;  %v4260_v54 = vadd.f32 %v9804_v34, %v3949_v14  ;;  %v4982_v13 = vadd.f32 %v8996_v11, %v9731_v19  ;;  %v9808_v14 = vld [vmem:[#allocation31_spill] sm:$0xff]  ;;  %v9809_v4 = vld [vmem:[#allocation64_spill] sm:$0xff]  ;;  %v9819_v20 = vld [vmem:[#allocation66_spill] sm:$0xff] }
 0x3e7   : > { %v5069_v62 = vmul.f32 %v5037_v1, %v9800_v33  ;;  %v5040_v58 = vadd.f32 %v5008_v18, %v9801_v0  ;;  %v5007_v44 = vadd.f32 %v8964_v51, %v4776_v59  ;;  %v4794_v46 = vadd.f32 %v9002_v48, %v4536_v39  ;;  %v9078_v52 = vpop.f32.mrf.mxu1  ;;  %v9806_v51 = vld [vmem:[#allocation63_spill] sm:$0xff]  ;;  %v9810_v1 = vld [vmem:[#allocation89_spill] sm:$0xff]  ;;  %v9812_v59 = vld [vmem:[#allocation90_spill] sm:$0xff] }
 0x3e8   : > { %5102 = vst [vmem:[%s7716_s8 + $0x78] sm:$0xff] %v5070_v61  ;;  %v4530_v36 = vadd.f32 %v4529_v24, %v4244_v43  ;;  %v6373_v53 = vpop.f32.mrf.mxu0  ;;  %v4284_v55 = vadd.f32 %v9807_v23, %v3970_v2  ;;  %v4981_v27 = vadd.f32 %v8996_v11, %v9732_v38  ;;  %v4984_v37 = vadd.f32 %v9061_v7, %v9729_v22  ;;  %v9813_v39 = vld [vmem:[#allocation128_spill] sm:$0xff]  ;;  %v9814_v45 = vld [vmem:[#allocation115_spill] sm:$0xff]  ;;  %v9817_v33 = vld [vmem:[#allocation130_spill] sm:$0xff] }
 0x3e9   : > { %5101 = vst [vmem:[%s7716_s8 + $0x70] sm:$0xff] %v5069_v62  ;;  %v5072_v56 = vmul.f32 %v5040_v58, %v9805_v32  ;;  %v5039_v31 = vadd.f32 %v5007_v44, %v9806_v51  ;;  %v5010_v48 = vadd.f32 %v8992_v63, %v4794_v46  ;;  %v4548_v12 = vadd.f32 %v6373_v53, %v4268_v41  ;;  %v4823_v35 = vpop.f32.mrf.mxu1  ;;  %v9816_v41 = vld [vmem:[#allocation91_spill] sm:$0xff]  ;;  %v9818_v0 = vld [vmem:[#allocation65_spill] sm:$0xff]  ;;  %v9821_v53 = vld [vmem:[#allocation132_spill] sm:$0xff] }
 0x3ea   : > { %v4788_v17 = vadd.f32 %v9013_v40, %v4530_v36  ;;  %v4541_v6 = vpop.f32.mrf.mxu0  ;;  %v9811_v40 = vld [vmem:[#allocation126_spill] sm:$0xff]  ;;  %v3977_v42 = vadd.f32 %v9813_v39, %v9812_v59  ;;  %v4276_v61 = vadd.f32 %v9814_v45, %v3963_v10  ;;  %v3998_v62 = vadd.f32 %v9817_v33, %v9816_v41  ;;  %v9820_v36 = vld [vmem:[#allocation92_spill] sm:$0xff]  ;;  %v9823_v51 = vld [vmem:[#allocation117_spill] sm:$0xff] }
 0x3eb   : > { %5104 = vst [vmem:[%s7716_s8 + $0x88] sm:$0xff] %v5072_v56  ;;  %v5071_v5 = vmul.f32 %v5039_v31, %v9808_v14  ;;  %v5042_v50 = vadd.f32 %v5010_v48, %v9809_v4  ;;  %v4806_v63 = vadd.f32 %v9027_v3, %v4548_v12  ;;  %v4542_v47 = vadd.f32 %v4541_v6, %v4260_v54  ;;  %v6432_v15 = vpop.f32.mrf.mxu1  ;;  %v9822_v54 = vld [vmem:[#allocation33_spill] sm:$0xff]  ;;  %v9824_v12 = vld [vmem:[#allocation119_spill] sm:$0xff]  ;;  %v9831_v39 = vld [vmem:[#allocation68_spill] sm:$0xff] }
 0x3ec   : > { %v3984_v18 = vadd.f32 %v9811_v40, %v9810_v1  ;;  %v5009_v11 = vadd.f32 %v9021_v21, %v4788_v17  ;;  %v6376_v2 = vpop.f32.mrf.mxu0  ;;  %v4983_v21 = vadd.f32 %v9061_v7, %v9730_v26  ;;  %v4918_v46 = vcombine.high %v8967_v30, %v8967_v30  ;;  %v9825_v17 = vld [vmem:[#allocation34_spill] sm:$0xff]  ;;  %v9826_v23 = vld [vmem:[#allocation67_spill] sm:$0xff]  ;;  %v9827_v14 = vld [vmem:[#allocation93_spill] sm:$0xff] }
 0x3ed   : > { %5103 = vst [vmem:[%s7716_s8 + $0x80] sm:$0xff] %v5071_v5  ;;  %v5074_v43 = vmul.f32 %v5042_v50, %v9815_v9  ;;  %v5012_v24 = vadd.f32 %v9033_v25, %v4806_v63  ;;  %v4800_v3 = vadd.f32 %v9041_v29, %v4542_v47  ;;  %v4560_v8 = vadd.f32 %v6376_v2, %v4284_v55  ;;  %v4835_v56 = vpop.f32.mrf.mxu1  ;;  %v9828_v5 = vld [vmem:[#allocation133_spill] sm:$0xff] }
 0x3ee   : > { %v5041_v58 = vadd.f32 %v5009_v11, %v9818_v0  ;;  %v4553_v44 = vpop.f32.mrf.mxu0  ;;  %v3991_v34 = vadd.f32 %v9821_v53, %v9820_v36  ;;  %v4300_v31 = vadd.f32 %v9823_v51, %v3984_v18  ;;  %v4292_v30 = vadd.f32 %v9824_v12, %v3977_v42  ;;  %v9829_v47 = vld [vmem:[#allocation121_spill] sm:$0xff]  ;;  %v9830_v18 = vld [vmem:[#allocation35_spill] sm:$0xff]  ;;  %v9835_v0 = vld [vmem:[#allocation94_spill] sm:$0xff] }
 0x3ef   : > { %5106 = vst [vmem:[%s7716_s8 + $0x98] sm:$0xff] %v5074_v43  ;;  %v5044_v57 = vadd.f32 %v5012_v24, %v9819_v20  ;;  %v5011_v25 = vadd.f32 %v4979_v16, %v4800_v3  ;;  %v4818_v29 = vadd.f32 %v9053_v49, %v4560_v8  ;;  %v4554_v10 = vadd.f32 %v4553_v44, %v4276_v61  ;;  %v9832_v61 = vld [vmem:[#allocation123_spill] sm:$0xff]  ;;  %v9833_v3 = vld [vmem:[#allocation36_spill] sm:$0xff]  ;;  %v9834_v41 = vld [vmem:[#allocation69_spill] sm:$0xff] }
 0x3f0   : > { %v5073_v32 = vmul.f32 %v5041_v58, %v9822_v54  ;;  %v6379_v48 = vpop.f32.mrf.mxu0  ;;  %v4012_v4 = vadd.f32 %v9828_v5, %v9827_v14  ;;  %v4316_v1 = vadd.f32 %v9829_v47, %v3998_v62  ;;  %v4986_v40 = vadd.f32 %v9061_v7, %v9731_v19  ;;  %v9836_v58 = vld [vmem:[#allocation134_spill] sm:$0xff]  ;;  %v9838_v20 = vld [vmem:[#allocation135_spill] sm:$0xff]  ;;  %v9841_v54 = vld [vmem:[#allocation96_spill] sm:$0xff] }
 0x3f1   : > { %v5076_v6 = vmul.f32 %v5044_v57, %v9825_v17  ;;  %v5043_v55 = vadd.f32 %v5011_v25, %v9826_v23  ;;  %v5014_v16 = vadd.f32 %v4982_v13, %v4818_v29  ;;  %v4812_v49 = vadd.f32 %v9067_v60, %v4554_v10  ;;  %v6435_v60 = vpop.f32.mrf.mxu1  ;;  %v9839_v10 = vld [vmem:[#allocation125_spill] sm:$0xff]  ;;  %v9843_v51 = vld [vmem:[#allocation70_spill] sm:$0xff]  ;;  %v9849_v47 = vld [vmem:[#allocation72_spill] sm:$0xff] }
 0x3f2   : > { %5105 = vst [vmem:[%s7716_s8 + $0x90] sm:$0xff] %v5073_v32  ;;  %v4572_v50 = vadd.f32 %v6379_v48, %v4300_v31  ;;  %v4565_v63 = vpop.f32.mrf.mxu0  ;;  %v4308_v9 = vadd.f32 %v9832_v61, %v3991_v34  ;;  %v4985_v43 = vadd.f32 %v9061_v7, %v9732_v38  ;;  %v4950_v24 = vrot.slane %v4918_v46, %v9726_v28  ;;  %v9840_v28 = vld [vmem:[#allocation37_spill] sm:$0xff] }
 0x3f3   : > { %5108 = vst [vmem:[%s7716_s8 + $0xa8] sm:$0xff] %v5076_v6  ;;  %v5075_v59 = vmul.f32 %v5043_v55, %v9830_v18  ;;  %v5046_v42 = vadd.f32 %v5014_v16, %v9831_v39  ;;  %v5013_v13 = vadd.f32 %v4981_v27, %v4812_v49  ;;  %v4566_v11 = vadd.f32 %v4565_v63, %v4292_v30  ;;  %v4847_v48 = vpop.f32.mrf.mxu1  ;;  %v9845_v16 = vld [vmem:[#allocation38_spill] sm:$0xff]  ;;  %v9847_v5 = vld [vmem:[#allocation129_spill] sm:$0xff] }
 0x3f4   : > { %v4830_v2 = vadd.f32 %v9078_v52, %v4572_v50  ;;  %v6382_v45 = vpop.f32.mrf.mxu0  ;;  %v4005_v44 = vadd.f32 %v9836_v58, %v9835_v0  ;;  %v9837_v52 = vld [vmem:[#allocation95_spill] sm:$0xff]  ;;  %v4332_v7 = vadd.f32 %v9839_v10, %v4012_v4  ;;  %v4988_v30 = vadd.f32 %v4950_v24, %v9729_v22  ;;  %v9852_v61 = vld [vmem:[#allocation73_spill] sm:$0xff] }
 0x3f5   : > { %5107 = vst [vmem:[%s7716_s8 + $0xa0] sm:$0xff] %v5075_v59  ;;  %v5078_v8 = vmul.f32 %v5046_v42, %v9833_v3  ;;  %v5045_v33 = vadd.f32 %v5013_v13, %v9834_v41  ;;  %v4824_v62 = vadd.f32 %v4823_v35, %v4566_v11  ;;  %v4584_v27 = vadd.f32 %v6382_v45, %v4316_v1  ;;  %v9842_v35 = vld [vmem:[#allocation136_spill] sm:$0xff]  ;;  %v9848_v50 = vld [vmem:[#allocation39_spill] sm:$0xff]  ;;  %v6438_v59 = vpop.f32.mrf.mxu1 }
 0x3f6   : > { %v4026_v57 = vadd.f32 %v9838_v20, %v9837_v52  ;;  %v5016_v25 = vadd.f32 %v4984_v37, %v4830_v2  ;;  %v4577_v29 = vpop.f32.mrf.mxu0  ;;  %v4019_v32 = vadd.f32 %v9842_v35, %v9841_v54  ;;  %v9844_v37 = vld [vmem:[#allocation71_spill] sm:$0xff]  ;;  %v4990_v42 = vadd.f32 %v4950_v24, %v9731_v19  ;;  %v9851_v2 = vld [vmem:[#allocation40_spill] sm:$0xff]  ;;  %v9855_v52 = vld [vmem:[#allocation42_spill] sm:$0xff] }
 0x3f7   : > { %5110 = vst [vmem:[%s7716_s8 + $0xb8] sm:$0xff] %v5078_v8  ;;  %v5077_v46 = vmul.f32 %v5045_v33, %v9840_v28  ;;  %v5015_v36 = vadd.f32 %v4983_v21, %v4824_v62  ;;  %v4842_v53 = vadd.f32 %v6432_v15, %v4584_v27  ;;  %v4578_v34 = vadd.f32 %v4577_v29, %v4308_v9  ;;  %v9846_v21 = vld [vmem:[#allocation127_spill] sm:$0xff]  ;;  %v9854_v62 = vld [vmem:[#allocation74_spill] sm:$0xff]  ;;  %v4859_v58 = vpop.f32.mrf.mxu1  ;;  %v9861_v35 = vld [vmem:[#allocation45_spill] sm:$0xff] }
 0x3f8   : > { %v5048_v31 = vadd.f32 %v5016_v25, %v9843_v51  ;;  %v6385_v12 = vpop.f32.mrf.mxu0  ;;  %v4324_v49 = vadd.f32 %v9846_v21, %v4005_v44  ;;  %v4348_v4 = vadd.f32 %v9847_v5, %v4026_v57  ;;  %v9850_v13 = vld [vmem:[#allocation131_spill] sm:$0xff]  ;;  %v4989_v41 = vadd.f32 %v4950_v24, %v9732_v38  ;;  %v9857_v38 = vld [vmem:[#allocation76_spill] sm:$0xff] }
 0x3f9   : > { %5109 = vst [vmem:[%s7716_s8 + $0xb0] sm:$0xff] %v5077_v46  ;;  %v5047_v17 = vadd.f32 %v5015_v36, %v9844_v37  ;;  %v5018_v6 = vadd.f32 %v4986_v40, %v4842_v53  ;;  %v4836_v23 = vadd.f32 %v4835_v56, %v4578_v34  ;;  %v4596_v55 = vadd.f32 %v6385_v12, %v4332_v7  ;;  %v9856_v29 = vld [vmem:[#allocation75_spill] sm:$0xff]  ;;  %v9859_v36 = vld [vmem:[#allocation44_spill] sm:$0xff]  ;;  %v9860_v34 = vld [vmem:[#allocation77_spill] sm:$0xff] }
 0x3fa   : > { %v5080_v15 = vmul.f32 %v5048_v31, %v9845_v16  ;;  %v4589_v14 = vpop.f32.mrf.mxu0  ;;  %v4987_v56 = vadd.f32 %v4950_v24, %v9730_v26  ;;  %v4340_v11 = vadd.f32 %v9850_v13, %v4019_v32  ;;  %v9853_v26 = vld [vmem:[#allocation41_spill] sm:$0xff]  ;;  %v9858_v28 = vld [vmem:[#allocation43_spill] sm:$0xff] }
 0x3fb   : > { %v5079_v63 = vmul.f32 %v5047_v17, %v9848_v50  ;;  %v5050_v1 = vadd.f32 %v5018_v6, %v9849_v47  ;;  %v5017_v18 = vadd.f32 %v4985_v43, %v4836_v23  ;;  %v4854_v22 = vadd.f32 %v6435_v60, %v4596_v55 }
 0x3fc   : > { %5112 = vst [vmem:[%s7716_s8 + $0xc8] sm:$0xff] %v5080_v15  ;;  %v4590_v40 = vadd.f32 %v4589_v14, %v4324_v49  ;;  %v6388_v39 = vpop.f32.mrf.mxu0 }
 0x3fd   : > { %5111 = vst [vmem:[%s7716_s8 + $0xc0] sm:$0xff] %v5079_v63  ;;  %v5082_v45 = vmul.f32 %v5050_v1, %v9851_v2  ;;  %v5049_v9 = vadd.f32 %v5017_v18, %v9852_v61  ;;  %v5020_v3 = vadd.f32 %v4988_v30, %v4854_v22  ;;  %v4608_v43 = vadd.f32 %v6388_v39, %v4348_v4 }
 0x3fe   : > { %v4848_v60 = vadd.f32 %v4847_v48, %v4590_v40  ;;  %v4601_v8 = vpop.f32.mrf.mxu0 }
 0x3ff   : > { %5114 = vst [vmem:[%s7716_s8 + $0xd8] sm:$0xff] %v5082_v45  ;;  %v5081_v33 = vmul.f32 %v5049_v9, %v9853_v26  ;;  %v5052_v19 = vadd.f32 %v5020_v3, %v9854_v62  ;;  %v4866_v27 = vadd.f32 %v6438_v59, %v4608_v43  ;;  %v4602_v0 = vadd.f32 %v4601_v8, %v4340_v11 }
 0x400   : > { %v5019_v44 = vadd.f32 %v4987_v56, %v4848_v60 }
 0x401   : > { %5113 = vst [vmem:[%s7716_s8 + $0xd0] sm:$0xff] %v5081_v33  ;;  %v5084_v20 = vmul.f32 %v5052_v19, %v9855_v52  ;;  %v5022_v57 = vadd.f32 %v4990_v42, %v4866_v27  ;;  %v4860_v25 = vadd.f32 %v4859_v58, %v4602_v0 }
 0x402   : > { %v5051_v10 = vadd.f32 %v5019_v44, %v9856_v29 }
 0x403   : > { %5116 = vst [vmem:[%s7716_s8 + $0xe8] sm:$0xff] %v5084_v20  ;;  %v5054_v24 = vadd.f32 %v5022_v57, %v9857_v38  ;;  %v5021_v7 = vadd.f32 %v4989_v41, %v4860_v25 }
 0x404   : > { %v5083_v46 = vmul.f32 %v5051_v10, %v9858_v28 }
 0x405   : > { %v5086_v53 = vmul.f32 %v5054_v24, %v9859_v36  ;;  %v5053_v54 = vadd.f32 %v5021_v7, %v9860_v34 }
 0x406   : > { %5115 = vst [vmem:[%s7716_s8 + $0xe0] sm:$0xff] %v5083_v46 }
 0x407   : > { %5118 = vst [vmem:[%s7716_s8 + $0xf8] sm:$0xff] %v5086_v53  ;;  %v5085_v32 = vmul.f32 %v5053_v54, %v9861_v35 }
 0x409   : > { %5117 = vst [vmem:[%s7716_s8 + $0xf0] sm:$0xff] %v5085_v32 }
 0x40a PF: > { %s5442_s19 = sshll.u32 %s6591_s24, 5  ;;  %s5437_s20 = sshll.u32 %s6595_s25, 7 }
 0x40b   : > { %s5138_s12 = sshll.u32 %s7716_s8, 4  ;;  %s5135_s16 = sadd.s32 %s5442_s19, %s5437_s20  ;;  %s9189_s12 = int_to_ptr.vmem [resolvable:$true] %s5138_s12 }
 0x40c   : > { %s5438_s17 = sshll.u32 %s5135_s16, 7  ;;  %s9862_s9 = sand.u32 1, %s6583_s22  }
 0x40d   : > { %s9194_s29 = scalar_lea.hbm %s9255_s6, %s5438_s17  ;;  %s9198_s30 = scalar_lea.sflag [#allocation3], %s9862_s9 }
 0x40e   : > { %s6515_s5 = scalar_lea.vmem %s9189_s12, 4096  ;;  %s6612_s24 = smov [#allocation2]  }
 0x40f   : > { %p6516_p5 = scmp.ne.s32.totalorder %s9189_s12, %s6515_s5  ;;  %s6519_s25 = sshll.u32 %s6612_s24, 4  ;;  %s6520_s25 = int_to_ptr.vmem [resolvable:$false] %s6519_s25 }
 0x410   : > { %s6521_s7 = scalar_lea.vmem %s6520_s25, 8192  ;;  %p6522_p9 = scmp.lt.s32.totalorder %s9189_s12, %s6520_s25 }
 0x411   : > { %p6517_p6 = pnand %p6516_p5, %p6701_p3  ;;  %p6523_p10 = scmp.lt.s32.totalorder %s6521_s7, %s6515_s5 }
 0x413   : > { %p6518_p7 = pneg %p6517_p6  ;;  %p6524_p11 = por %p6523_p10, %p6522_p9 }
 0x415   : > { %p6525_p12 = pnand %p6524_p11, %p6518_p7 }
 0x417   : > { %6528 = shalt.err (!%p6525_p12)
}
 0x418   : > { %s6529_s8 = scalar_lea.hbm %s9194_s29, 4096  ;;  %s6533_s20 = scalar_lea.hbm %s9255_s6, 32768 }
 0x419   : > { %p6530_p13 = scmp.ne.s32.totalorder %s9194_s29, %s6529_s8  ;;  %p6534_p2 = scmp.lt.s32.totalorder %s9194_s29, %s9255_s6 }
 0x41a   : > { %p6535_p4 = scmp.lt.s32.totalorder %s6533_s20, %s6529_s8 }
 0x41b   : > { %p6531_p0 = pnand %p6530_p13, %p6701_p3 }
 0x41c   : > { %p6536_p5 = por %p6535_p4, %p6534_p2 }
 0x41d   : > { %p6532_p1 = pneg %p6531_p0 }
 0x41f   : > { %p6537_p6 = pnand %p6536_p5, %p6532_p1 }
 0x421   : > { %6540 = shalt.err (!%p6537_p6)
}
 0x422   : > { %s6613_s18 = smov 128   ;;  %s6614_s13 = smov 8  }
 0x423   : > { %6439 = dma.vmem_to_hbm [thread:$0]  (%p6701_p3), %s9189_s12, 4096, %s9194_s29, %s9198_s30, %s6613_s18, %s6613_s18, %s6614_s13  }
 0x424 PF: > { %p6445_p7 = scmp.ge.s32.totalorder %s6607_s28, 2  ;;  %s5153_s9 = sand.u32 1, %s6579_s21  }
 0x425   : > { %s5154_s5 = scalar_lea.sflag [#allocation3], %s5153_s9 }
 0x426   : > { %p6442_p9 = pnand %p6445_p7, %p6710_p8 }
 0x428   : > { %p6443_p10 = pneg %p6442_p9 }
 0x42a   : > { %6574 = dma.done.wait (%p6443_p10), %s5154_s5, 4096  }
 0x42b   : > { %6576 = vsyncadd (%p6443_p10), %s5154_s5, 4294963200  ;;  %s19_s28 = sadd.s32 1, %s6607_s28   ;;  %s9863_s10 = sld [smem:[#allocation5_spill]] }
 0x42c   : > { %p16_p11 = scmp.ge.s32.totalorder %s19_s28, 10   ;;  %s9864_s12 = sld [smem:[#allocation6_spill]] }
 0x42d   : > { %s9865_s21 = smov %s6583_s22  ;;  %s9866_s22 = smov %s6587_s23 }
 0x42e   : > { %s9867_s23 = smov %s6719_s15  ;;  %s9868_s24 = smov %s6599_s26 }
 0x42f   : > { %s9869_s25 = smov %s6603_s27  ;;  %18 = sbr.rel (!%p16_p11) target bundleno = 7 (0x7), region = 96 }
 0x431   : > { %s9870_s26 = smov %s9863_s10 }
 0x432   : > { %s9871_s27 = smov %s9864_s12 }
 0x434   :  { %5159 = vsyncpa [#allocation3], 1 }
 0x435   :  { %5161 = vsyncpa [#allocation3 + $0x1], 1 }

</bundles_post_ra>
